<compile_context>
chip_gen: v7x
topology: tpu7x:2x2x1
jax: 0.10.0
libtpu: 0.0.40
codegen_flags: <defaults>
</compile_context>

<pallas_src>
import functools

import jax
import jax.numpy as jnp
from jax import lax
from jax.experimental import pallas as pl
from jax.experimental.pallas import tpu as pltpu


def _round_up(a, m):
    return ((a + m - 1) // m) * m


# ----------------------------------------------------------------------------
# Pallas kernel: fused bidirectional LSTM recurrence, both directions
# interleaved in one body. grid = (time_block,), h/c are resident outputs.
# ----------------------------------------------------------------------------
def _bilstm_fused_kernel(gx_f_ref, gx_b_ref, whh_ref, bias_ref, lens_ref,
                         yf_ref, yb_ref, h_ref, c_ref,
                         *, t_block, hidden, unroll):
    t = pl.program_id(0)
    n_tb = pl.num_programs(0)

    @pl.when(t == 0)
    def _():
        h_ref[...] = jnp.zeros_like(h_ref)
        c_ref[...] = jnp.zeros_like(c_ref)

    H = hidden
    # Hoisted out of the time loop (stay resident in VMEM / vregs).
    w_f = whh_ref[0]                 # (H, 4H) bf16
    w_b = whh_ref[1]                 # (H, 4H) bf16
    b_f = bias_ref[0]                # (1, 4H) f32
    b_b = bias_ref[1]                # (1, 4H) f32
    lens_v = lens_ref[...]           # (B, 1) int32

    start_f = t * t_block
    start_b = (n_tb - 1 - t) * t_block

    def step(i, carry):
        h_f, c_f, h_b, c_b = carry

        # -------- forward direction: walks the block front-to-back ----------
        li_f = i
        g = (gx_f_ref[0, li_f].astype(jnp.float32) + b_f
             + jnp.dot(h_f.astype(jnp.bfloat16), w_f,
                       preferred_element_type=jnp.float32))
        s = jax.nn.sigmoid(g[:, :3 * H])           # gates [i, f, o]
        gg = jnp.tanh(g[:, 3 * H:])                # gate  [g]
        c_fn = s[:, H:2 * H] * c_f + s[:, :H] * gg
        h_fn = s[:, 2 * H:] * jnp.tanh(c_fn)
        m_f = (start_f + i) < lens_v               # (B, 1) bool
        yf_ref[li_f] = jnp.where(m_f, h_fn, 0.0)   # padded steps -> exact zero
        h_f = jnp.where(m_f, h_fn, h_f)            # freeze state when padded
        c_f = jnp.where(m_f, c_fn, c_f)

        # -------- backward direction: walks the block back-to-front ---------
        li_b = t_block - 1 - i
        g = (gx_b_ref[0, li_b].astype(jnp.float32) + b_b
             + jnp.dot(h_b.astype(jnp.bfloat16), w_b,
                       preferred_element_type=jnp.float32))
        s = jax.nn.sigmoid(g[:, :3 * H])
        gg = jnp.tanh(g[:, 3 * H:])
        c_bn = s[:, H:2 * H] * c_b + s[:, :H] * gg
        h_bn = s[:, 2 * H:] * jnp.tanh(c_bn)
        m_b = (start_b + li_b) < lens_v
        yb_ref[li_b] = jnp.where(m_b, h_bn, 0.0)
        h_b = jnp.where(m_b, h_bn, h_b)
        c_b = jnp.where(m_b, c_bn, c_b)

        return h_f, c_f, h_b, c_b

    carry0 = (h_ref[0], c_ref[0], h_ref[1], c_ref[1])
    h_f, c_f, h_b, c_b = lax.fori_loop(0, t_block, step, carry0, unroll=unroll)
    h_ref[0] = h_f
    c_ref[0] = c_f
    h_ref[1] = h_b
    c_ref[1] = c_b


def _bilstm_recurrence(gx, whh_bf16, bias, lens_col, *, t_block, unroll):
    """gx: (2, Tp, B, 4H) bf16 (no bias), whh: (2, H, 4H) bf16,
    bias: (2, 1, 4H) f32, lens_col: (B, 1) int32.
    Returns y_fwd (Tp,B,H) f32, y_bwd (Tp,B,H) f32, h (2,B,H), c (2,B,H)."""
    _, Tp, B, G = gx.shape
    H = G // 4
    n_tb = Tp // t_block

    kern = functools.partial(_bilstm_fused_kernel,
                             t_block=t_block, hidden=H, unroll=unroll)

    y_f, y_b, h, c = pl.pallas_call(
        kern,
        out_shape=(
            jax.ShapeDtypeStruct((Tp, B, H), jnp.float32),
            jax.ShapeDtypeStruct((Tp, B, H), jnp.float32),
            jax.ShapeDtypeStruct((2, B, H), jnp.float32),
            jax.ShapeDtypeStruct((2, B, H), jnp.float32),
        ),
        grid_spec=pltpu.PrefetchScalarGridSpec(
            num_scalar_prefetch=0,
            grid=(n_tb,),
            in_specs=[
                # forward gx stream: time blocks 0 .. n_tb-1
                pl.BlockSpec((1, t_block, B, 4 * H),
                             lambda t: (0, t, 0, 0)),
                # backward gx stream: time blocks n_tb-1 .. 0
                pl.BlockSpec((1, t_block, B, 4 * H),
                             lambda t: (1, n_tb - 1 - t, 0, 0)),
                pl.BlockSpec((2, H, 4 * H), lambda t: (0, 0, 0)),
                pl.BlockSpec((2, 1, 4 * H), lambda t: (0, 0, 0)),
                pl.BlockSpec((B, 1), lambda t: (0, 0)),
            ],
            out_specs=[
                pl.BlockSpec((t_block, B, H), lambda t: (t, 0, 0)),
                pl.BlockSpec((t_block, B, H), lambda t: (n_tb - 1 - t, 0, 0)),
                pl.BlockSpec((2, B, H), lambda t: (0, 0, 0)),   # resident carry
                pl.BlockSpec((2, B, H), lambda t: (0, 0, 0)),   # resident carry
            ],
        ),
        compiler_params=pltpu.CompilerParams(
            dimension_semantics=("arbitrary",),
            vmem_limit_bytes=32 * 1024 * 1024),
    )(gx, gx, whh_bf16, bias, lens_col)
    return y_f, y_b, h, c


# ----------------------------------------------------------------------------
# Hoisted input projection: one bf16 matmul over the whole sequence & both
# directions. Output kept bf16 (bias added in f32 inside the kernel).
# ----------------------------------------------------------------------------
def _input_projection(x, w_ih):
    """x: (B, T, D) batch-first  OR  (y_fwd, y_bwd) pair of (T, B, H).
       w_ih: (2, Din, 4H) f32. Returns gx (2, T, B, 4H) bf16."""
    w = w_ih.astype(jnp.bfloat16)
    if isinstance(x, tuple):
        y_f, y_b = x                                  # each (T, B, H)
        H = y_f.shape[-1]
        gx = (jnp.einsum('tbh,zhg->ztbg', y_f.astype(jnp.bfloat16), w[:, :H, :],
                         preferred_element_type=jnp.float32)
              + jnp.einsum('tbh,zhg->ztbg', y_b.astype(jnp.bfloat16), w[:, H:, :],
                           preferred_element_type=jnp.float32))
    else:                                             # raw embeddings (B, T, D)
        gx = jnp.einsum('btd,zdg->ztbg', x.astype(jnp.bfloat16), w,
                        preferred_element_type=jnp.float32)
    return gx.astype(jnp.bfloat16)


def _choose_t_block(T, B, H, budget_bytes=20 * 1024 * 1024):
    # Approx VMEM per unit of t_block (double-buffered, both directions):
    #   gx bf16: 2 dirs * 2 bufs * B*4H*2 = 32*B*H ; y f32: 2*2*B*H*4 = 16*B*H
    per_step = 48 * B * H
    cap = max(8, (budget_bytes // per_step) // 8 * 8)
    return int(min(_round_up(T, 8), cap))


# ----------------------------------------------------------------------------
# DynamicLSTM (multi-layer bidirectional nn.LSTM with packed-sequence masking).
# ----------------------------------------------------------------------------
def dynamic_lstm(x, lens, layer_params_list, *, t_block=None):
    """x: (B, T, D) batch-first, or (y_fwd, y_bwd) pair of (T, B, H).
    Returns (y_fwd, y_bwd) pair and (h, c) of shape (2*num_layers, B, H)."""
    if isinstance(x, tuple):
        T, B = x[0].shape[0], x[0].shape[1]
    else:
        B, T = x.shape[0], x.shape[1]
    H = layer_params_list[0]['w_hh'].shape[1]
    if t_block is None:
        t_block = _choose_t_block(T, B, H)
    Tp = _round_up(T, t_block)
    unroll = True if t_block <= 16 else 8
    lens_col = lens.astype(jnp.int32).reshape(B, 1)

    hs, cs = [], []
    cur = x
    for params in layer_params_list:
        gx = _input_projection(cur, params['w_ih'])          # (2, T, B, 4H) bf16
        if Tp != T:
            gx = jnp.pad(gx, ((0, 0), (0, Tp - T), (0, 0), (0, 0)))
        y_f, y_b, h, c = _bilstm_recurrence(gx, params['w_hh'], params['b'],
                                            lens_col, t_block=t_block,
                                            unroll=unroll)
        hs.append(h)
        cs.append(c)
        cur = (y_f[:T], y_b[:T])
    h_all = jnp.concatenate(hs, axis=0)                      # (2*num_layers, B, H)
    c_all = jnp.concatenate(cs, axis=0)
    return cur, (h_all, c_all)


def lstm_layer_forward(x, x_len, all_params, *, t_block=None):
    """LSTMLayer.forward: sequentially apply every DynamicLSTM.
    x: (B, T, embed_dim) batch-first. Returns ((B, T, 2H), (h, c))."""
    h = c = None
    cur = x
    for module_params in all_params:
        cur, (h, c) = dynamic_lstm(cur, x_len, module_params, t_block=t_block)
    y_f, y_b = cur                                           # (T, B, H) each
    out = jnp.concatenate([jnp.transpose(y_f, (1, 0, 2)),
                           jnp.transpose(y_b, (1, 0, 2))], axis=-1)  # (B,T,2H)
    return out, (h, c)


# ----------------------------------------------------------------------------
# Deterministic parameter construction (shapes follow nn.LSTM's __init__).
# Gate column order here is [i, f, o, g]; PyTorch uses [i, f, g, o] — permute
# the 4H columns when porting real weights. W_hh stored bf16 for the in-kernel
# MXU dot; gate math / state stay f32.
# ----------------------------------------------------------------------------
def init_params(key, embed_dim, hidden_dim, num_lstm_layer):
    H = hidden_dim
    scale = 1.0 / float(H) ** 0.5
    all_params = []
    for _mod in range(num_lstm_layer):                # outer ModuleList
        layers = []
        for inner in range(num_lstm_layer):           # nn.LSTM num_layers
            d_in = embed_dim if inner == 0 else 2 * H
            key, k1, k2, k3, k4 = jax.random.split(key, 5)
            w_ih = jax.random.uniform(k1, (2, d_in, 4 * H), jnp.float32,
                                      -scale, scale)
            w_hh = jax.random.uniform(k2, (2, H, 4 * H), jnp.float32,
                                      -scale, scale)
            b_ih = jax.random.uniform(k3, (2, 4 * H), jnp.float32,
                                      -scale, scale)
            b_hh = jax.random.uniform(k4, (2, 4 * H), jnp.float32,
                                      -scale, scale)
            layers.append({'w_ih': w_ih,
                           'w_hh': w_hh.astype(jnp.bfloat16),
                           'b': (b_ih + b_hh).reshape(2, 1, 4 * H)})
        all_params.append(layers)
    return all_params


if __name__ == "__main__":
    # embed_dim must equal 2*hidden_dim for the stacked modules to type-check
    # (same constraint as the original PyTorch code).
    embed_dim, hidden_dim, num_lstm_layer = 64, 32, 2
    B, T = 2, 8

    key = jax.random.PRNGKey(0)
    k_x, k_p = jax.random.split(key)
    x = jax.random.normal(k_x, (B, T, embed_dim), jnp.float32)
    x_len = jnp.array([T, 5], dtype=jnp.int32)        # max length == T

    params = init_params(k_p, embed_dim, hidden_dim, num_lstm_layer)

    fwd = jax.jit(lstm_layer_forward)
    out, (h, c) = fwd(x, x_len, params)
    out = jax.block_until_ready(out)
    h = jax.block_until_ready(h)
    c = jax.block_until_ready(c)

    assert out.shape == (B, T, 2 * hidden_dim)
    assert h.shape == (2 * num_lstm_layer, B, hidden_dim)
    assert c.shape == (2 * num_lstm_layer, B, hidden_dim)
    # padded timesteps of the shorter sequence must be exactly zero
    # (pack/unpack semantics)
    assert bool(jnp.all(out[1, 5:, :] == 0.0))
    assert bool(jnp.all(jnp.isfinite(out)))
    assert bool(jnp.all(jnp.isfinite(h))) and bool(jnp.all(jnp.isfinite(c)))

    print("KERNEL_OK")
</pallas_src>

<mosaic_0001>
module attributes {stable_mosaic.version = 11 : i64} {
  func.func @_bilstm_fused_kernel(%arg0: i32, %arg1: memref<1x8x2x128xbf16, #tpu.memory_space<vmem>>, %arg2: memref<1x8x2x128xbf16, #tpu.memory_space<vmem>>, %arg3: memref<2x32x128xbf16, #tpu.memory_space<vmem>>, %arg4: memref<2x1x128xf32, #tpu.memory_space<vmem>>, %arg5: memref<2x1xi32, #tpu.memory_space<vmem>>, %arg6: memref<8x2x32xf32, #tpu.memory_space<vmem>>, %arg7: memref<8x2x32xf32, #tpu.memory_space<vmem>>, %arg8: memref<2x2x32xf32, #tpu.memory_space<vmem>>, %arg9: memref<2x2x32xf32, #tpu.memory_space<vmem>>) attributes {dimension_semantics = [#tpu.dimension_semantics<arbitrary>], iteration_bounds = array<i64: 1>, scalar_prefetch = 0 : i64, scratch_operands = 0 : i64, tpu.core_type = #tpu.core_type<tc>, window_params = [{transform_indices = @transform_0, window_bounds = array<i64: 1, 8, 2, 128>}, {transform_indices = @transform_1, window_bounds = array<i64: 1, 8, 2, 128>}, {pipeline_mode = #tpu.pipeline_mode<synchronous>, transform_indices = @transform_2, window_bounds = array<i64: 2, 32, 128>}, {pipeline_mode = #tpu.pipeline_mode<synchronous>, transform_indices = @transform_3, window_bounds = array<i64: 2, 1, 128>}, {pipeline_mode = #tpu.pipeline_mode<synchronous>, transform_indices = @transform_4, window_bounds = array<i64: 2, 1>}, {transform_indices = @transform_5, window_bounds = array<i64: 8, 2, 32>}, {transform_indices = @transform_6, window_bounds = array<i64: 8, 2, 32>}, {pipeline_mode = #tpu.pipeline_mode<synchronous>, transform_indices = @transform_7, window_bounds = array<i64: 2, 2, 32>}, {pipeline_mode = #tpu.pipeline_mode<synchronous>, transform_indices = @transform_8, window_bounds = array<i64: 2, 2, 32>}]} {
    %c0_i32 = arith.constant 0 : i32
    %0 = arith.cmpi eq, %arg0, %c0_i32 : i32
    %1 = arith.extui %0 : i1 to i32
    %c0_i32_0 = arith.constant 0 : i32
    %2 = arith.cmpi ne, %1, %c0_i32_0 : i32
    scf.if %2 {
      %cst_176 = arith.constant 0.000000e+00 : f32
      %715 = vector.broadcast %cst_176 : f32 to vector<2x2x32xf32>
      %c0_177 = arith.constant 0 : index
      %c0_178 = arith.constant 0 : index
      %c0_179 = arith.constant 0 : index
      %716 = vector.load %arg8[%c0_177, %c0_178, %c0_179] : memref<2x2x32xf32, #tpu.memory_space<vmem>>, vector<2x2x32xf32>
      tpu.vector_store %arg8[%c0_177, %c0_178, %c0_179], %715 {strides = array<i32>} : memref<2x2x32xf32, #tpu.memory_space<vmem>>, vector<2x2x32xf32>,
      %cst_180 = arith.constant 0.000000e+00 : f32
      %717 = vector.broadcast %cst_180 : f32 to vector<2x2x32xf32>
      %c0_181 = arith.constant 0 : index
      %c0_182 = arith.constant 0 : index
      %c0_183 = arith.constant 0 : index
      %718 = vector.load %arg9[%c0_181, %c0_182, %c0_183] : memref<2x2x32xf32, #tpu.memory_space<vmem>>, vector<2x2x32xf32>
      tpu.vector_store %arg9[%c0_181, %c0_182, %c0_183], %717 {strides = array<i32>} : memref<2x2x32xf32, #tpu.memory_space<vmem>>, vector<2x2x32xf32>,
    } else {
    }
    %c0 = arith.constant 0 : index
    %c0_1 = arith.constant 0 : index
    %c0_2 = arith.constant 0 : index
    %3 = vector.load %arg3[%c0, %c0_1, %c0_2] : memref<2x32x128xbf16, #tpu.memory_space<vmem>>, vector<1x32x128xbf16>
    %4 = vector.shape_cast %3 : vector<1x32x128xbf16> to vector<32x128xbf16>
    %c1 = arith.constant 1 : index
    %c0_3 = arith.constant 0 : index
    %c0_4 = arith.constant 0 : index
    %5 = vector.load %arg3[%c1, %c0_3, %c0_4] : memref<2x32x128xbf16, #tpu.memory_space<vmem>>, vector<1x32x128xbf16>
    %6 = vector.shape_cast %5 : vector<1x32x128xbf16> to vector<32x128xbf16>
    %c0_5 = arith.constant 0 : index
    %c0_6 = arith.constant 0 : index
    %c0_7 = arith.constant 0 : index
    %7 = vector.load %arg4[%c0_5, %c0_6, %c0_7] : memref<2x1x128xf32, #tpu.memory_space<vmem>>, vector<1x1x128xf32>
    %8 = vector.shape_cast %7 : vector<1x1x128xf32> to vector<1x128xf32>
    %c1_8 = arith.constant 1 : index
    %c0_9 = arith.constant 0 : index
    %c0_10 = arith.constant 0 : index
    %9 = vector.load %arg4[%c1_8, %c0_9, %c0_10] : memref<2x1x128xf32, #tpu.memory_space<vmem>>, vector<1x1x128xf32>
    %10 = vector.shape_cast %9 : vector<1x1x128xf32> to vector<1x128xf32>
    %c0_11 = arith.constant 0 : index
    %c0_12 = arith.constant 0 : index
    %11 = vector.load %arg5[%c0_11, %c0_12] : memref<2x1xi32, #tpu.memory_space<vmem>>, vector<2x1xi32>
    %c8_i32 = arith.constant 8 : i32
    %12 = arith.muli %arg0, %c8_i32 : i32
    %c0_i32_13 = arith.constant 0 : i32
    %13 = arith.subi %c0_i32_13, %arg0 : i32
    %c8_i32_14 = arith.constant 8 : i32
    %14 = arith.muli %13, %c8_i32_14 : i32
    %c0_15 = arith.constant 0 : index
    %c0_16 = arith.constant 0 : index
    %c0_17 = arith.constant 0 : index
    %15 = vector.load %arg8[%c0_15, %c0_16, %c0_17] : memref<2x2x32xf32, #tpu.memory_space<vmem>>, vector<1x2x32xf32>
    %16 = vector.shape_cast %15 : vector<1x2x32xf32> to vector<2x32xf32>
    %c0_18 = arith.constant 0 : index
    %c0_19 = arith.constant 0 : index
    %c0_20 = arith.constant 0 : index
    %17 = vector.load %arg9[%c0_18, %c0_19, %c0_20] : memref<2x2x32xf32, #tpu.memory_space<vmem>>, vector<1x2x32xf32>
    %18 = vector.shape_cast %17 : vector<1x2x32xf32> to vector<2x32xf32>
    %c1_21 = arith.constant 1 : index
    %c0_22 = arith.constant 0 : index
    %c0_23 = arith.constant 0 : index
    %19 = vector.load %arg8[%c1_21, %c0_22, %c0_23] : memref<2x2x32xf32, #tpu.memory_space<vmem>>, vector<1x2x32xf32>
    %20 = vector.shape_cast %19 : vector<1x2x32xf32> to vector<2x32xf32>
    %c1_24 = arith.constant 1 : index
    %c0_25 = arith.constant 0 : index
    %c0_26 = arith.constant 0 : index
    %21 = vector.load %arg9[%c1_24, %c0_25, %c0_26] : memref<2x2x32xf32, #tpu.memory_space<vmem>>, vector<1x2x32xf32>
    %22 = vector.shape_cast %21 : vector<1x2x32xf32> to vector<2x32xf32>
    %c0_i32_27 = arith.constant 0 : i32
    %c0_28 = arith.constant 0 : index
    %23 = arith.index_cast %c0_i32_27 : i32 to index
    %c0_29 = arith.constant 0 : index
    %c0_30 = arith.constant 0 : index
    %24 = vector.load %arg1[%c0_28, %23, %c0_29, %c0_30] : memref<1x8x2x128xbf16, #tpu.memory_space<vmem>>, vector<1x1x2x128xbf16>
    %25 = vector.shape_cast %24 : vector<1x1x2x128xbf16> to vector<2x128xbf16>
    %26 = arith.extf %25 : vector<2x128xbf16> to vector<2x128xf32>
    %27 = vector.broadcast %8 : vector<1x128xf32> to vector<2x128xf32>
    %28 = arith.addf %26, %27 : vector<2x128xf32>
    %29 = arith.truncf %16 : vector<2x32xf32> to vector<2x32xbf16>
    %cst = arith.constant dense<0.000000e+00> : vector<2x128xf32>
    %30 = tpu.matmul %29, %4, %cst {dimension_numbers = #tpu.dot_dimension_numbers<[1], [0], [0], [1], [0, 0, 1, 1], [], []>} : vector<2x32xbf16>, vector<32x128xbf16>, vector<2x128xf32> -> vector<2x128xf32>
    %31 = arith.addf %28, %30 : vector<2x128xf32>
    %32 = vector.extract_strided_slice %31 {offsets = [0, 0], sizes = [2, 96], strides = [1, 1]} : vector<2x128xf32> to vector<2x96xf32>
    %33 = arith.negf %32 : vector<2x96xf32>
    %34 = math.exp %33 : vector<2x96xf32>
    %cst_31 = arith.constant 1.000000e+00 : f32
    %35 = vector.broadcast %cst_31 : f32 to vector<2x96xf32>
    %36 = arith.addf %35, %34 : vector<2x96xf32>
    %37 = arith.divf %35, %36 : vector<2x96xf32>
    %38 = vector.extract_strided_slice %31 {offsets = [0, 96], sizes = [2, 32], strides = [1, 1]} : vector<2x128xf32> to vector<2x32xf32>
    %39 = math.tanh %38 : vector<2x32xf32>
    %40 = vector.extract_strided_slice %37 {offsets = [0, 32], sizes = [2, 32], strides = [1, 1]} : vector<2x96xf32> to vector<2x32xf32>
    %41 = arith.mulf %40, %18 : vector<2x32xf32>
    %42 = vector.extract_strided_slice %37 {offsets = [0, 0], sizes = [2, 32], strides = [1, 1]} : vector<2x96xf32> to vector<2x32xf32>
    %43 = arith.mulf %42, %39 : vector<2x32xf32>
    %44 = arith.addf %41, %43 : vector<2x32xf32>
    %45 = vector.extract_strided_slice %37 {offsets = [0, 64], sizes = [2, 32], strides = [1, 1]} : vector<2x96xf32> to vector<2x32xf32>
    %46 = math.tanh %44 : vector<2x32xf32>
    %47 = arith.mulf %45, %46 : vector<2x32xf32>
    %48 = arith.addi %12, %c0_i32_27 : i32
    %49 = vector.broadcast %48 : i32 to vector<2x1xi32>
    %50 = arith.cmpi slt, %49, %11 : vector<2x1xi32>
    %cst_32 = arith.constant 0.000000e+00 : f32
    %51 = vector.shape_cast %50 : vector<2x1xi1> to vector<2x1xi1>
    %52 = vector.broadcast %51 : vector<2x1xi1> to vector<2x32xi1>
    %53 = vector.broadcast %cst_32 : f32 to vector<2x32xf32>
    %54 = arith.select %52, %47, %53 : vector<2x32xi1>, vector<2x32xf32>
    %55 = arith.index_cast %c0_i32_27 : i32 to index
    %c0_33 = arith.constant 0 : index
    %c0_34 = arith.constant 0 : index
    %56 = vector.load %arg6[%55, %c0_33, %c0_34] : memref<8x2x32xf32, #tpu.memory_space<vmem>>, vector<1x2x32xf32>
    %57 = vector.shape_cast %56 : vector<1x2x32xf32> to vector<2x32xf32>
    %58 = vector.shape_cast %54 : vector<2x32xf32> to vector<1x2x32xf32>
    tpu.vector_store %arg6[%55, %c0_33, %c0_34], %58 {strides = array<i32>} : memref<8x2x32xf32, #tpu.memory_space<vmem>>, vector<1x2x32xf32>,
    %59 = vector.shape_cast %50 : vector<2x1xi1> to vector<2x1xi1>
    %60 = vector.broadcast %59 : vector<2x1xi1> to vector<2x32xi1>
    %61 = arith.select %60, %47, %16 : vector<2x32xi1>, vector<2x32xf32>
    %62 = vector.shape_cast %50 : vector<2x1xi1> to vector<2x1xi1>
    %63 = vector.broadcast %62 : vector<2x1xi1> to vector<2x32xi1>
    %64 = arith.select %63, %44, %18 : vector<2x32xi1>, vector<2x32xf32>
    %c7_i32 = arith.constant 7 : i32
    %65 = arith.subi %c7_i32, %c0_i32_27 : i32
    %c0_35 = arith.constant 0 : index
    %66 = arith.index_cast %65 : i32 to index
    %c0_36 = arith.constant 0 : index
    %c0_37 = arith.constant 0 : index
    %67 = vector.load %arg2[%c0_35, %66, %c0_36, %c0_37] : memref<1x8x2x128xbf16, #tpu.memory_space<vmem>>, vector<1x1x2x128xbf16>
    %68 = vector.shape_cast %67 : vector<1x1x2x128xbf16> to vector<2x128xbf16>
    %69 = arith.extf %68 : vector<2x128xbf16> to vector<2x128xf32>
    %70 = vector.broadcast %10 : vector<1x128xf32> to vector<2x128xf32>
    %71 = arith.addf %69, %70 : vector<2x128xf32>
    %72 = arith.truncf %20 : vector<2x32xf32> to vector<2x32xbf16>
    %cst_38 = arith.constant dense<0.000000e+00> : vector<2x128xf32>
    %73 = tpu.matmul %72, %6, %cst_38 {dimension_numbers = #tpu.dot_dimension_numbers<[1], [0], [0], [1], [0, 0, 1, 1], [], []>} : vector<2x32xbf16>, vector<32x128xbf16>, vector<2x128xf32> -> vector<2x128xf32>
    %74 = arith.addf %71, %73 : vector<2x128xf32>
    %75 = vector.extract_strided_slice %74 {offsets = [0, 0], sizes = [2, 96], strides = [1, 1]} : vector<2x128xf32> to vector<2x96xf32>
    %76 = arith.negf %75 : vector<2x96xf32>
    %77 = math.exp %76 : vector<2x96xf32>
    %cst_39 = arith.constant 1.000000e+00 : f32
    %78 = vector.broadcast %cst_39 : f32 to vector<2x96xf32>
    %79 = arith.addf %78, %77 : vector<2x96xf32>
    %80 = arith.divf %78, %79 : vector<2x96xf32>
    %81 = vector.extract_strided_slice %74 {offsets = [0, 96], sizes = [2, 32], strides = [1, 1]} : vector<2x128xf32> to vector<2x32xf32>
    %82 = math.tanh %81 : vector<2x32xf32>
    %83 = vector.extract_strided_slice %80 {offsets = [0, 32], sizes = [2, 32], strides = [1, 1]} : vector<2x96xf32> to vector<2x32xf32>
    %84 = arith.mulf %83, %22 : vector<2x32xf32>
    %85 = vector.extract_strided_slice %80 {offsets = [0, 0], sizes = [2, 32], strides = [1, 1]} : vector<2x96xf32> to vector<2x32xf32>
    %86 = arith.mulf %85, %82 : vector<2x32xf32>
    %87 = arith.addf %84, %86 : vector<2x32xf32>
    %88 = vector.extract_strided_slice %80 {offsets = [0, 64], sizes = [2, 32], strides = [1, 1]} : vector<2x96xf32> to vector<2x32xf32>
    %89 = math.tanh %87 : vector<2x32xf32>
    %90 = arith.mulf %88, %89 : vector<2x32xf32>
    %91 = arith.addi %14, %65 : i32
    %92 = vector.broadcast %91 : i32 to vector<2x1xi32>
    %93 = arith.cmpi slt, %92, %11 : vector<2x1xi32>
    %cst_40 = arith.constant 0.000000e+00 : f32
    %94 = vector.shape_cast %93 : vector<2x1xi1> to vector<2x1xi1>
    %95 = vector.broadcast %94 : vector<2x1xi1> to vector<2x32xi1>
    %96 = vector.broadcast %cst_40 : f32 to vector<2x32xf32>
    %97 = arith.select %95, %90, %96 : vector<2x32xi1>, vector<2x32xf32>
    %98 = arith.index_cast %65 : i32 to index
    %c0_41 = arith.constant 0 : index
    %c0_42 = arith.constant 0 : index
    %99 = vector.load %arg7[%98, %c0_41, %c0_42] : memref<8x2x32xf32, #tpu.memory_space<vmem>>, vector<1x2x32xf32>
    %100 = vector.shape_cast %99 : vector<1x2x32xf32> to vector<2x32xf32>
    %101 = vector.shape_cast %97 : vector<2x32xf32> to vector<1x2x32xf32>
    tpu.vector_store %arg7[%98, %c0_41, %c0_42], %101 {strides = array<i32>} : memref<8x2x32xf32, #tpu.memory_space<vmem>>, vector<1x2x32xf32>,
    %102 = vector.shape_cast %93 : vector<2x1xi1> to vector<2x1xi1>
    %103 = vector.broadcast %102 : vector<2x1xi1> to vector<2x32xi1>
    %104 = arith.select %103, %90, %20 : vector<2x32xi1>, vector<2x32xf32>
    %105 = vector.shape_cast %93 : vector<2x1xi1> to vector<2x1xi1>
    %106 = vector.broadcast %105 : vector<2x1xi1> to vector<2x32xi1>
    %107 = arith.select %106, %87, %22 : vector<2x32xi1>, vector<2x32xf32>
    %c1_i32 = arith.constant 1 : i32
    %c0_43 = arith.constant 0 : index
    %108 = arith.index_cast %c1_i32 : i32 to index
    %c0_44 = arith.constant 0 : index
    %c0_45 = arith.constant 0 : index
    %109 = vector.load %arg1[%c0_43, %108, %c0_44, %c0_45] : memref<1x8x2x128xbf16, #tpu.memory_space<vmem>>, vector<1x1x2x128xbf16>
    %110 = vector.shape_cast %109 : vector<1x1x2x128xbf16> to vector<2x128xbf16>
    %111 = arith.extf %110 : vector<2x128xbf16> to vector<2x128xf32>
    %112 = vector.broadcast %8 : vector<1x128xf32> to vector<2x128xf32>
    %113 = arith.addf %111, %112 : vector<2x128xf32>
    %114 = arith.truncf %61 : vector<2x32xf32> to vector<2x32xbf16>
    %cst_46 = arith.constant dense<0.000000e+00> : vector<2x128xf32>
    %115 = tpu.matmul %114, %4, %cst_46 {dimension_numbers = #tpu.dot_dimension_numbers<[1], [0], [0], [1], [0, 0, 1, 1], [], []>} : vector<2x32xbf16>, vector<32x128xbf16>, vector<2x128xf32> -> vector<2x128xf32>
    %116 = arith.addf %113, %115 : vector<2x128xf32>
    %117 = vector.extract_strided_slice %116 {offsets = [0, 0], sizes = [2, 96], strides = [1, 1]} : vector<2x128xf32> to vector<2x96xf32>
    %118 = arith.negf %117 : vector<2x96xf32>
    %119 = math.exp %118 : vector<2x96xf32>
    %cst_47 = arith.constant 1.000000e+00 : f32
    %120 = vector.broadcast %cst_47 : f32 to vector<2x96xf32>
    %121 = arith.addf %120, %119 : vector<2x96xf32>
    %122 = arith.divf %120, %121 : vector<2x96xf32>
    %123 = vector.extract_strided_slice %116 {offsets = [0, 96], sizes = [2, 32], strides = [1, 1]} : vector<2x128xf32> to vector<2x32xf32>
    %124 = math.tanh %123 : vector<2x32xf32>
    %125 = vector.extract_strided_slice %122 {offsets = [0, 32], sizes = [2, 32], strides = [1, 1]} : vector<2x96xf32> to vector<2x32xf32>
    %126 = arith.mulf %125, %64 : vector<2x32xf32>
    %127 = vector.extract_strided_slice %122 {offsets = [0, 0], sizes = [2, 32], strides = [1, 1]} : vector<2x96xf32> to vector<2x32xf32>
    %128 = arith.mulf %127, %124 : vector<2x32xf32>
    %129 = arith.addf %126, %128 : vector<2x32xf32>
    %130 = vector.extract_strided_slice %122 {offsets = [0, 64], sizes = [2, 32], strides = [1, 1]} : vector<2x96xf32> to vector<2x32xf32>
    %131 = math.tanh %129 : vector<2x32xf32>
    %132 = arith.mulf %130, %131 : vector<2x32xf32>
    %133 = arith.addi %12, %c1_i32 : i32
    %134 = vector.broadcast %133 : i32 to vector<2x1xi32>
    %135 = arith.cmpi slt, %134, %11 : vector<2x1xi32>
    %cst_48 = arith.constant 0.000000e+00 : f32
    %136 = vector.shape_cast %135 : vector<2x1xi1> to vector<2x1xi1>
    %137 = vector.broadcast %136 : vector<2x1xi1> to vector<2x32xi1>
    %138 = vector.broadcast %cst_48 : f32 to vector<2x32xf32>
    %139 = arith.select %137, %132, %138 : vector<2x32xi1>, vector<2x32xf32>
    %140 = arith.index_cast %c1_i32 : i32 to index
    %c0_49 = arith.constant 0 : index
    %c0_50 = arith.constant 0 : index
    %141 = vector.load %arg6[%140, %c0_49, %c0_50] : memref<8x2x32xf32, #tpu.memory_space<vmem>>, vector<1x2x32xf32>
    %142 = vector.shape_cast %141 : vector<1x2x32xf32> to vector<2x32xf32>
    %143 = vector.shape_cast %139 : vector<2x32xf32> to vector<1x2x32xf32>
    tpu.vector_store %arg6[%140, %c0_49, %c0_50], %143 {strides = array<i32>} : memref<8x2x32xf32, #tpu.memory_space<vmem>>, vector<1x2x32xf32>,
    %144 = vector.shape_cast %135 : vector<2x1xi1> to vector<2x1xi1>
    %145 = vector.broadcast %144 : vector<2x1xi1> to vector<2x32xi1>
    %146 = arith.select %145, %132, %61 : vector<2x32xi1>, vector<2x32xf32>
    %147 = vector.shape_cast %135 : vector<2x1xi1> to vector<2x1xi1>
    %148 = vector.broadcast %147 : vector<2x1xi1> to vector<2x32xi1>
    %149 = arith.select %148, %129, %64 : vector<2x32xi1>, vector<2x32xf32>
    %c7_i32_51 = arith.constant 7 : i32
    %150 = arith.subi %c7_i32_51, %c1_i32 : i32
    %c0_52 = arith.constant 0 : index
    %151 = arith.index_cast %150 : i32 to index
    %c0_53 = arith.constant 0 : index
    %c0_54 = arith.constant 0 : index
    %152 = vector.load %arg2[%c0_52, %151, %c0_53, %c0_54] : memref<1x8x2x128xbf16, #tpu.memory_space<vmem>>, vector<1x1x2x128xbf16>
    %153 = vector.shape_cast %152 : vector<1x1x2x128xbf16> to vector<2x128xbf16>
    %154 = arith.extf %153 : vector<2x128xbf16> to vector<2x128xf32>
    %155 = vector.broadcast %10 : vector<1x128xf32> to vector<2x128xf32>
    %156 = arith.addf %154, %155 : vector<2x128xf32>
    %157 = arith.truncf %104 : vector<2x32xf32> to vector<2x32xbf16>
    %cst_55 = arith.constant dense<0.000000e+00> : vector<2x128xf32>
    %158 = tpu.matmul %157, %6, %cst_55 {dimension_numbers = #tpu.dot_dimension_numbers<[1], [0], [0], [1], [0, 0, 1, 1], [], []>} : vector<2x32xbf16>, vector<32x128xbf16>, vector<2x128xf32> -> vector<2x128xf32>
    %159 = arith.addf %156, %158 : vector<2x128xf32>
    %160 = vector.extract_strided_slice %159 {offsets = [0, 0], sizes = [2, 96], strides = [1, 1]} : vector<2x128xf32> to vector<2x96xf32>
    %161 = arith.negf %160 : vector<2x96xf32>
    %162 = math.exp %161 : vector<2x96xf32>
    %cst_56 = arith.constant 1.000000e+00 : f32
    %163 = vector.broadcast %cst_56 : f32 to vector<2x96xf32>
    %164 = arith.addf %163, %162 : vector<2x96xf32>
    %165 = arith.divf %163, %164 : vector<2x96xf32>
    %166 = vector.extract_strided_slice %159 {offsets = [0, 96], sizes = [2, 32], strides = [1, 1]} : vector<2x128xf32> to vector<2x32xf32>
    %167 = math.tanh %166 : vector<2x32xf32>
    %168 = vector.extract_strided_slice %165 {offsets = [0, 32], sizes = [2, 32], strides = [1, 1]} : vector<2x96xf32> to vector<2x32xf32>
    %169 = arith.mulf %168, %107 : vector<2x32xf32>
    %170 = vector.extract_strided_slice %165 {offsets = [0, 0], sizes = [2, 32], strides = [1, 1]} : vector<2x96xf32> to vector<2x32xf32>
    %171 = arith.mulf %170, %167 : vector<2x32xf32>
    %172 = arith.addf %169, %171 : vector<2x32xf32>
    %173 = vector.extract_strided_slice %165 {offsets = [0, 64], sizes = [2, 32], strides = [1, 1]} : vector<2x96xf32> to vector<2x32xf32>
    %174 = math.tanh %172 : vector<2x32xf32>
    %175 = arith.mulf %173, %174 : vector<2x32xf32>
    %176 = arith.addi %14, %150 : i32
    %177 = vector.broadcast %176 : i32 to vector<2x1xi32>
    %178 = arith.cmpi slt, %177, %11 : vector<2x1xi32>
    %cst_57 = arith.constant 0.000000e+00 : f32
    %179 = vector.shape_cast %178 : vector<2x1xi1> to vector<2x1xi1>
    %180 = vector.broadcast %179 : vector<2x1xi1> to vector<2x32xi1>
    %181 = vector.broadcast %cst_57 : f32 to vector<2x32xf32>
    %182 = arith.select %180, %175, %181 : vector<2x32xi1>, vector<2x32xf32>
    %183 = arith.index_cast %150 : i32 to index
    %c0_58 = arith.constant 0 : index
    %c0_59 = arith.constant 0 : index
    %184 = vector.load %arg7[%183, %c0_58, %c0_59] : memref<8x2x32xf32, #tpu.memory_space<vmem>>, vector<1x2x32xf32>
    %185 = vector.shape_cast %184 : vector<1x2x32xf32> to vector<2x32xf32>
    %186 = vector.shape_cast %182 : vector<2x32xf32> to vector<1x2x32xf32>
    tpu.vector_store %arg7[%183, %c0_58, %c0_59], %186 {strides = array<i32>} : memref<8x2x32xf32, #tpu.memory_space<vmem>>, vector<1x2x32xf32>,
    %187 = vector.shape_cast %178 : vector<2x1xi1> to vector<2x1xi1>
    %188 = vector.broadcast %187 : vector<2x1xi1> to vector<2x32xi1>
    %189 = arith.select %188, %175, %104 : vector<2x32xi1>, vector<2x32xf32>
    %190 = vector.shape_cast %178 : vector<2x1xi1> to vector<2x1xi1>
    %191 = vector.broadcast %190 : vector<2x1xi1> to vector<2x32xi1>
    %192 = arith.select %191, %172, %107 : vector<2x32xi1>, vector<2x32xf32>
    %c2_i32 = arith.constant 2 : i32
    %c0_60 = arith.constant 0 : index
    %193 = arith.index_cast %c2_i32 : i32 to index
    %c0_61 = arith.constant 0 : index
    %c0_62 = arith.constant 0 : index
    %194 = vector.load %arg1[%c0_60, %193, %c0_61, %c0_62] : memref<1x8x2x128xbf16, #tpu.memory_space<vmem>>, vector<1x1x2x128xbf16>
    %195 = vector.shape_cast %194 : vector<1x1x2x128xbf16> to vector<2x128xbf16>
    %196 = arith.extf %195 : vector<2x128xbf16> to vector<2x128xf32>
    %197 = vector.broadcast %8 : vector<1x128xf32> to vector<2x128xf32>
    %198 = arith.addf %196, %197 : vector<2x128xf32>
    %199 = arith.truncf %146 : vector<2x32xf32> to vector<2x32xbf16>
    %cst_63 = arith.constant dense<0.000000e+00> : vector<2x128xf32>
    %200 = tpu.matmul %199, %4, %cst_63 {dimension_numbers = #tpu.dot_dimension_numbers<[1], [0], [0], [1], [0, 0, 1, 1], [], []>} : vector<2x32xbf16>, vector<32x128xbf16>, vector<2x128xf32> -> vector<2x128xf32>
    %201 = arith.addf %198, %200 : vector<2x128xf32>
    %202 = vector.extract_strided_slice %201 {offsets = [0, 0], sizes = [2, 96], strides = [1, 1]} : vector<2x128xf32> to vector<2x96xf32>
    %203 = arith.negf %202 : vector<2x96xf32>
    %204 = math.exp %203 : vector<2x96xf32>
    %cst_64 = arith.constant 1.000000e+00 : f32
    %205 = vector.broadcast %cst_64 : f32 to vector<2x96xf32>
    %206 = arith.addf %205, %204 : vector<2x96xf32>
    %207 = arith.divf %205, %206 : vector<2x96xf32>
    %208 = vector.extract_strided_slice %201 {offsets = [0, 96], sizes = [2, 32], strides = [1, 1]} : vector<2x128xf32> to vector<2x32xf32>
    %209 = math.tanh %208 : vector<2x32xf32>
    %210 = vector.extract_strided_slice %207 {offsets = [0, 32], sizes = [2, 32], strides = [1, 1]} : vector<2x96xf32> to vector<2x32xf32>
    %211 = arith.mulf %210, %149 : vector<2x32xf32>
    %212 = vector.extract_strided_slice %207 {offsets = [0, 0], sizes = [2, 32], strides = [1, 1]} : vector<2x96xf32> to vector<2x32xf32>
    %213 = arith.mulf %212, %209 : vector<2x32xf32>
    %214 = arith.addf %211, %213 : vector<2x32xf32>
    %215 = vector.extract_strided_slice %207 {offsets = [0, 64], sizes = [2, 32], strides = [1, 1]} : vector<2x96xf32> to vector<2x32xf32>
    %216 = math.tanh %214 : vector<2x32xf32>
    %217 = arith.mulf %215, %216 : vector<2x32xf32>
    %218 = arith.addi %12, %c2_i32 : i32
    %219 = vector.broadcast %218 : i32 to vector<2x1xi32>
    %220 = arith.cmpi slt, %219, %11 : vector<2x1xi32>
    %cst_65 = arith.constant 0.000000e+00 : f32
    %221 = vector.shape_cast %220 : vector<2x1xi1> to vector<2x1xi1>
    %222 = vector.broadcast %221 : vector<2x1xi1> to vector<2x32xi1>
    %223 = vector.broadcast %cst_65 : f32 to vector<2x32xf32>
    %224 = arith.select %222, %217, %223 : vector<2x32xi1>, vector<2x32xf32>
    %225 = arith.index_cast %c2_i32 : i32 to index
    %c0_66 = arith.constant 0 : index
    %c0_67 = arith.constant 0 : index
    %226 = vector.load %arg6[%225, %c0_66, %c0_67] : memref<8x2x32xf32, #tpu.memory_space<vmem>>, vector<1x2x32xf32>
    %227 = vector.shape_cast %226 : vector<1x2x32xf32> to vector<2x32xf32>
    %228 = vector.shape_cast %224 : vector<2x32xf32> to vector<1x2x32xf32>
    tpu.vector_store %arg6[%225, %c0_66, %c0_67], %228 {strides = array<i32>} : memref<8x2x32xf32, #tpu.memory_space<vmem>>, vector<1x2x32xf32>,
    %229 = vector.shape_cast %220 : vector<2x1xi1> to vector<2x1xi1>
    %230 = vector.broadcast %229 : vector<2x1xi1> to vector<2x32xi1>
    %231 = arith.select %230, %217, %146 : vector<2x32xi1>, vector<2x32xf32>
    %232 = vector.shape_cast %220 : vector<2x1xi1> to vector<2x1xi1>
    %233 = vector.broadcast %232 : vector<2x1xi1> to vector<2x32xi1>
    %234 = arith.select %233, %214, %149 : vector<2x32xi1>, vector<2x32xf32>
    %c7_i32_68 = arith.constant 7 : i32
    %235 = arith.subi %c7_i32_68, %c2_i32 : i32
    %c0_69 = arith.constant 0 : index
    %236 = arith.index_cast %235 : i32 to index
    %c0_70 = arith.constant 0 : index
    %c0_71 = arith.constant 0 : index
    %237 = vector.load %arg2[%c0_69, %236, %c0_70, %c0_71] : memref<1x8x2x128xbf16, #tpu.memory_space<vmem>>, vector<1x1x2x128xbf16>
    %238 = vector.shape_cast %237 : vector<1x1x2x128xbf16> to vector<2x128xbf16>
    %239 = arith.extf %238 : vector<2x128xbf16> to vector<2x128xf32>
    %240 = vector.broadcast %10 : vector<1x128xf32> to vector<2x128xf32>
    %241 = arith.addf %239, %240 : vector<2x128xf32>
    %242 = arith.truncf %189 : vector<2x32xf32> to vector<2x32xbf16>
    %cst_72 = arith.constant dense<0.000000e+00> : vector<2x128xf32>
    %243 = tpu.matmul %242, %6, %cst_72 {dimension_numbers = #tpu.dot_dimension_numbers<[1], [0], [0], [1], [0, 0, 1, 1], [], []>} : vector<2x32xbf16>, vector<32x128xbf16>, vector<2x128xf32> -> vector<2x128xf32>
    %244 = arith.addf %241, %243 : vector<2x128xf32>
    %245 = vector.extract_strided_slice %244 {offsets = [0, 0], sizes = [2, 96], strides = [1, 1]} : vector<2x128xf32> to vector<2x96xf32>
    %246 = arith.negf %245 : vector<2x96xf32>
    %247 = math.exp %246 : vector<2x96xf32>
    %cst_73 = arith.constant 1.000000e+00 : f32
    %248 = vector.broadcast %cst_73 : f32 to vector<2x96xf32>
    %249 = arith.addf %248, %247 : vector<2x96xf32>
    %250 = arith.divf %248, %249 : vector<2x96xf32>
    %251 = vector.extract_strided_slice %244 {offsets = [0, 96], sizes = [2, 32], strides = [1, 1]} : vector<2x128xf32> to vector<2x32xf32>
    %252 = math.tanh %251 : vector<2x32xf32>
    %253 = vector.extract_strided_slice %250 {offsets = [0, 32], sizes = [2, 32], strides = [1, 1]} : vector<2x96xf32> to vector<2x32xf32>
    %254 = arith.mulf %253, %192 : vector<2x32xf32>
    %255 = vector.extract_strided_slice %250 {offsets = [0, 0], sizes = [2, 32], strides = [1, 1]} : vector<2x96xf32> to vector<2x32xf32>
    %256 = arith.mulf %255, %252 : vector<2x32xf32>
    %257 = arith.addf %254, %256 : vector<2x32xf32>
    %258 = vector.extract_strided_slice %250 {offsets = [0, 64], sizes = [2, 32], strides = [1, 1]} : vector<2x96xf32> to vector<2x32xf32>
    %259 = math.tanh %257 : vector<2x32xf32>
    %260 = arith.mulf %258, %259 : vector<2x32xf32>
    %261 = arith.addi %14, %235 : i32
    %262 = vector.broadcast %261 : i32 to vector<2x1xi32>
    %263 = arith.cmpi slt, %262, %11 : vector<2x1xi32>
    %cst_74 = arith.constant 0.000000e+00 : f32
    %264 = vector.shape_cast %263 : vector<2x1xi1> to vector<2x1xi1>
    %265 = vector.broadcast %264 : vector<2x1xi1> to vector<2x32xi1>
    %266 = vector.broadcast %cst_74 : f32 to vector<2x32xf32>
    %267 = arith.select %265, %260, %266 : vector<2x32xi1>, vector<2x32xf32>
    %268 = arith.index_cast %235 : i32 to index
    %c0_75 = arith.constant 0 : index
    %c0_76 = arith.constant 0 : index
    %269 = vector.load %arg7[%268, %c0_75, %c0_76] : memref<8x2x32xf32, #tpu.memory_space<vmem>>, vector<1x2x32xf32>
    %270 = vector.shape_cast %269 : vector<1x2x32xf32> to vector<2x32xf32>
    %271 = vector.shape_cast %267 : vector<2x32xf32> to vector<1x2x32xf32>
    tpu.vector_store %arg7[%268, %c0_75, %c0_76], %271 {strides = array<i32>} : memref<8x2x32xf32, #tpu.memory_space<vmem>>, vector<1x2x32xf32>,
    %272 = vector.shape_cast %263 : vector<2x1xi1> to vector<2x1xi1>
    %273 = vector.broadcast %272 : vector<2x1xi1> to vector<2x32xi1>
    %274 = arith.select %273, %260, %189 : vector<2x32xi1>, vector<2x32xf32>
    %275 = vector.shape_cast %263 : vector<2x1xi1> to vector<2x1xi1>
    %276 = vector.broadcast %275 : vector<2x1xi1> to vector<2x32xi1>
    %277 = arith.select %276, %257, %192 : vector<2x32xi1>, vector<2x32xf32>
    %c3_i32 = arith.constant 3 : i32
    %c0_77 = arith.constant 0 : index
    %278 = arith.index_cast %c3_i32 : i32 to index
    %c0_78 = arith.constant 0 : index
    %c0_79 = arith.constant 0 : index
    %279 = vector.load %arg1[%c0_77, %278, %c0_78, %c0_79] : memref<1x8x2x128xbf16, #tpu.memory_space<vmem>>, vector<1x1x2x128xbf16>
    %280 = vector.shape_cast %279 : vector<1x1x2x128xbf16> to vector<2x128xbf16>
    %281 = arith.extf %280 : vector<2x128xbf16> to vector<2x128xf32>
    %282 = vector.broadcast %8 : vector<1x128xf32> to vector<2x128xf32>
    %283 = arith.addf %281, %282 : vector<2x128xf32>
    %284 = arith.truncf %231 : vector<2x32xf32> to vector<2x32xbf16>
    %cst_80 = arith.constant dense<0.000000e+00> : vector<2x128xf32>
    %285 = tpu.matmul %284, %4, %cst_80 {dimension_numbers = #tpu.dot_dimension_numbers<[1], [0], [0], [1], [0, 0, 1, 1], [], []>} : vector<2x32xbf16>, vector<32x128xbf16>, vector<2x128xf32> -> vector<2x128xf32>
    %286 = arith.addf %283, %285 : vector<2x128xf32>
    %287 = vector.extract_strided_slice %286 {offsets = [0, 0], sizes = [2, 96], strides = [1, 1]} : vector<2x128xf32> to vector<2x96xf32>
    %288 = arith.negf %287 : vector<2x96xf32>
    %289 = math.exp %288 : vector<2x96xf32>
    %cst_81 = arith.constant 1.000000e+00 : f32
    %290 = vector.broadcast %cst_81 : f32 to vector<2x96xf32>
    %291 = arith.addf %290, %289 : vector<2x96xf32>
    %292 = arith.divf %290, %291 : vector<2x96xf32>
    %293 = vector.extract_strided_slice %286 {offsets = [0, 96], sizes = [2, 32], strides = [1, 1]} : vector<2x128xf32> to vector<2x32xf32>
    %294 = math.tanh %293 : vector<2x32xf32>
    %295 = vector.extract_strided_slice %292 {offsets = [0, 32], sizes = [2, 32], strides = [1, 1]} : vector<2x96xf32> to vector<2x32xf32>
    %296 = arith.mulf %295, %234 : vector<2x32xf32>
    %297 = vector.extract_strided_slice %292 {offsets = [0, 0], sizes = [2, 32], strides = [1, 1]} : vector<2x96xf32> to vector<2x32xf32>
    %298 = arith.mulf %297, %294 : vector<2x32xf32>
    %299 = arith.addf %296, %298 : vector<2x32xf32>
    %300 = vector.extract_strided_slice %292 {offsets = [0, 64], sizes = [2, 32], strides = [1, 1]} : vector<2x96xf32> to vector<2x32xf32>
    %301 = math.tanh %299 : vector<2x32xf32>
    %302 = arith.mulf %300, %301 : vector<2x32xf32>
    %303 = arith.addi %12, %c3_i32 : i32
    %304 = vector.broadcast %303 : i32 to vector<2x1xi32>
    %305 = arith.cmpi slt, %304, %11 : vector<2x1xi32>
    %cst_82 = arith.constant 0.000000e+00 : f32
    %306 = vector.shape_cast %305 : vector<2x1xi1> to vector<2x1xi1>
    %307 = vector.broadcast %306 : vector<2x1xi1> to vector<2x32xi1>
    %308 = vector.broadcast %cst_82 : f32 to vector<2x32xf32>
    %309 = arith.select %307, %302, %308 : vector<2x32xi1>, vector<2x32xf32>
    %310 = arith.index_cast %c3_i32 : i32 to index
    %c0_83 = arith.constant 0 : index
    %c0_84 = arith.constant 0 : index
    %311 = vector.load %arg6[%310, %c0_83, %c0_84] : memref<8x2x32xf32, #tpu.memory_space<vmem>>, vector<1x2x32xf32>
    %312 = vector.shape_cast %311 : vector<1x2x32xf32> to vector<2x32xf32>
    %313 = vector.shape_cast %309 : vector<2x32xf32> to vector<1x2x32xf32>
    tpu.vector_store %arg6[%310, %c0_83, %c0_84], %313 {strides = array<i32>} : memref<8x2x32xf32, #tpu.memory_space<vmem>>, vector<1x2x32xf32>,
    %314 = vector.shape_cast %305 : vector<2x1xi1> to vector<2x1xi1>
    %315 = vector.broadcast %314 : vector<2x1xi1> to vector<2x32xi1>
    %316 = arith.select %315, %302, %231 : vector<2x32xi1>, vector<2x32xf32>
    %317 = vector.shape_cast %305 : vector<2x1xi1> to vector<2x1xi1>
    %318 = vector.broadcast %317 : vector<2x1xi1> to vector<2x32xi1>
    %319 = arith.select %318, %299, %234 : vector<2x32xi1>, vector<2x32xf32>
    %c7_i32_85 = arith.constant 7 : i32
    %320 = arith.subi %c7_i32_85, %c3_i32 : i32
    %c0_86 = arith.constant 0 : index
    %321 = arith.index_cast %320 : i32 to index
    %c0_87 = arith.constant 0 : index
    %c0_88 = arith.constant 0 : index
    %322 = vector.load %arg2[%c0_86, %321, %c0_87, %c0_88] : memref<1x8x2x128xbf16, #tpu.memory_space<vmem>>, vector<1x1x2x128xbf16>
    %323 = vector.shape_cast %322 : vector<1x1x2x128xbf16> to vector<2x128xbf16>
    %324 = arith.extf %323 : vector<2x128xbf16> to vector<2x128xf32>
    %325 = vector.broadcast %10 : vector<1x128xf32> to vector<2x128xf32>
    %326 = arith.addf %324, %325 : vector<2x128xf32>
    %327 = arith.truncf %274 : vector<2x32xf32> to vector<2x32xbf16>
    %cst_89 = arith.constant dense<0.000000e+00> : vector<2x128xf32>
    %328 = tpu.matmul %327, %6, %cst_89 {dimension_numbers = #tpu.dot_dimension_numbers<[1], [0], [0], [1], [0, 0, 1, 1], [], []>} : vector<2x32xbf16>, vector<32x128xbf16>, vector<2x128xf32> -> vector<2x128xf32>
    %329 = arith.addf %326, %328 : vector<2x128xf32>
    %330 = vector.extract_strided_slice %329 {offsets = [0, 0], sizes = [2, 96], strides = [1, 1]} : vector<2x128xf32> to vector<2x96xf32>
    %331 = arith.negf %330 : vector<2x96xf32>
    %332 = math.exp %331 : vector<2x96xf32>
    %cst_90 = arith.constant 1.000000e+00 : f32
    %333 = vector.broadcast %cst_90 : f32 to vector<2x96xf32>
    %334 = arith.addf %333, %332 : vector<2x96xf32>
    %335 = arith.divf %333, %334 : vector<2x96xf32>
    %336 = vector.extract_strided_slice %329 {offsets = [0, 96], sizes = [2, 32], strides = [1, 1]} : vector<2x128xf32> to vector<2x32xf32>
    %337 = math.tanh %336 : vector<2x32xf32>
    %338 = vector.extract_strided_slice %335 {offsets = [0, 32], sizes = [2, 32], strides = [1, 1]} : vector<2x96xf32> to vector<2x32xf32>
    %339 = arith.mulf %338, %277 : vector<2x32xf32>
    %340 = vector.extract_strided_slice %335 {offsets = [0, 0], sizes = [2, 32], strides = [1, 1]} : vector<2x96xf32> to vector<2x32xf32>
    %341 = arith.mulf %340, %337 : vector<2x32xf32>
    %342 = arith.addf %339, %341 : vector<2x32xf32>
    %343 = vector.extract_strided_slice %335 {offsets = [0, 64], sizes = [2, 32], strides = [1, 1]} : vector<2x96xf32> to vector<2x32xf32>
    %344 = math.tanh %342 : vector<2x32xf32>
    %345 = arith.mulf %343, %344 : vector<2x32xf32>
    %346 = arith.addi %14, %320 : i32
    %347 = vector.broadcast %346 : i32 to vector<2x1xi32>
    %348 = arith.cmpi slt, %347, %11 : vector<2x1xi32>
    %cst_91 = arith.constant 0.000000e+00 : f32
    %349 = vector.shape_cast %348 : vector<2x1xi1> to vector<2x1xi1>
    %350 = vector.broadcast %349 : vector<2x1xi1> to vector<2x32xi1>
    %351 = vector.broadcast %cst_91 : f32 to vector<2x32xf32>
    %352 = arith.select %350, %345, %351 : vector<2x32xi1>, vector<2x32xf32>
    %353 = arith.index_cast %320 : i32 to index
    %c0_92 = arith.constant 0 : index
    %c0_93 = arith.constant 0 : index
    %354 = vector.load %arg7[%353, %c0_92, %c0_93] : memref<8x2x32xf32, #tpu.memory_space<vmem>>, vector<1x2x32xf32>
    %355 = vector.shape_cast %354 : vector<1x2x32xf32> to vector<2x32xf32>
    %356 = vector.shape_cast %352 : vector<2x32xf32> to vector<1x2x32xf32>
    tpu.vector_store %arg7[%353, %c0_92, %c0_93], %356 {strides = array<i32>} : memref<8x2x32xf32, #tpu.memory_space<vmem>>, vector<1x2x32xf32>,
    %357 = vector.shape_cast %348 : vector<2x1xi1> to vector<2x1xi1>
    %358 = vector.broadcast %357 : vector<2x1xi1> to vector<2x32xi1>
    %359 = arith.select %358, %345, %274 : vector<2x32xi1>, vector<2x32xf32>
    %360 = vector.shape_cast %348 : vector<2x1xi1> to vector<2x1xi1>
    %361 = vector.broadcast %360 : vector<2x1xi1> to vector<2x32xi1>
    %362 = arith.select %361, %342, %277 : vector<2x32xi1>, vector<2x32xf32>
    %c4_i32 = arith.constant 4 : i32
    %c0_94 = arith.constant 0 : index
    %363 = arith.index_cast %c4_i32 : i32 to index
    %c0_95 = arith.constant 0 : index
    %c0_96 = arith.constant 0 : index
    %364 = vector.load %arg1[%c0_94, %363, %c0_95, %c0_96] : memref<1x8x2x128xbf16, #tpu.memory_space<vmem>>, vector<1x1x2x128xbf16>
    %365 = vector.shape_cast %364 : vector<1x1x2x128xbf16> to vector<2x128xbf16>
    %366 = arith.extf %365 : vector<2x128xbf16> to vector<2x128xf32>
    %367 = vector.broadcast %8 : vector<1x128xf32> to vector<2x128xf32>
    %368 = arith.addf %366, %367 : vector<2x128xf32>
    %369 = arith.truncf %316 : vector<2x32xf32> to vector<2x32xbf16>
    %cst_97 = arith.constant dense<0.000000e+00> : vector<2x128xf32>
    %370 = tpu.matmul %369, %4, %cst_97 {dimension_numbers = #tpu.dot_dimension_numbers<[1], [0], [0], [1], [0, 0, 1, 1], [], []>} : vector<2x32xbf16>, vector<32x128xbf16>, vector<2x128xf32> -> vector<2x128xf32>
    %371 = arith.addf %368, %370 : vector<2x128xf32>
    %372 = vector.extract_strided_slice %371 {offsets = [0, 0], sizes = [2, 96], strides = [1, 1]} : vector<2x128xf32> to vector<2x96xf32>
    %373 = arith.negf %372 : vector<2x96xf32>
    %374 = math.exp %373 : vector<2x96xf32>
    %cst_98 = arith.constant 1.000000e+00 : f32
    %375 = vector.broadcast %cst_98 : f32 to vector<2x96xf32>
    %376 = arith.addf %375, %374 : vector<2x96xf32>
    %377 = arith.divf %375, %376 : vector<2x96xf32>
    %378 = vector.extract_strided_slice %371 {offsets = [0, 96], sizes = [2, 32], strides = [1, 1]} : vector<2x128xf32> to vector<2x32xf32>
    %379 = math.tanh %378 : vector<2x32xf32>
    %380 = vector.extract_strided_slice %377 {offsets = [0, 32], sizes = [2, 32], strides = [1, 1]} : vector<2x96xf32> to vector<2x32xf32>
    %381 = arith.mulf %380, %319 : vector<2x32xf32>
    %382 = vector.extract_strided_slice %377 {offsets = [0, 0], sizes = [2, 32], strides = [1, 1]} : vector<2x96xf32> to vector<2x32xf32>
    %383 = arith.mulf %382, %379 : vector<2x32xf32>
    %384 = arith.addf %381, %383 : vector<2x32xf32>
    %385 = vector.extract_strided_slice %377 {offsets = [0, 64], sizes = [2, 32], strides = [1, 1]} : vector<2x96xf32> to vector<2x32xf32>
    %386 = math.tanh %384 : vector<2x32xf32>
    %387 = arith.mulf %385, %386 : vector<2x32xf32>
    %388 = arith.addi %12, %c4_i32 : i32
    %389 = vector.broadcast %388 : i32 to vector<2x1xi32>
    %390 = arith.cmpi slt, %389, %11 : vector<2x1xi32>
    %cst_99 = arith.constant 0.000000e+00 : f32
    %391 = vector.shape_cast %390 : vector<2x1xi1> to vector<2x1xi1>
    %392 = vector.broadcast %391 : vector<2x1xi1> to vector<2x32xi1>
    %393 = vector.broadcast %cst_99 : f32 to vector<2x32xf32>
    %394 = arith.select %392, %387, %393 : vector<2x32xi1>, vector<2x32xf32>
    %395 = arith.index_cast %c4_i32 : i32 to index
    %c0_100 = arith.constant 0 : index
    %c0_101 = arith.constant 0 : index
    %396 = vector.load %arg6[%395, %c0_100, %c0_101] : memref<8x2x32xf32, #tpu.memory_space<vmem>>, vector<1x2x32xf32>
    %397 = vector.shape_cast %396 : vector<1x2x32xf32> to vector<2x32xf32>
    %398 = vector.shape_cast %394 : vector<2x32xf32> to vector<1x2x32xf32>
    tpu.vector_store %arg6[%395, %c0_100, %c0_101], %398 {strides = array<i32>} : memref<8x2x32xf32, #tpu.memory_space<vmem>>, vector<1x2x32xf32>,
    %399 = vector.shape_cast %390 : vector<2x1xi1> to vector<2x1xi1>
    %400 = vector.broadcast %399 : vector<2x1xi1> to vector<2x32xi1>
    %401 = arith.select %400, %387, %316 : vector<2x32xi1>, vector<2x32xf32>
    %402 = vector.shape_cast %390 : vector<2x1xi1> to vector<2x1xi1>
    %403 = vector.broadcast %402 : vector<2x1xi1> to vector<2x32xi1>
    %404 = arith.select %403, %384, %319 : vector<2x32xi1>, vector<2x32xf32>
    %c7_i32_102 = arith.constant 7 : i32
    %405 = arith.subi %c7_i32_102, %c4_i32 : i32
    %c0_103 = arith.constant 0 : index
    %406 = arith.index_cast %405 : i32 to index
    %c0_104 = arith.constant 0 : index
    %c0_105 = arith.constant 0 : index
    %407 = vector.load %arg2[%c0_103, %406, %c0_104, %c0_105] : memref<1x8x2x128xbf16, #tpu.memory_space<vmem>>, vector<1x1x2x128xbf16>
    %408 = vector.shape_cast %407 : vector<1x1x2x128xbf16> to vector<2x128xbf16>
    %409 = arith.extf %408 : vector<2x128xbf16> to vector<2x128xf32>
    %410 = vector.broadcast %10 : vector<1x128xf32> to vector<2x128xf32>
    %411 = arith.addf %409, %410 : vector<2x128xf32>
    %412 = arith.truncf %359 : vector<2x32xf32> to vector<2x32xbf16>
    %cst_106 = arith.constant dense<0.000000e+00> : vector<2x128xf32>
    %413 = tpu.matmul %412, %6, %cst_106 {dimension_numbers = #tpu.dot_dimension_numbers<[1], [0], [0], [1], [0, 0, 1, 1], [], []>} : vector<2x32xbf16>, vector<32x128xbf16>, vector<2x128xf32> -> vector<2x128xf32>
    %414 = arith.addf %411, %413 : vector<2x128xf32>
    %415 = vector.extract_strided_slice %414 {offsets = [0, 0], sizes = [2, 96], strides = [1, 1]} : vector<2x128xf32> to vector<2x96xf32>
    %416 = arith.negf %415 : vector<2x96xf32>
    %417 = math.exp %416 : vector<2x96xf32>
    %cst_107 = arith.constant 1.000000e+00 : f32
    %418 = vector.broadcast %cst_107 : f32 to vector<2x96xf32>
    %419 = arith.addf %418, %417 : vector<2x96xf32>
    %420 = arith.divf %418, %419 : vector<2x96xf32>
    %421 = vector.extract_strided_slice %414 {offsets = [0, 96], sizes = [2, 32], strides = [1, 1]} : vector<2x128xf32> to vector<2x32xf32>
    %422 = math.tanh %421 : vector<2x32xf32>
    %423 = vector.extract_strided_slice %420 {offsets = [0, 32], sizes = [2, 32], strides = [1, 1]} : vector<2x96xf32> to vector<2x32xf32>
    %424 = arith.mulf %423, %362 : vector<2x32xf32>
    %425 = vector.extract_strided_slice %420 {offsets = [0, 0], sizes = [2, 32], strides = [1, 1]} : vector<2x96xf32> to vector<2x32xf32>
    %426 = arith.mulf %425, %422 : vector<2x32xf32>
    %427 = arith.addf %424, %426 : vector<2x32xf32>
    %428 = vector.extract_strided_slice %420 {offsets = [0, 64], sizes = [2, 32], strides = [1, 1]} : vector<2x96xf32> to vector<2x32xf32>
    %429 = math.tanh %427 : vector<2x32xf32>
    %430 = arith.mulf %428, %429 : vector<2x32xf32>
    %431 = arith.addi %14, %405 : i32
    %432 = vector.broadcast %431 : i32 to vector<2x1xi32>
    %433 = arith.cmpi slt, %432, %11 : vector<2x1xi32>
    %cst_108 = arith.constant 0.000000e+00 : f32
    %434 = vector.shape_cast %433 : vector<2x1xi1> to vector<2x1xi1>
    %435 = vector.broadcast %434 : vector<2x1xi1> to vector<2x32xi1>
    %436 = vector.broadcast %cst_108 : f32 to vector<2x32xf32>
    %437 = arith.select %435, %430, %436 : vector<2x32xi1>, vector<2x32xf32>
    %438 = arith.index_cast %405 : i32 to index
    %c0_109 = arith.constant 0 : index
    %c0_110 = arith.constant 0 : index
    %439 = vector.load %arg7[%438, %c0_109, %c0_110] : memref<8x2x32xf32, #tpu.memory_space<vmem>>, vector<1x2x32xf32>
    %440 = vector.shape_cast %439 : vector<1x2x32xf32> to vector<2x32xf32>
    %441 = vector.shape_cast %437 : vector<2x32xf32> to vector<1x2x32xf32>
    tpu.vector_store %arg7[%438, %c0_109, %c0_110], %441 {strides = array<i32>} : memref<8x2x32xf32, #tpu.memory_space<vmem>>, vector<1x2x32xf32>,
    %442 = vector.shape_cast %433 : vector<2x1xi1> to vector<2x1xi1>
    %443 = vector.broadcast %442 : vector<2x1xi1> to vector<2x32xi1>
    %444 = arith.select %443, %430, %359 : vector<2x32xi1>, vector<2x32xf32>
    %445 = vector.shape_cast %433 : vector<2x1xi1> to vector<2x1xi1>
    %446 = vector.broadcast %445 : vector<2x1xi1> to vector<2x32xi1>
    %447 = arith.select %446, %427, %362 : vector<2x32xi1>, vector<2x32xf32>
    %c5_i32 = arith.constant 5 : i32
    %c0_111 = arith.constant 0 : index
    %448 = arith.index_cast %c5_i32 : i32 to index
    %c0_112 = arith.constant 0 : index
    %c0_113 = arith.constant 0 : index
    %449 = vector.load %arg1[%c0_111, %448, %c0_112, %c0_113] : memref<1x8x2x128xbf16, #tpu.memory_space<vmem>>, vector<1x1x2x128xbf16>
    %450 = vector.shape_cast %449 : vector<1x1x2x128xbf16> to vector<2x128xbf16>
    %451 = arith.extf %450 : vector<2x128xbf16> to vector<2x128xf32>
    %452 = vector.broadcast %8 : vector<1x128xf32> to vector<2x128xf32>
    %453 = arith.addf %451, %452 : vector<2x128xf32>
    %454 = arith.truncf %401 : vector<2x32xf32> to vector<2x32xbf16>
    %cst_114 = arith.constant dense<0.000000e+00> : vector<2x128xf32>
    %455 = tpu.matmul %454, %4, %cst_114 {dimension_numbers = #tpu.dot_dimension_numbers<[1], [0], [0], [1], [0, 0, 1, 1], [], []>} : vector<2x32xbf16>, vector<32x128xbf16>, vector<2x128xf32> -> vector<2x128xf32>
    %456 = arith.addf %453, %455 : vector<2x128xf32>
    %457 = vector.extract_strided_slice %456 {offsets = [0, 0], sizes = [2, 96], strides = [1, 1]} : vector<2x128xf32> to vector<2x96xf32>
    %458 = arith.negf %457 : vector<2x96xf32>
    %459 = math.exp %458 : vector<2x96xf32>
    %cst_115 = arith.constant 1.000000e+00 : f32
    %460 = vector.broadcast %cst_115 : f32 to vector<2x96xf32>
    %461 = arith.addf %460, %459 : vector<2x96xf32>
    %462 = arith.divf %460, %461 : vector<2x96xf32>
    %463 = vector.extract_strided_slice %456 {offsets = [0, 96], sizes = [2, 32], strides = [1, 1]} : vector<2x128xf32> to vector<2x32xf32>
    %464 = math.tanh %463 : vector<2x32xf32>
    %465 = vector.extract_strided_slice %462 {offsets = [0, 32], sizes = [2, 32], strides = [1, 1]} : vector<2x96xf32> to vector<2x32xf32>
    %466 = arith.mulf %465, %404 : vector<2x32xf32>
    %467 = vector.extract_strided_slice %462 {offsets = [0, 0], sizes = [2, 32], strides = [1, 1]} : vector<2x96xf32> to vector<2x32xf32>
    %468 = arith.mulf %467, %464 : vector<2x32xf32>
    %469 = arith.addf %466, %468 : vector<2x32xf32>
    %470 = vector.extract_strided_slice %462 {offsets = [0, 64], sizes = [2, 32], strides = [1, 1]} : vector<2x96xf32> to vector<2x32xf32>
    %471 = math.tanh %469 : vector<2x32xf32>
    %472 = arith.mulf %470, %471 : vector<2x32xf32>
    %473 = arith.addi %12, %c5_i32 : i32
    %474 = vector.broadcast %473 : i32 to vector<2x1xi32>
    %475 = arith.cmpi slt, %474, %11 : vector<2x1xi32>
    %cst_116 = arith.constant 0.000000e+00 : f32
    %476 = vector.shape_cast %475 : vector<2x1xi1> to vector<2x1xi1>
    %477 = vector.broadcast %476 : vector<2x1xi1> to vector<2x32xi1>
    %478 = vector.broadcast %cst_116 : f32 to vector<2x32xf32>
    %479 = arith.select %477, %472, %478 : vector<2x32xi1>, vector<2x32xf32>
    %480 = arith.index_cast %c5_i32 : i32 to index
    %c0_117 = arith.constant 0 : index
    %c0_118 = arith.constant 0 : index
    %481 = vector.load %arg6[%480, %c0_117, %c0_118] : memref<8x2x32xf32, #tpu.memory_space<vmem>>, vector<1x2x32xf32>
    %482 = vector.shape_cast %481 : vector<1x2x32xf32> to vector<2x32xf32>
    %483 = vector.shape_cast %479 : vector<2x32xf32> to vector<1x2x32xf32>
    tpu.vector_store %arg6[%480, %c0_117, %c0_118], %483 {strides = array<i32>} : memref<8x2x32xf32, #tpu.memory_space<vmem>>, vector<1x2x32xf32>,
    %484 = vector.shape_cast %475 : vector<2x1xi1> to vector<2x1xi1>
    %485 = vector.broadcast %484 : vector<2x1xi1> to vector<2x32xi1>
    %486 = arith.select %485, %472, %401 : vector<2x32xi1>, vector<2x32xf32>
    %487 = vector.shape_cast %475 : vector<2x1xi1> to vector<2x1xi1>
    %488 = vector.broadcast %487 : vector<2x1xi1> to vector<2x32xi1>
    %489 = arith.select %488, %469, %404 : vector<2x32xi1>, vector<2x32xf32>
    %c7_i32_119 = arith.constant 7 : i32
    %490 = arith.subi %c7_i32_119, %c5_i32 : i32
    %c0_120 = arith.constant 0 : index
    %491 = arith.index_cast %490 : i32 to index
    %c0_121 = arith.constant 0 : index
    %c0_122 = arith.constant 0 : index
    %492 = vector.load %arg2[%c0_120, %491, %c0_121, %c0_122] : memref<1x8x2x128xbf16, #tpu.memory_space<vmem>>, vector<1x1x2x128xbf16>
    %493 = vector.shape_cast %492 : vector<1x1x2x128xbf16> to vector<2x128xbf16>
    %494 = arith.extf %493 : vector<2x128xbf16> to vector<2x128xf32>
    %495 = vector.broadcast %10 : vector<1x128xf32> to vector<2x128xf32>
    %496 = arith.addf %494, %495 : vector<2x128xf32>
    %497 = arith.truncf %444 : vector<2x32xf32> to vector<2x32xbf16>
    %cst_123 = arith.constant dense<0.000000e+00> : vector<2x128xf32>
    %498 = tpu.matmul %497, %6, %cst_123 {dimension_numbers = #tpu.dot_dimension_numbers<[1], [0], [0], [1], [0, 0, 1, 1], [], []>} : vector<2x32xbf16>, vector<32x128xbf16>, vector<2x128xf32> -> vector<2x128xf32>
    %499 = arith.addf %496, %498 : vector<2x128xf32>
    %500 = vector.extract_strided_slice %499 {offsets = [0, 0], sizes = [2, 96], strides = [1, 1]} : vector<2x128xf32> to vector<2x96xf32>
    %501 = arith.negf %500 : vector<2x96xf32>
    %502 = math.exp %501 : vector<2x96xf32>
    %cst_124 = arith.constant 1.000000e+00 : f32
    %503 = vector.broadcast %cst_124 : f32 to vector<2x96xf32>
    %504 = arith.addf %503, %502 : vector<2x96xf32>
    %505 = arith.divf %503, %504 : vector<2x96xf32>
    %506 = vector.extract_strided_slice %499 {offsets = [0, 96], sizes = [2, 32], strides = [1, 1]} : vector<2x128xf32> to vector<2x32xf32>
    %507 = math.tanh %506 : vector<2x32xf32>
    %508 = vector.extract_strided_slice %505 {offsets = [0, 32], sizes = [2, 32], strides = [1, 1]} : vector<2x96xf32> to vector<2x32xf32>
    %509 = arith.mulf %508, %447 : vector<2x32xf32>
    %510 = vector.extract_strided_slice %505 {offsets = [0, 0], sizes = [2, 32], strides = [1, 1]} : vector<2x96xf32> to vector<2x32xf32>
    %511 = arith.mulf %510, %507 : vector<2x32xf32>
    %512 = arith.addf %509, %511 : vector<2x32xf32>
    %513 = vector.extract_strided_slice %505 {offsets = [0, 64], sizes = [2, 32], strides = [1, 1]} : vector<2x96xf32> to vector<2x32xf32>
    %514 = math.tanh %512 : vector<2x32xf32>
    %515 = arith.mulf %513, %514 : vector<2x32xf32>
    %516 = arith.addi %14, %490 : i32
    %517 = vector.broadcast %516 : i32 to vector<2x1xi32>
    %518 = arith.cmpi slt, %517, %11 : vector<2x1xi32>
    %cst_125 = arith.constant 0.000000e+00 : f32
    %519 = vector.shape_cast %518 : vector<2x1xi1> to vector<2x1xi1>
    %520 = vector.broadcast %519 : vector<2x1xi1> to vector<2x32xi1>
    %521 = vector.broadcast %cst_125 : f32 to vector<2x32xf32>
    %522 = arith.select %520, %515, %521 : vector<2x32xi1>, vector<2x32xf32>
    %523 = arith.index_cast %490 : i32 to index
    %c0_126 = arith.constant 0 : index
    %c0_127 = arith.constant 0 : index
    %524 = vector.load %arg7[%523, %c0_126, %c0_127] : memref<8x2x32xf32, #tpu.memory_space<vmem>>, vector<1x2x32xf32>
    %525 = vector.shape_cast %524 : vector<1x2x32xf32> to vector<2x32xf32>
    %526 = vector.shape_cast %522 : vector<2x32xf32> to vector<1x2x32xf32>
    tpu.vector_store %arg7[%523, %c0_126, %c0_127], %526 {strides = array<i32>} : memref<8x2x32xf32, #tpu.memory_space<vmem>>, vector<1x2x32xf32>,
    %527 = vector.shape_cast %518 : vector<2x1xi1> to vector<2x1xi1>
    %528 = vector.broadcast %527 : vector<2x1xi1> to vector<2x32xi1>
    %529 = arith.select %528, %515, %444 : vector<2x32xi1>, vector<2x32xf32>
    %530 = vector.shape_cast %518 : vector<2x1xi1> to vector<2x1xi1>
    %531 = vector.broadcast %530 : vector<2x1xi1> to vector<2x32xi1>
    %532 = arith.select %531, %512, %447 : vector<2x32xi1>, vector<2x32xf32>
    %c6_i32 = arith.constant 6 : i32
    %c0_128 = arith.constant 0 : index
    %533 = arith.index_cast %c6_i32 : i32 to index
    %c0_129 = arith.constant 0 : index
    %c0_130 = arith.constant 0 : index
    %534 = vector.load %arg1[%c0_128, %533, %c0_129, %c0_130] : memref<1x8x2x128xbf16, #tpu.memory_space<vmem>>, vector<1x1x2x128xbf16>
    %535 = vector.shape_cast %534 : vector<1x1x2x128xbf16> to vector<2x128xbf16>
    %536 = arith.extf %535 : vector<2x128xbf16> to vector<2x128xf32>
    %537 = vector.broadcast %8 : vector<1x128xf32> to vector<2x128xf32>
    %538 = arith.addf %536, %537 : vector<2x128xf32>
    %539 = arith.truncf %486 : vector<2x32xf32> to vector<2x32xbf16>
    %cst_131 = arith.constant dense<0.000000e+00> : vector<2x128xf32>
    %540 = tpu.matmul %539, %4, %cst_131 {dimension_numbers = #tpu.dot_dimension_numbers<[1], [0], [0], [1], [0, 0, 1, 1], [], []>} : vector<2x32xbf16>, vector<32x128xbf16>, vector<2x128xf32> -> vector<2x128xf32>
    %541 = arith.addf %538, %540 : vector<2x128xf32>
    %542 = vector.extract_strided_slice %541 {offsets = [0, 0], sizes = [2, 96], strides = [1, 1]} : vector<2x128xf32> to vector<2x96xf32>
    %543 = arith.negf %542 : vector<2x96xf32>
    %544 = math.exp %543 : vector<2x96xf32>
    %cst_132 = arith.constant 1.000000e+00 : f32
    %545 = vector.broadcast %cst_132 : f32 to vector<2x96xf32>
    %546 = arith.addf %545, %544 : vector<2x96xf32>
    %547 = arith.divf %545, %546 : vector<2x96xf32>
    %548 = vector.extract_strided_slice %541 {offsets = [0, 96], sizes = [2, 32], strides = [1, 1]} : vector<2x128xf32> to vector<2x32xf32>
    %549 = math.tanh %548 : vector<2x32xf32>
    %550 = vector.extract_strided_slice %547 {offsets = [0, 32], sizes = [2, 32], strides = [1, 1]} : vector<2x96xf32> to vector<2x32xf32>
    %551 = arith.mulf %550, %489 : vector<2x32xf32>
    %552 = vector.extract_strided_slice %547 {offsets = [0, 0], sizes = [2, 32], strides = [1, 1]} : vector<2x96xf32> to vector<2x32xf32>
    %553 = arith.mulf %552, %549 : vector<2x32xf32>
    %554 = arith.addf %551, %553 : vector<2x32xf32>
    %555 = vector.extract_strided_slice %547 {offsets = [0, 64], sizes = [2, 32], strides = [1, 1]} : vector<2x96xf32> to vector<2x32xf32>
    %556 = math.tanh %554 : vector<2x32xf32>
    %557 = arith.mulf %555, %556 : vector<2x32xf32>
    %558 = arith.addi %12, %c6_i32 : i32
    %559 = vector.broadcast %558 : i32 to vector<2x1xi32>
    %560 = arith.cmpi slt, %559, %11 : vector<2x1xi32>
    %cst_133 = arith.constant 0.000000e+00 : f32
    %561 = vector.shape_cast %560 : vector<2x1xi1> to vector<2x1xi1>
    %562 = vector.broadcast %561 : vector<2x1xi1> to vector<2x32xi1>
    %563 = vector.broadcast %cst_133 : f32 to vector<2x32xf32>
    %564 = arith.select %562, %557, %563 : vector<2x32xi1>, vector<2x32xf32>
    %565 = arith.index_cast %c6_i32 : i32 to index
    %c0_134 = arith.constant 0 : index
    %c0_135 = arith.constant 0 : index
    %566 = vector.load %arg6[%565, %c0_134, %c0_135] : memref<8x2x32xf32, #tpu.memory_space<vmem>>, vector<1x2x32xf32>
    %567 = vector.shape_cast %566 : vector<1x2x32xf32> to vector<2x32xf32>
    %568 = vector.shape_cast %564 : vector<2x32xf32> to vector<1x2x32xf32>
    tpu.vector_store %arg6[%565, %c0_134, %c0_135], %568 {strides = array<i32>} : memref<8x2x32xf32, #tpu.memory_space<vmem>>, vector<1x2x32xf32>,
    %569 = vector.shape_cast %560 : vector<2x1xi1> to vector<2x1xi1>
    %570 = vector.broadcast %569 : vector<2x1xi1> to vector<2x32xi1>
    %571 = arith.select %570, %557, %486 : vector<2x32xi1>, vector<2x32xf32>
    %572 = vector.shape_cast %560 : vector<2x1xi1> to vector<2x1xi1>
    %573 = vector.broadcast %572 : vector<2x1xi1> to vector<2x32xi1>
    %574 = arith.select %573, %554, %489 : vector<2x32xi1>, vector<2x32xf32>
    %c7_i32_136 = arith.constant 7 : i32
    %575 = arith.subi %c7_i32_136, %c6_i32 : i32
    %c0_137 = arith.constant 0 : index
    %576 = arith.index_cast %575 : i32 to index
    %c0_138 = arith.constant 0 : index
    %c0_139 = arith.constant 0 : index
    %577 = vector.load %arg2[%c0_137, %576, %c0_138, %c0_139] : memref<1x8x2x128xbf16, #tpu.memory_space<vmem>>, vector<1x1x2x128xbf16>
    %578 = vector.shape_cast %577 : vector<1x1x2x128xbf16> to vector<2x128xbf16>
    %579 = arith.extf %578 : vector<2x128xbf16> to vector<2x128xf32>
    %580 = vector.broadcast %10 : vector<1x128xf32> to vector<2x128xf32>
    %581 = arith.addf %579, %580 : vector<2x128xf32>
    %582 = arith.truncf %529 : vector<2x32xf32> to vector<2x32xbf16>
    %cst_140 = arith.constant dense<0.000000e+00> : vector<2x128xf32>
    %583 = tpu.matmul %582, %6, %cst_140 {dimension_numbers = #tpu.dot_dimension_numbers<[1], [0], [0], [1], [0, 0, 1, 1], [], []>} : vector<2x32xbf16>, vector<32x128xbf16>, vector<2x128xf32> -> vector<2x128xf32>
    %584 = arith.addf %581, %583 : vector<2x128xf32>
    %585 = vector.extract_strided_slice %584 {offsets = [0, 0], sizes = [2, 96], strides = [1, 1]} : vector<2x128xf32> to vector<2x96xf32>
    %586 = arith.negf %585 : vector<2x96xf32>
    %587 = math.exp %586 : vector<2x96xf32>
    %cst_141 = arith.constant 1.000000e+00 : f32
    %588 = vector.broadcast %cst_141 : f32 to vector<2x96xf32>
    %589 = arith.addf %588, %587 : vector<2x96xf32>
    %590 = arith.divf %588, %589 : vector<2x96xf32>
    %591 = vector.extract_strided_slice %584 {offsets = [0, 96], sizes = [2, 32], strides = [1, 1]} : vector<2x128xf32> to vector<2x32xf32>
    %592 = math.tanh %591 : vector<2x32xf32>
    %593 = vector.extract_strided_slice %590 {offsets = [0, 32], sizes = [2, 32], strides = [1, 1]} : vector<2x96xf32> to vector<2x32xf32>
    %594 = arith.mulf %593, %532 : vector<2x32xf32>
    %595 = vector.extract_strided_slice %590 {offsets = [0, 0], sizes = [2, 32], strides = [1, 1]} : vector<2x96xf32> to vector<2x32xf32>
    %596 = arith.mulf %595, %592 : vector<2x32xf32>
    %597 = arith.addf %594, %596 : vector<2x32xf32>
    %598 = vector.extract_strided_slice %590 {offsets = [0, 64], sizes = [2, 32], strides = [1, 1]} : vector<2x96xf32> to vector<2x32xf32>
    %599 = math.tanh %597 : vector<2x32xf32>
    %600 = arith.mulf %598, %599 : vector<2x32xf32>
    %601 = arith.addi %14, %575 : i32
    %602 = vector.broadcast %601 : i32 to vector<2x1xi32>
    %603 = arith.cmpi slt, %602, %11 : vector<2x1xi32>
    %cst_142 = arith.constant 0.000000e+00 : f32
    %604 = vector.shape_cast %603 : vector<2x1xi1> to vector<2x1xi1>
    %605 = vector.broadcast %604 : vector<2x1xi1> to vector<2x32xi1>
    %606 = vector.broadcast %cst_142 : f32 to vector<2x32xf32>
    %607 = arith.select %605, %600, %606 : vector<2x32xi1>, vector<2x32xf32>
    %608 = arith.index_cast %575 : i32 to index
    %c0_143 = arith.constant 0 : index
    %c0_144 = arith.constant 0 : index
    %609 = vector.load %arg7[%608, %c0_143, %c0_144] : memref<8x2x32xf32, #tpu.memory_space<vmem>>, vector<1x2x32xf32>
    %610 = vector.shape_cast %609 : vector<1x2x32xf32> to vector<2x32xf32>
    %611 = vector.shape_cast %607 : vector<2x32xf32> to vector<1x2x32xf32>
    tpu.vector_store %arg7[%608, %c0_143, %c0_144], %611 {strides = array<i32>} : memref<8x2x32xf32, #tpu.memory_space<vmem>>, vector<1x2x32xf32>,
    %612 = vector.shape_cast %603 : vector<2x1xi1> to vector<2x1xi1>
    %613 = vector.broadcast %612 : vector<2x1xi1> to vector<2x32xi1>
    %614 = arith.select %613, %600, %529 : vector<2x32xi1>, vector<2x32xf32>
    %615 = vector.shape_cast %603 : vector<2x1xi1> to vector<2x1xi1>
    %616 = vector.broadcast %615 : vector<2x1xi1> to vector<2x32xi1>
    %617 = arith.select %616, %597, %532 : vector<2x32xi1>, vector<2x32xf32>
    %c7_i32_145 = arith.constant 7 : i32
    %c0_146 = arith.constant 0 : index
    %618 = arith.index_cast %c7_i32_145 : i32 to index
    %c0_147 = arith.constant 0 : index
    %c0_148 = arith.constant 0 : index
    %619 = vector.load %arg1[%c0_146, %618, %c0_147, %c0_148] : memref<1x8x2x128xbf16, #tpu.memory_space<vmem>>, vector<1x1x2x128xbf16>
    %620 = vector.shape_cast %619 : vector<1x1x2x128xbf16> to vector<2x128xbf16>
    %621 = arith.extf %620 : vector<2x128xbf16> to vector<2x128xf32>
    %622 = vector.broadcast %8 : vector<1x128xf32> to vector<2x128xf32>
    %623 = arith.addf %621, %622 : vector<2x128xf32>
    %624 = arith.truncf %571 : vector<2x32xf32> to vector<2x32xbf16>
    %cst_149 = arith.constant dense<0.000000e+00> : vector<2x128xf32>
    %625 = tpu.matmul %624, %4, %cst_149 {dimension_numbers = #tpu.dot_dimension_numbers<[1], [0], [0], [1], [0, 0, 1, 1], [], []>} : vector<2x32xbf16>, vector<32x128xbf16>, vector<2x128xf32> -> vector<2x128xf32>
    %626 = arith.addf %623, %625 : vector<2x128xf32>
    %627 = vector.extract_strided_slice %626 {offsets = [0, 0], sizes = [2, 96], strides = [1, 1]} : vector<2x128xf32> to vector<2x96xf32>
    %628 = arith.negf %627 : vector<2x96xf32>
    %629 = math.exp %628 : vector<2x96xf32>
    %cst_150 = arith.constant 1.000000e+00 : f32
    %630 = vector.broadcast %cst_150 : f32 to vector<2x96xf32>
    %631 = arith.addf %630, %629 : vector<2x96xf32>
    %632 = arith.divf %630, %631 : vector<2x96xf32>
    %633 = vector.extract_strided_slice %626 {offsets = [0, 96], sizes = [2, 32], strides = [1, 1]} : vector<2x128xf32> to vector<2x32xf32>
    %634 = math.tanh %633 : vector<2x32xf32>
    %635 = vector.extract_strided_slice %632 {offsets = [0, 32], sizes = [2, 32], strides = [1, 1]} : vector<2x96xf32> to vector<2x32xf32>
    %636 = arith.mulf %635, %574 : vector<2x32xf32>
    %637 = vector.extract_strided_slice %632 {offsets = [0, 0], sizes = [2, 32], strides = [1, 1]} : vector<2x96xf32> to vector<2x32xf32>
    %638 = arith.mulf %637, %634 : vector<2x32xf32>
    %639 = arith.addf %636, %638 : vector<2x32xf32>
    %640 = vector.extract_strided_slice %632 {offsets = [0, 64], sizes = [2, 32], strides = [1, 1]} : vector<2x96xf32> to vector<2x32xf32>
    %641 = math.tanh %639 : vector<2x32xf32>
    %642 = arith.mulf %640, %641 : vector<2x32xf32>
    %643 = arith.addi %12, %c7_i32_145 : i32
    %644 = vector.broadcast %643 : i32 to vector<2x1xi32>
    %645 = arith.cmpi slt, %644, %11 : vector<2x1xi32>
    %cst_151 = arith.constant 0.000000e+00 : f32
    %646 = vector.shape_cast %645 : vector<2x1xi1> to vector<2x1xi1>
    %647 = vector.broadcast %646 : vector<2x1xi1> to vector<2x32xi1>
    %648 = vector.broadcast %cst_151 : f32 to vector<2x32xf32>
    %649 = arith.select %647, %642, %648 : vector<2x32xi1>, vector<2x32xf32>
    %650 = arith.index_cast %c7_i32_145 : i32 to index
    %c0_152 = arith.constant 0 : index
    %c0_153 = arith.constant 0 : index
    %651 = vector.load %arg6[%650, %c0_152, %c0_153] : memref<8x2x32xf32, #tpu.memory_space<vmem>>, vector<1x2x32xf32>
    %652 = vector.shape_cast %651 : vector<1x2x32xf32> to vector<2x32xf32>
    %653 = vector.shape_cast %649 : vector<2x32xf32> to vector<1x2x32xf32>
    tpu.vector_store %arg6[%650, %c0_152, %c0_153], %653 {strides = array<i32>} : memref<8x2x32xf32, #tpu.memory_space<vmem>>, vector<1x2x32xf32>,
    %654 = vector.shape_cast %645 : vector<2x1xi1> to vector<2x1xi1>
    %655 = vector.broadcast %654 : vector<2x1xi1> to vector<2x32xi1>
    %656 = arith.select %655, %642, %571 : vector<2x32xi1>, vector<2x32xf32>
    %657 = vector.shape_cast %645 : vector<2x1xi1> to vector<2x1xi1>
    %658 = vector.broadcast %657 : vector<2x1xi1> to vector<2x32xi1>
    %659 = arith.select %658, %639, %574 : vector<2x32xi1>, vector<2x32xf32>
    %c7_i32_154 = arith.constant 7 : i32
    %660 = arith.subi %c7_i32_154, %c7_i32_145 : i32
    %c0_155 = arith.constant 0 : index
    %661 = arith.index_cast %660 : i32 to index
    %c0_156 = arith.constant 0 : index
    %c0_157 = arith.constant 0 : index
    %662 = vector.load %arg2[%c0_155, %661, %c0_156, %c0_157] : memref<1x8x2x128xbf16, #tpu.memory_space<vmem>>, vector<1x1x2x128xbf16>
    %663 = vector.shape_cast %662 : vector<1x1x2x128xbf16> to vector<2x128xbf16>
    %664 = arith.extf %663 : vector<2x128xbf16> to vector<2x128xf32>
    %665 = vector.broadcast %10 : vector<1x128xf32> to vector<2x128xf32>
    %666 = arith.addf %664, %665 : vector<2x128xf32>
    %667 = arith.truncf %614 : vector<2x32xf32> to vector<2x32xbf16>
    %cst_158 = arith.constant dense<0.000000e+00> : vector<2x128xf32>
    %668 = tpu.matmul %667, %6, %cst_158 {dimension_numbers = #tpu.dot_dimension_numbers<[1], [0], [0], [1], [0, 0, 1, 1], [], []>} : vector<2x32xbf16>, vector<32x128xbf16>, vector<2x128xf32> -> vector<2x128xf32>
    %669 = arith.addf %666, %668 : vector<2x128xf32>
    %670 = vector.extract_strided_slice %669 {offsets = [0, 0], sizes = [2, 96], strides = [1, 1]} : vector<2x128xf32> to vector<2x96xf32>
    %671 = arith.negf %670 : vector<2x96xf32>
    %672 = math.exp %671 : vector<2x96xf32>
    %cst_159 = arith.constant 1.000000e+00 : f32
    %673 = vector.broadcast %cst_159 : f32 to vector<2x96xf32>
    %674 = arith.addf %673, %672 : vector<2x96xf32>
    %675 = arith.divf %673, %674 : vector<2x96xf32>
    %676 = vector.extract_strided_slice %669 {offsets = [0, 96], sizes = [2, 32], strides = [1, 1]} : vector<2x128xf32> to vector<2x32xf32>
    %677 = math.tanh %676 : vector<2x32xf32>
    %678 = vector.extract_strided_slice %675 {offsets = [0, 32], sizes = [2, 32], strides = [1, 1]} : vector<2x96xf32> to vector<2x32xf32>
    %679 = arith.mulf %678, %617 : vector<2x32xf32>
    %680 = vector.extract_strided_slice %675 {offsets = [0, 0], sizes = [2, 32], strides = [1, 1]} : vector<2x96xf32> to vector<2x32xf32>
    %681 = arith.mulf %680, %677 : vector<2x32xf32>
    %682 = arith.addf %679, %681 : vector<2x32xf32>
    %683 = vector.extract_strided_slice %675 {offsets = [0, 64], sizes = [2, 32], strides = [1, 1]} : vector<2x96xf32> to vector<2x32xf32>
    %684 = math.tanh %682 : vector<2x32xf32>
    %685 = arith.mulf %683, %684 : vector<2x32xf32>
    %686 = arith.addi %14, %660 : i32
    %687 = vector.broadcast %686 : i32 to vector<2x1xi32>
    %688 = arith.cmpi slt, %687, %11 : vector<2x1xi32>
    %cst_160 = arith.constant 0.000000e+00 : f32
    %689 = vector.shape_cast %688 : vector<2x1xi1> to vector<2x1xi1>
    %690 = vector.broadcast %689 : vector<2x1xi1> to vector<2x32xi1>
    %691 = vector.broadcast %cst_160 : f32 to vector<2x32xf32>
    %692 = arith.select %690, %685, %691 : vector<2x32xi1>, vector<2x32xf32>
    %693 = arith.index_cast %660 : i32 to index
    %c0_161 = arith.constant 0 : index
    %c0_162 = arith.constant 0 : index
    %694 = vector.load %arg7[%693, %c0_161, %c0_162] : memref<8x2x32xf32, #tpu.memory_space<vmem>>, vector<1x2x32xf32>
    %695 = vector.shape_cast %694 : vector<1x2x32xf32> to vector<2x32xf32>
    %696 = vector.shape_cast %692 : vector<2x32xf32> to vector<1x2x32xf32>
    tpu.vector_store %arg7[%693, %c0_161, %c0_162], %696 {strides = array<i32>} : memref<8x2x32xf32, #tpu.memory_space<vmem>>, vector<1x2x32xf32>,
    %697 = vector.shape_cast %688 : vector<2x1xi1> to vector<2x1xi1>
    %698 = vector.broadcast %697 : vector<2x1xi1> to vector<2x32xi1>
    %699 = arith.select %698, %685, %614 : vector<2x32xi1>, vector<2x32xf32>
    %700 = vector.shape_cast %688 : vector<2x1xi1> to vector<2x1xi1>
    %701 = vector.broadcast %700 : vector<2x1xi1> to vector<2x32xi1>
    %702 = arith.select %701, %682, %617 : vector<2x32xi1>, vector<2x32xf32>
    %c8_i32_163 = arith.constant 8 : i32
    %c0_164 = arith.constant 0 : index
    %c0_165 = arith.constant 0 : index
    %c0_166 = arith.constant 0 : index
    %703 = vector.load %arg8[%c0_164, %c0_165, %c0_166] : memref<2x2x32xf32, #tpu.memory_space<vmem>>, vector<1x2x32xf32>
    %704 = vector.shape_cast %703 : vector<1x2x32xf32> to vector<2x32xf32>
    %705 = vector.shape_cast %656 : vector<2x32xf32> to vector<1x2x32xf32>
    tpu.vector_store %arg8[%c0_164, %c0_165, %c0_166], %705 {strides = array<i32>} : memref<2x2x32xf32, #tpu.memory_space<vmem>>, vector<1x2x32xf32>,
    %c0_167 = arith.constant 0 : index
    %c0_168 = arith.constant 0 : index
    %c0_169 = arith.constant 0 : index
    %706 = vector.load %arg9[%c0_167, %c0_168, %c0_169] : memref<2x2x32xf32, #tpu.memory_space<vmem>>, vector<1x2x32xf32>
    %707 = vector.shape_cast %706 : vector<1x2x32xf32> to vector<2x32xf32>
    %708 = vector.shape_cast %659 : vector<2x32xf32> to vector<1x2x32xf32>
    tpu.vector_store %arg9[%c0_167, %c0_168, %c0_169], %708 {strides = array<i32>} : memref<2x2x32xf32, #tpu.memory_space<vmem>>, vector<1x2x32xf32>,
    %c1_170 = arith.constant 1 : index
    %c0_171 = arith.constant 0 : index
    %c0_172 = arith.constant 0 : index
    %709 = vector.load %arg8[%c1_170, %c0_171, %c0_172] : memref<2x2x32xf32, #tpu.memory_space<vmem>>, vector<1x2x32xf32>
    %710 = vector.shape_cast %709 : vector<1x2x32xf32> to vector<2x32xf32>
    %711 = vector.shape_cast %699 : vector<2x32xf32> to vector<1x2x32xf32>
    tpu.vector_store %arg8[%c1_170, %c0_171, %c0_172], %711 {strides = array<i32>} : memref<2x2x32xf32, #tpu.memory_space<vmem>>, vector<1x2x32xf32>,
    %c1_173 = arith.constant 1 : index
    %c0_174 = arith.constant 0 : index
    %c0_175 = arith.constant 0 : index
    %712 = vector.load %arg9[%c1_173, %c0_174, %c0_175] : memref<2x2x32xf32, #tpu.memory_space<vmem>>, vector<1x2x32xf32>
    %713 = vector.shape_cast %712 : vector<1x2x32xf32> to vector<2x32xf32>
    %714 = vector.shape_cast %702 : vector<2x32xf32> to vector<1x2x32xf32>
    tpu.vector_store %arg9[%c1_173, %c0_174, %c0_175], %714 {strides = array<i32>} : memref<2x2x32xf32, #tpu.memory_space<vmem>>, vector<1x2x32xf32>,
    return
  }
  func.func @transform_0(%arg0: i32) -> (i32, i32, i32, i32) {
    %c0_i32 = arith.constant 0 : i32
    %c0_i32_0 = arith.constant 0 : i32
    %c0_i32_1 = arith.constant 0 : i32
    %c0_i32_2 = arith.constant 0 : i32
    return %c0_i32, %arg0, %c0_i32_0, %c0_i32_1 : i32, i32, i32, i32
  }
  func.func @transform_1(%arg0: i32) -> (i32, i32, i32, i32) {
    %c0_i32 = arith.constant 0 : i32
    %0 = arith.subi %c0_i32, %arg0 : i32
    %c1_i32 = arith.constant 1 : i32
    %c0_i32_0 = arith.constant 0 : i32
    %c0_i32_1 = arith.constant 0 : i32
    %c0_i32_2 = arith.constant 0 : i32
    return %c1_i32, %0, %c0_i32_0, %c0_i32_1 : i32, i32, i32, i32
  }
  func.func @transform_2(%arg0: i32) -> (i32, i32, i32) {
    %c0_i32 = arith.constant 0 : i32
    %c0_i32_0 = arith.constant 0 : i32
    %c0_i32_1 = arith.constant 0 : i32
    %c0_i32_2 = arith.constant 0 : i32
    return %c0_i32, %c0_i32_0, %c0_i32_1 : i32, i32, i32
  }
  func.func @transform_3(%arg0: i32) -> (i32, i32, i32) {
    %c0_i32 = arith.constant 0 : i32
    %c0_i32_0 = arith.constant 0 : i32
    %c0_i32_1 = arith.constant 0 : i32
    %c0_i32_2 = arith.constant 0 : i32
    return %c0_i32, %c0_i32_0, %c0_i32_1 : i32, i32, i32
  }
  func.func @transform_4(%arg0: i32) -> (i32, i32) {
    %c0_i32 = arith.constant 0 : i32
    %c0_i32_0 = arith.constant 0 : i32
    %c0_i32_1 = arith.constant 0 : i32
    return %c0_i32, %c0_i32_0 : i32, i32
  }
  func.func @transform_5(%arg0: i32) -> (i32, i32, i32) {
    %c0_i32 = arith.constant 0 : i32
    %c0_i32_0 = arith.constant 0 : i32
    %c0_i32_1 = arith.constant 0 : i32
    return %arg0, %c0_i32, %c0_i32_0 : i32, i32, i32
  }
  func.func @transform_6(%arg0: i32) -> (i32, i32, i32) {
    %c0_i32 = arith.constant 0 : i32
    %0 = arith.subi %c0_i32, %arg0 : i32
    %c0_i32_0 = arith.constant 0 : i32
    %c0_i32_1 = arith.constant 0 : i32
    %c0_i32_2 = arith.constant 0 : i32
    return %0, %c0_i32_0, %c0_i32_1 : i32, i32, i32
  }
  func.func @transform_7(%arg0: i32) -> (i32, i32, i32) {
    %c0_i32 = arith.constant 0 : i32
    %c0_i32_0 = arith.constant 0 : i32
    %c0_i32_1 = arith.constant 0 : i32
    %c0_i32_2 = arith.constant 0 : i32
    return %c0_i32, %c0_i32_0, %c0_i32_1 : i32, i32, i32
  }
  func.func @transform_8(%arg0: i32) -> (i32, i32, i32) {
    %c0_i32 = arith.constant 0 : i32
    %c0_i32_0 = arith.constant 0 : i32
    %c0_i32_1 = arith.constant 0 : i32
    %c0_i32_2 = arith.constant 0 : i32
    return %c0_i32, %c0_i32_0, %c0_i32_1 : i32, i32, i32
  }
}

module attributes {stable_mosaic.version = 11 : i64} {
  func.func @_bilstm_fused_kernel(%arg0: i32, %arg1: memref<1x8x2x128xbf16, #tpu.memory_space<vmem>>, %arg2: memref<1x8x2x128xbf16, #tpu.memory_space<vmem>>, %arg3: memref<2x32x128xbf16, #tpu.memory_space<vmem>>, %arg4: memref<2x1x128xf32, #tpu.memory_space<vmem>>, %arg5: memref<2x1xi32, #tpu.memory_space<vmem>>, %arg6: memref<8x2x32xf32, #tpu.memory_space<vmem>>, %arg7: memref<8x2x32xf32, #tpu.memory_space<vmem>>, %arg8: memref<2x2x32xf32, #tpu.memory_space<vmem>>, %arg9: memref<2x2x32xf32, #tpu.memory_space<vmem>>) attributes {dimension_semantics = [#tpu.dimension_semantics<arbitrary>], iteration_bounds = array<i64: 1>, scalar_prefetch = 0 : i64, scratch_operands = 0 : i64, tpu.core_type = #tpu.core_type<tc>, window_params = [{transform_indices = @transform_0, window_bounds = array<i64: 1, 8, 2, 128>}, {transform_indices = @transform_1, window_bounds = array<i64: 1, 8, 2, 128>}, {pipeline_mode = #tpu.pipeline_mode<synchronous>, transform_indices = @transform_2, window_bounds = array<i64: 2, 32, 128>}, {pipeline_mode = #tpu.pipeline_mode<synchronous>, transform_indices = @transform_3, window_bounds = array<i64: 2, 1, 128>}, {pipeline_mode = #tpu.pipeline_mode<synchronous>, transform_indices = @transform_4, window_bounds = array<i64: 2, 1>}, {transform_indices = @transform_5, window_bounds = array<i64: 8, 2, 32>}, {transform_indices = @transform_6, window_bounds = array<i64: 8, 2, 32>}, {pipeline_mode = #tpu.pipeline_mode<synchronous>, transform_indices = @transform_7, window_bounds = array<i64: 2, 2, 32>}, {pipeline_mode = #tpu.pipeline_mode<synchronous>, transform_indices = @transform_8, window_bounds = array<i64: 2, 2, 32>}]} {
    %c0_i32 = arith.constant 0 : i32
    %0 = arith.cmpi eq, %arg0, %c0_i32 : i32
    %1 = arith.extui %0 : i1 to i32
    %c0_i32_0 = arith.constant 0 : i32
    %2 = arith.cmpi ne, %1, %c0_i32_0 : i32
    scf.if %2 {
      %cst_176 = arith.constant 0.000000e+00 : f32
      %715 = vector.broadcast %cst_176 : f32 to vector<2x2x32xf32>
      %c0_177 = arith.constant 0 : index
      %c0_178 = arith.constant 0 : index
      %c0_179 = arith.constant 0 : index
      %716 = vector.load %arg8[%c0_177, %c0_178, %c0_179] : memref<2x2x32xf32, #tpu.memory_space<vmem>>, vector<2x2x32xf32>
      tpu.vector_store %arg8[%c0_177, %c0_178, %c0_179], %715 {strides = array<i32>} : memref<2x2x32xf32, #tpu.memory_space<vmem>>, vector<2x2x32xf32>,
      %cst_180 = arith.constant 0.000000e+00 : f32
      %717 = vector.broadcast %cst_180 : f32 to vector<2x2x32xf32>
      %c0_181 = arith.constant 0 : index
      %c0_182 = arith.constant 0 : index
      %c0_183 = arith.constant 0 : index
      %718 = vector.load %arg9[%c0_181, %c0_182, %c0_183] : memref<2x2x32xf32, #tpu.memory_space<vmem>>, vector<2x2x32xf32>
      tpu.vector_store %arg9[%c0_181, %c0_182, %c0_183], %717 {strides = array<i32>} : memref<2x2x32xf32, #tpu.memory_space<vmem>>, vector<2x2x32xf32>,
    } else {
    }
    %c0 = arith.constant 0 : index
    %c0_1 = arith.constant 0 : index
    %c0_2 = arith.constant 0 : index
    %3 = vector.load %arg3[%c0, %c0_1, %c0_2] : memref<2x32x128xbf16, #tpu.memory_space<vmem>>, vector<1x32x128xbf16>
    %4 = vector.shape_cast %3 : vector<1x32x128xbf16> to vector<32x128xbf16>
    %c1 = arith.constant 1 : index
    %c0_3 = arith.constant 0 : index
    %c0_4 = arith.constant 0 : index
    %5 = vector.load %arg3[%c1, %c0_3, %c0_4] : memref<2x32x128xbf16, #tpu.memory_space<vmem>>, vector<1x32x128xbf16>
    %6 = vector.shape_cast %5 : vector<1x32x128xbf16> to vector<32x128xbf16>
    %c0_5 = arith.constant 0 : index
    %c0_6 = arith.constant 0 : index
    %c0_7 = arith.constant 0 : index
    %7 = vector.load %arg4[%c0_5, %c0_6, %c0_7] : memref<2x1x128xf32, #tpu.memory_space<vmem>>, vector<1x1x128xf32>
    %8 = vector.shape_cast %7 : vector<1x1x128xf32> to vector<1x128xf32>
    %c1_8 = arith.constant 1 : index
    %c0_9 = arith.constant 0 : index
    %c0_10 = arith.constant 0 : index
    %9 = vector.load %arg4[%c1_8, %c0_9, %c0_10] : memref<2x1x128xf32, #tpu.memory_space<vmem>>, vector<1x1x128xf32>
    %10 = vector.shape_cast %9 : vector<1x1x128xf32> to vector<1x128xf32>
    %c0_11 = arith.constant 0 : index
    %c0_12 = arith.constant 0 : index
    %11 = vector.load %arg5[%c0_11, %c0_12] : memref<2x1xi32, #tpu.memory_space<vmem>>, vector<2x1xi32>
    %c8_i32 = arith.constant 8 : i32
    %12 = arith.muli %arg0, %c8_i32 : i32
    %c0_i32_13 = arith.constant 0 : i32
    %13 = arith.subi %c0_i32_13, %arg0 : i32
    %c8_i32_14 = arith.constant 8 : i32
    %14 = arith.muli %13, %c8_i32_14 : i32
    %c0_15 = arith.constant 0 : index
    %c0_16 = arith.constant 0 : index
    %c0_17 = arith.constant 0 : index
    %15 = vector.load %arg8[%c0_15, %c0_16, %c0_17] : memref<2x2x32xf32, #tpu.memory_space<vmem>>, vector<1x2x32xf32>
    %16 = vector.shape_cast %15 : vector<1x2x32xf32> to vector<2x32xf32>
    %c0_18 = arith.constant 0 : index
    %c0_19 = arith.constant 0 : index
    %c0_20 = arith.constant 0 : index
    %17 = vector.load %arg9[%c0_18, %c0_19, %c0_20] : memref<2x2x32xf32, #tpu.memory_space<vmem>>, vector<1x2x32xf32>
    %18 = vector.shape_cast %17 : vector<1x2x32xf32> to vector<2x32xf32>
    %c1_21 = arith.constant 1 : index
    %c0_22 = arith.constant 0 : index
    %c0_23 = arith.constant 0 : index
    %19 = vector.load %arg8[%c1_21, %c0_22, %c0_23] : memref<2x2x32xf32, #tpu.memory_space<vmem>>, vector<1x2x32xf32>
    %20 = vector.shape_cast %19 : vector<1x2x32xf32> to vector<2x32xf32>
    %c1_24 = arith.constant 1 : index
    %c0_25 = arith.constant 0 : index
    %c0_26 = arith.constant 0 : index
    %21 = vector.load %arg9[%c1_24, %c0_25, %c0_26] : memref<2x2x32xf32, #tpu.memory_space<vmem>>, vector<1x2x32xf32>
    %22 = vector.shape_cast %21 : vector<1x2x32xf32> to vector<2x32xf32>
    %c0_i32_27 = arith.constant 0 : i32
    %c0_28 = arith.constant 0 : index
    %23 = arith.index_cast %c0_i32_27 : i32 to index
    %c0_29 = arith.constant 0 : index
    %c0_30 = arith.constant 0 : index
    %24 = vector.load %arg1[%c0_28, %23, %c0_29, %c0_30] : memref<1x8x2x128xbf16, #tpu.memory_space<vmem>>, vector<1x1x2x128xbf16>
    %25 = vector.shape_cast %24 : vector<1x1x2x128xbf16> to vector<2x128xbf16>
    %26 = arith.extf %25 : vector<2x128xbf16> to vector<2x128xf32>
    %27 = vector.broadcast %8 : vector<1x128xf32> to vector<2x128xf32>
    %28 = arith.addf %26, %27 : vector<2x128xf32>
    %29 = arith.truncf %16 : vector<2x32xf32> to vector<2x32xbf16>
    %cst = arith.constant dense<0.000000e+00> : vector<2x128xf32>
    %30 = tpu.matmul %29, %4, %cst {dimension_numbers = #tpu.dot_dimension_numbers<[1], [0], [0], [1], [0, 0, 1, 1], [], []>} : vector<2x32xbf16>, vector<32x128xbf16>, vector<2x128xf32> -> vector<2x128xf32>
    %31 = arith.addf %28, %30 : vector<2x128xf32>
    %32 = vector.extract_strided_slice %31 {offsets = [0, 0], sizes = [2, 96], strides = [1, 1]} : vector<2x128xf32> to vector<2x96xf32>
    %33 = arith.negf %32 : vector<2x96xf32>
    %34 = math.exp %33 : vector<2x96xf32>
    %cst_31 = arith.constant 1.000000e+00 : f32
    %35 = vector.broadcast %cst_31 : f32 to vector<2x96xf32>
    %36 = arith.addf %35, %34 : vector<2x96xf32>
    %37 = arith.divf %35, %36 : vector<2x96xf32>
    %38 = vector.extract_strided_slice %31 {offsets = [0, 96], sizes = [2, 32], strides = [1, 1]} : vector<2x128xf32> to vector<2x32xf32>
    %39 = math.tanh %38 : vector<2x32xf32>
    %40 = vector.extract_strided_slice %37 {offsets = [0, 32], sizes = [2, 32], strides = [1, 1]} : vector<2x96xf32> to vector<2x32xf32>
    %41 = arith.mulf %40, %18 : vector<2x32xf32>
    %42 = vector.extract_strided_slice %37 {offsets = [0, 0], sizes = [2, 32], strides = [1, 1]} : vector<2x96xf32> to vector<2x32xf32>
    %43 = arith.mulf %42, %39 : vector<2x32xf32>
    %44 = arith.addf %41, %43 : vector<2x32xf32>
    %45 = vector.extract_strided_slice %37 {offsets = [0, 64], sizes = [2, 32], strides = [1, 1]} : vector<2x96xf32> to vector<2x32xf32>
    %46 = math.tanh %44 : vector<2x32xf32>
    %47 = arith.mulf %45, %46 : vector<2x32xf32>
    %48 = arith.addi %12, %c0_i32_27 : i32
    %49 = vector.broadcast %48 : i32 to vector<2x1xi32>
    %50 = arith.cmpi slt, %49, %11 : vector<2x1xi32>
    %cst_32 = arith.constant 0.000000e+00 : f32
    %51 = vector.shape_cast %50 : vector<2x1xi1> to vector<2x1xi1>
    %52 = vector.broadcast %51 : vector<2x1xi1> to vector<2x32xi1>
    %53 = vector.broadcast %cst_32 : f32 to vector<2x32xf32>
    %54 = arith.select %52, %47, %53 : vector<2x32xi1>, vector<2x32xf32>
    %55 = arith.index_cast %c0_i32_27 : i32 to index
    %c0_33 = arith.constant 0 : index
    %c0_34 = arith.constant 0 : index
    %56 = vector.load %arg6[%55, %c0_33, %c0_34] : memref<8x2x32xf32, #tpu.memory_space<vmem>>, vector<1x2x32xf32>
    %57 = vector.shape_cast %56 : vector<1x2x32xf32> to vector<2x32xf32>
    %58 = vector.shape_cast %54 : vector<2x32xf32> to vector<1x2x32xf32>
    tpu.vector_store %arg6[%55, %c0_33, %c0_34], %58 {strides = array<i32>} : memref<8x2x32xf32, #tpu.memory_space<vmem>>, vector<1x2x32xf32>,
    %59 = vector.shape_cast %50 : vector<2x1xi1> to vector<2x1xi1>
    %60 = vector.broadcast %59 : vector<2x1xi1> to vector<2x32xi1>
    %61 = arith.select %60, %47, %16 : vector<2x32xi1>, vector<2x32xf32>
    %62 = vector.shape_cast %50 : vector<2x1xi1> to vector<2x1xi1>
    %63 = vector.broadcast %62 : vector<2x1xi1> to vector<2x32xi1>
    %64 = arith.select %63, %44, %18 : vector<2x32xi1>, vector<2x32xf32>
    %c7_i32 = arith.constant 7 : i32
    %65 = arith.subi %c7_i32, %c0_i32_27 : i32
    %c0_35 = arith.constant 0 : index
    %66 = arith.index_cast %65 : i32 to index
    %c0_36 = arith.constant 0 : index
    %c0_37 = arith.constant 0 : index
    %67 = vector.load %arg2[%c0_35, %66, %c0_36, %c0_37] : memref<1x8x2x128xbf16, #tpu.memory_space<vmem>>, vector<1x1x2x128xbf16>
    %68 = vector.shape_cast %67 : vector<1x1x2x128xbf16> to vector<2x128xbf16>
    %69 = arith.extf %68 : vector<2x128xbf16> to vector<2x128xf32>
    %70 = vector.broadcast %10 : vector<1x128xf32> to vector<2x128xf32>
    %71 = arith.addf %69, %70 : vector<2x128xf32>
    %72 = arith.truncf %20 : vector<2x32xf32> to vector<2x32xbf16>
    %cst_38 = arith.constant dense<0.000000e+00> : vector<2x128xf32>
    %73 = tpu.matmul %72, %6, %cst_38 {dimension_numbers = #tpu.dot_dimension_numbers<[1], [0], [0], [1], [0, 0, 1, 1], [], []>} : vector<2x32xbf16>, vector<32x128xbf16>, vector<2x128xf32> -> vector<2x128xf32>
    %74 = arith.addf %71, %73 : vector<2x128xf32>
    %75 = vector.extract_strided_slice %74 {offsets = [0, 0], sizes = [2, 96], strides = [1, 1]} : vector<2x128xf32> to vector<2x96xf32>
    %76 = arith.negf %75 : vector<2x96xf32>
    %77 = math.exp %76 : vector<2x96xf32>
    %cst_39 = arith.constant 1.000000e+00 : f32
    %78 = vector.broadcast %cst_39 : f32 to vector<2x96xf32>
    %79 = arith.addf %78, %77 : vector<2x96xf32>
    %80 = arith.divf %78, %79 : vector<2x96xf32>
    %81 = vector.extract_strided_slice %74 {offsets = [0, 96], sizes = [2, 32], strides = [1, 1]} : vector<2x128xf32> to vector<2x32xf32>
    %82 = math.tanh %81 : vector<2x32xf32>
    %83 = vector.extract_strided_slice %80 {offsets = [0, 32], sizes = [2, 32], strides = [1, 1]} : vector<2x96xf32> to vector<2x32xf32>
    %84 = arith.mulf %83, %22 : vector<2x32xf32>
    %85 = vector.extract_strided_slice %80 {offsets = [0, 0], sizes = [2, 32], strides = [1, 1]} : vector<2x96xf32> to vector<2x32xf32>
    %86 = arith.mulf %85, %82 : vector<2x32xf32>
    %87 = arith.addf %84, %86 : vector<2x32xf32>
    %88 = vector.extract_strided_slice %80 {offsets = [0, 64], sizes = [2, 32], strides = [1, 1]} : vector<2x96xf32> to vector<2x32xf32>
    %89 = math.tanh %87 : vector<2x32xf32>
    %90 = arith.mulf %88, %89 : vector<2x32xf32>
    %91 = arith.addi %14, %65 : i32
    %92 = vector.broadcast %91 : i32 to vector<2x1xi32>
    %93 = arith.cmpi slt, %92, %11 : vector<2x1xi32>
    %cst_40 = arith.constant 0.000000e+00 : f32
    %94 = vector.shape_cast %93 : vector<2x1xi1> to vector<2x1xi1>
    %95 = vector.broadcast %94 : vector<2x1xi1> to vector<2x32xi1>
    %96 = vector.broadcast %cst_40 : f32 to vector<2x32xf32>
    %97 = arith.select %95, %90, %96 : vector<2x32xi1>, vector<2x32xf32>
    %98 = arith.index_cast %65 : i32 to index
    %c0_41 = arith.constant 0 : index
    %c0_42 = arith.constant 0 : index
    %99 = vector.load %arg7[%98, %c0_41, %c0_42] : memref<8x2x32xf32, #tpu.memory_space<vmem>>, vector<1x2x32xf32>
    %100 = vector.shape_cast %99 : vector<1x2x32xf32> to vector<2x32xf32>
    %101 = vector.shape_cast %97 : vector<2x32xf32> to vector<1x2x32xf32>
    tpu.vector_store %arg7[%98, %c0_41, %c0_42], %101 {strides = array<i32>} : memref<8x2x32xf32, #tpu.memory_space<vmem>>, vector<1x2x32xf32>,
    %102 = vector.shape_cast %93 : vector<2x1xi1> to vector<2x1xi1>
    %103 = vector.broadcast %102 : vector<2x1xi1> to vector<2x32xi1>
    %104 = arith.select %103, %90, %20 : vector<2x32xi1>, vector<2x32xf32>
    %105 = vector.shape_cast %93 : vector<2x1xi1> to vector<2x1xi1>
    %106 = vector.broadcast %105 : vector<2x1xi1> to vector<2x32xi1>
    %107 = arith.select %106, %87, %22 : vector<2x32xi1>, vector<2x32xf32>
    %c1_i32 = arith.constant 1 : i32
    %c0_43 = arith.constant 0 : index
    %108 = arith.index_cast %c1_i32 : i32 to index
    %c0_44 = arith.constant 0 : index
    %c0_45 = arith.constant 0 : index
    %109 = vector.load %arg1[%c0_43, %108, %c0_44, %c0_45] : memref<1x8x2x128xbf16, #tpu.memory_space<vmem>>, vector<1x1x2x128xbf16>
    %110 = vector.shape_cast %109 : vector<1x1x2x128xbf16> to vector<2x128xbf16>
    %111 = arith.extf %110 : vector<2x128xbf16> to vector<2x128xf32>
    %112 = vector.broadcast %8 : vector<1x128xf32> to vector<2x128xf32>
    %113 = arith.addf %111, %112 : vector<2x128xf32>
    %114 = arith.truncf %61 : vector<2x32xf32> to vector<2x32xbf16>
    %cst_46 = arith.constant dense<0.000000e+00> : vector<2x128xf32>
    %115 = tpu.matmul %114, %4, %cst_46 {dimension_numbers = #tpu.dot_dimension_numbers<[1], [0], [0], [1], [0, 0, 1, 1], [], []>} : vector<2x32xbf16>, vector<32x128xbf16>, vector<2x128xf32> -> vector<2x128xf32>
    %116 = arith.addf %113, %115 : vector<2x128xf32>
    %117 = vector.extract_strided_slice %116 {offsets = [0, 0], sizes = [2, 96], strides = [1, 1]} : vector<2x128xf32> to vector<2x96xf32>
    %118 = arith.negf %117 : vector<2x96xf32>
    %119 = math.exp %118 : vector<2x96xf32>
    %cst_47 = arith.constant 1.000000e+00 : f32
    %120 = vector.broadcast %cst_47 : f32 to vector<2x96xf32>
    %121 = arith.addf %120, %119 : vector<2x96xf32>
    %122 = arith.divf %120, %121 : vector<2x96xf32>
    %123 = vector.extract_strided_slice %116 {offsets = [0, 96], sizes = [2, 32], strides = [1, 1]} : vector<2x128xf32> to vector<2x32xf32>
    %124 = math.tanh %123 : vector<2x32xf32>
    %125 = vector.extract_strided_slice %122 {offsets = [0, 32], sizes = [2, 32], strides = [1, 1]} : vector<2x96xf32> to vector<2x32xf32>
    %126 = arith.mulf %125, %64 : vector<2x32xf32>
    %127 = vector.extract_strided_slice %122 {offsets = [0, 0], sizes = [2, 32], strides = [1, 1]} : vector<2x96xf32> to vector<2x32xf32>
    %128 = arith.mulf %127, %124 : vector<2x32xf32>
    %129 = arith.addf %126, %128 : vector<2x32xf32>
    %130 = vector.extract_strided_slice %122 {offsets = [0, 64], sizes = [2, 32], strides = [1, 1]} : vector<2x96xf32> to vector<2x32xf32>
    %131 = math.tanh %129 : vector<2x32xf32>
    %132 = arith.mulf %130, %131 : vector<2x32xf32>
    %133 = arith.addi %12, %c1_i32 : i32
    %134 = vector.broadcast %133 : i32 to vector<2x1xi32>
    %135 = arith.cmpi slt, %134, %11 : vector<2x1xi32>
    %cst_48 = arith.constant 0.000000e+00 : f32
    %136 = vector.shape_cast %135 : vector<2x1xi1> to vector<2x1xi1>
    %137 = vector.broadcast %136 : vector<2x1xi1> to vector<2x32xi1>
    %138 = vector.broadcast %cst_48 : f32 to vector<2x32xf32>
    %139 = arith.select %137, %132, %138 : vector<2x32xi1>, vector<2x32xf32>
    %140 = arith.index_cast %c1_i32 : i32 to index
    %c0_49 = arith.constant 0 : index
    %c0_50 = arith.constant 0 : index
    %141 = vector.load %arg6[%140, %c0_49, %c0_50] : memref<8x2x32xf32, #tpu.memory_space<vmem>>, vector<1x2x32xf32>
    %142 = vector.shape_cast %141 : vector<1x2x32xf32> to vector<2x32xf32>
    %143 = vector.shape_cast %139 : vector<2x32xf32> to vector<1x2x32xf32>
    tpu.vector_store %arg6[%140, %c0_49, %c0_50], %143 {strides = array<i32>} : memref<8x2x32xf32, #tpu.memory_space<vmem>>, vector<1x2x32xf32>,
    %144 = vector.shape_cast %135 : vector<2x1xi1> to vector<2x1xi1>
    %145 = vector.broadcast %144 : vector<2x1xi1> to vector<2x32xi1>
    %146 = arith.select %145, %132, %61 : vector<2x32xi1>, vector<2x32xf32>
    %147 = vector.shape_cast %135 : vector<2x1xi1> to vector<2x1xi1>
    %148 = vector.broadcast %147 : vector<2x1xi1> to vector<2x32xi1>
    %149 = arith.select %148, %129, %64 : vector<2x32xi1>, vector<2x32xf32>
    %c7_i32_51 = arith.constant 7 : i32
    %150 = arith.subi %c7_i32_51, %c1_i32 : i32
    %c0_52 = arith.constant 0 : index
    %151 = arith.index_cast %150 : i32 to index
    %c0_53 = arith.constant 0 : index
    %c0_54 = arith.constant 0 : index
    %152 = vector.load %arg2[%c0_52, %151, %c0_53, %c0_54] : memref<1x8x2x128xbf16, #tpu.memory_space<vmem>>, vector<1x1x2x128xbf16>
    %153 = vector.shape_cast %152 : vector<1x1x2x128xbf16> to vector<2x128xbf16>
    %154 = arith.extf %153 : vector<2x128xbf16> to vector<2x128xf32>
    %155 = vector.broadcast %10 : vector<1x128xf32> to vector<2x128xf32>
    %156 = arith.addf %154, %155 : vector<2x128xf32>
    %157 = arith.truncf %104 : vector<2x32xf32> to vector<2x32xbf16>
    %cst_55 = arith.constant dense<0.000000e+00> : vector<2x128xf32>
    %158 = tpu.matmul %157, %6, %cst_55 {dimension_numbers = #tpu.dot_dimension_numbers<[1], [0], [0], [1], [0, 0, 1, 1], [], []>} : vector<2x32xbf16>, vector<32x128xbf16>, vector<2x128xf32> -> vector<2x128xf32>
    %159 = arith.addf %156, %158 : vector<2x128xf32>
    %160 = vector.extract_strided_slice %159 {offsets = [0, 0], sizes = [2, 96], strides = [1, 1]} : vector<2x128xf32> to vector<2x96xf32>
    %161 = arith.negf %160 : vector<2x96xf32>
    %162 = math.exp %161 : vector<2x96xf32>
    %cst_56 = arith.constant 1.000000e+00 : f32
    %163 = vector.broadcast %cst_56 : f32 to vector<2x96xf32>
    %164 = arith.addf %163, %162 : vector<2x96xf32>
    %165 = arith.divf %163, %164 : vector<2x96xf32>
    %166 = vector.extract_strided_slice %159 {offsets = [0, 96], sizes = [2, 32], strides = [1, 1]} : vector<2x128xf32> to vector<2x32xf32>
    %167 = math.tanh %166 : vector<2x32xf32>
    %168 = vector.extract_strided_slice %165 {offsets = [0, 32], sizes = [2, 32], strides = [1, 1]} : vector<2x96xf32> to vector<2x32xf32>
    %169 = arith.mulf %168, %107 : vector<2x32xf32>
    %170 = vector.extract_strided_slice %165 {offsets = [0, 0], sizes = [2, 32], strides = [1, 1]} : vector<2x96xf32> to vector<2x32xf32>
    %171 = arith.mulf %170, %167 : vector<2x32xf32>
    %172 = arith.addf %169, %171 : vector<2x32xf32>
    %173 = vector.extract_strided_slice %165 {offsets = [0, 64], sizes = [2, 32], strides = [1, 1]} : vector<2x96xf32> to vector<2x32xf32>
    %174 = math.tanh %172 : vector<2x32xf32>
    %175 = arith.mulf %173, %174 : vector<2x32xf32>
    %176 = arith.addi %14, %150 : i32
    %177 = vector.broadcast %176 : i32 to vector<2x1xi32>
    %178 = arith.cmpi slt, %177, %11 : vector<2x1xi32>
    %cst_57 = arith.constant 0.000000e+00 : f32
    %179 = vector.shape_cast %178 : vector<2x1xi1> to vector<2x1xi1>
    %180 = vector.broadcast %179 : vector<2x1xi1> to vector<2x32xi1>
    %181 = vector.broadcast %cst_57 : f32 to vector<2x32xf32>
    %182 = arith.select %180, %175, %181 : vector<2x32xi1>, vector<2x32xf32>
    %183 = arith.index_cast %150 : i32 to index
    %c0_58 = arith.constant 0 : index
    %c0_59 = arith.constant 0 : index
    %184 = vector.load %arg7[%183, %c0_58, %c0_59] : memref<8x2x32xf32, #tpu.memory_space<vmem>>, vector<1x2x32xf32>
    %185 = vector.shape_cast %184 : vector<1x2x32xf32> to vector<2x32xf32>
    %186 = vector.shape_cast %182 : vector<2x32xf32> to vector<1x2x32xf32>
    tpu.vector_store %arg7[%183, %c0_58, %c0_59], %186 {strides = array<i32>} : memref<8x2x32xf32, #tpu.memory_space<vmem>>, vector<1x2x32xf32>,
    %187 = vector.shape_cast %178 : vector<2x1xi1> to vector<2x1xi1>
    %188 = vector.broadcast %187 : vector<2x1xi1> to vector<2x32xi1>
    %189 = arith.select %188, %175, %104 : vector<2x32xi1>, vector<2x32xf32>
    %190 = vector.shape_cast %178 : vector<2x1xi1> to vector<2x1xi1>
    %191 = vector.broadcast %190 : vector<2x1xi1> to vector<2x32xi1>
    %192 = arith.select %191, %172, %107 : vector<2x32xi1>, vector<2x32xf32>
    %c2_i32 = arith.constant 2 : i32
    %c0_60 = arith.constant 0 : index
    %193 = arith.index_cast %c2_i32 : i32 to index
    %c0_61 = arith.constant 0 : index
    %c0_62 = arith.constant 0 : index
    %194 = vector.load %arg1[%c0_60, %193, %c0_61, %c0_62] : memref<1x8x2x128xbf16, #tpu.memory_space<vmem>>, vector<1x1x2x128xbf16>
    %195 = vector.shape_cast %194 : vector<1x1x2x128xbf16> to vector<2x128xbf16>
    %196 = arith.extf %195 : vector<2x128xbf16> to vector<2x128xf32>
    %197 = vector.broadcast %8 : vector<1x128xf32> to vector<2x128xf32>
    %198 = arith.addf %196, %197 : vector<2x128xf32>
    %199 = arith.truncf %146 : vector<2x32xf32> to vector<2x32xbf16>
    %cst_63 = arith.constant dense<0.000000e+00> : vector<2x128xf32>
    %200 = tpu.matmul %199, %4, %cst_63 {dimension_numbers = #tpu.dot_dimension_numbers<[1], [0], [0], [1], [0, 0, 1, 1], [], []>} : vector<2x32xbf16>, vector<32x128xbf16>, vector<2x128xf32> -> vector<2x128xf32>
    %201 = arith.addf %198, %200 : vector<2x128xf32>
    %202 = vector.extract_strided_slice %201 {offsets = [0, 0], sizes = [2, 96], strides = [1, 1]} : vector<2x128xf32> to vector<2x96xf32>
    %203 = arith.negf %202 : vector<2x96xf32>
    %204 = math.exp %203 : vector<2x96xf32>
    %cst_64 = arith.constant 1.000000e+00 : f32
    %205 = vector.broadcast %cst_64 : f32 to vector<2x96xf32>
    %206 = arith.addf %205, %204 : vector<2x96xf32>
    %207 = arith.divf %205, %206 : vector<2x96xf32>
    %208 = vector.extract_strided_slice %201 {offsets = [0, 96], sizes = [2, 32], strides = [1, 1]} : vector<2x128xf32> to vector<2x32xf32>
    %209 = math.tanh %208 : vector<2x32xf32>
    %210 = vector.extract_strided_slice %207 {offsets = [0, 32], sizes = [2, 32], strides = [1, 1]} : vector<2x96xf32> to vector<2x32xf32>
    %211 = arith.mulf %210, %149 : vector<2x32xf32>
    %212 = vector.extract_strided_slice %207 {offsets = [0, 0], sizes = [2, 32], strides = [1, 1]} : vector<2x96xf32> to vector<2x32xf32>
    %213 = arith.mulf %212, %209 : vector<2x32xf32>
    %214 = arith.addf %211, %213 : vector<2x32xf32>
    %215 = vector.extract_strided_slice %207 {offsets = [0, 64], sizes = [2, 32], strides = [1, 1]} : vector<2x96xf32> to vector<2x32xf32>
    %216 = math.tanh %214 : vector<2x32xf32>
    %217 = arith.mulf %215, %216 : vector<2x32xf32>
    %218 = arith.addi %12, %c2_i32 : i32
    %219 = vector.broadcast %218 : i32 to vector<2x1xi32>
    %220 = arith.cmpi slt, %219, %11 : vector<2x1xi32>
    %cst_65 = arith.constant 0.000000e+00 : f32
    %221 = vector.shape_cast %220 : vector<2x1xi1> to vector<2x1xi1>
    %222 = vector.broadcast %221 : vector<2x1xi1> to vector<2x32xi1>
    %223 = vector.broadcast %cst_65 : f32 to vector<2x32xf32>
    %224 = arith.select %222, %217, %223 : vector<2x32xi1>, vector<2x32xf32>
    %225 = arith.index_cast %c2_i32 : i32 to index
    %c0_66 = arith.constant 0 : index
    %c0_67 = arith.constant 0 : index
    %226 = vector.load %arg6[%225, %c0_66, %c0_67] : memref<8x2x32xf32, #tpu.memory_space<vmem>>, vector<1x2x32xf32>
    %227 = vector.shape_cast %226 : vector<1x2x32xf32> to vector<2x32xf32>
    %228 = vector.shape_cast %224 : vector<2x32xf32> to vector<1x2x32xf32>
    tpu.vector_store %arg6[%225, %c0_66, %c0_67], %228 {strides = array<i32>} : memref<8x2x32xf32, #tpu.memory_space<vmem>>, vector<1x2x32xf32>,
    %229 = vector.shape_cast %220 : vector<2x1xi1> to vector<2x1xi1>
    %230 = vector.broadcast %229 : vector<2x1xi1> to vector<2x32xi1>
    %231 = arith.select %230, %217, %146 : vector<2x32xi1>, vector<2x32xf32>
    %232 = vector.shape_cast %220 : vector<2x1xi1> to vector<2x1xi1>
    %233 = vector.broadcast %232 : vector<2x1xi1> to vector<2x32xi1>
    %234 = arith.select %233, %214, %149 : vector<2x32xi1>, vector<2x32xf32>
    %c7_i32_68 = arith.constant 7 : i32
    %235 = arith.subi %c7_i32_68, %c2_i32 : i32
    %c0_69 = arith.constant 0 : index
    %236 = arith.index_cast %235 : i32 to index
    %c0_70 = arith.constant 0 : index
    %c0_71 = arith.constant 0 : index
    %237 = vector.load %arg2[%c0_69, %236, %c0_70, %c0_71] : memref<1x8x2x128xbf16, #tpu.memory_space<vmem>>, vector<1x1x2x128xbf16>
    %238 = vector.shape_cast %237 : vector<1x1x2x128xbf16> to vector<2x128xbf16>
    %239 = arith.extf %238 : vector<2x128xbf16> to vector<2x128xf32>
    %240 = vector.broadcast %10 : vector<1x128xf32> to vector<2x128xf32>
    %241 = arith.addf %239, %240 : vector<2x128xf32>
    %242 = arith.truncf %189 : vector<2x32xf32> to vector<2x32xbf16>
    %cst_72 = arith.constant dense<0.000000e+00> : vector<2x128xf32>
    %243 = tpu.matmul %242, %6, %cst_72 {dimension_numbers = #tpu.dot_dimension_numbers<[1], [0], [0], [1], [0, 0, 1, 1], [], []>} : vector<2x32xbf16>, vector<32x128xbf16>, vector<2x128xf32> -> vector<2x128xf32>
    %244 = arith.addf %241, %243 : vector<2x128xf32>
    %245 = vector.extract_strided_slice %244 {offsets = [0, 0], sizes = [2, 96], strides = [1, 1]} : vector<2x128xf32> to vector<2x96xf32>
    %246 = arith.negf %245 : vector<2x96xf32>
    %247 = math.exp %246 : vector<2x96xf32>
    %cst_73 = arith.constant 1.000000e+00 : f32
    %248 = vector.broadcast %cst_73 : f32 to vector<2x96xf32>
    %249 = arith.addf %248, %247 : vector<2x96xf32>
    %250 = arith.divf %248, %249 : vector<2x96xf32>
    %251 = vector.extract_strided_slice %244 {offsets = [0, 96], sizes = [2, 32], strides = [1, 1]} : vector<2x128xf32> to vector<2x32xf32>
    %252 = math.tanh %251 : vector<2x32xf32>
    %253 = vector.extract_strided_slice %250 {offsets = [0, 32], sizes = [2, 32], strides = [1, 1]} : vector<2x96xf32> to vector<2x32xf32>
    %254 = arith.mulf %253, %192 : vector<2x32xf32>
    %255 = vector.extract_strided_slice %250 {offsets = [0, 0], sizes = [2, 32], strides = [1, 1]} : vector<2x96xf32> to vector<2x32xf32>
    %256 = arith.mulf %255, %252 : vector<2x32xf32>
    %257 = arith.addf %254, %256 : vector<2x32xf32>
    %258 = vector.extract_strided_slice %250 {offsets = [0, 64], sizes = [2, 32], strides = [1, 1]} : vector<2x96xf32> to vector<2x32xf32>
    %259 = math.tanh %257 : vector<2x32xf32>
    %260 = arith.mulf %258, %259 : vector<2x32xf32>
    %261 = arith.addi %14, %235 : i32
    %262 = vector.broadcast %261 : i32 to vector<2x1xi32>
    %263 = arith.cmpi slt, %262, %11 : vector<2x1xi32>
    %cst_74 = arith.constant 0.000000e+00 : f32
    %264 = vector.shape_cast %263 : vector<2x1xi1> to vector<2x1xi1>
    %265 = vector.broadcast %264 : vector<2x1xi1> to vector<2x32xi1>
    %266 = vector.broadcast %cst_74 : f32 to vector<2x32xf32>
    %267 = arith.select %265, %260, %266 : vector<2x32xi1>, vector<2x32xf32>
    %268 = arith.index_cast %235 : i32 to index
    %c0_75 = arith.constant 0 : index
    %c0_76 = arith.constant 0 : index
    %269 = vector.load %arg7[%268, %c0_75, %c0_76] : memref<8x2x32xf32, #tpu.memory_space<vmem>>, vector<1x2x32xf32>
    %270 = vector.shape_cast %269 : vector<1x2x32xf32> to vector<2x32xf32>
    %271 = vector.shape_cast %267 : vector<2x32xf32> to vector<1x2x32xf32>
    tpu.vector_store %arg7[%268, %c0_75, %c0_76], %271 {strides = array<i32>} : memref<8x2x32xf32, #tpu.memory_space<vmem>>, vector<1x2x32xf32>,
    %272 = vector.shape_cast %263 : vector<2x1xi1> to vector<2x1xi1>
    %273 = vector.broadcast %272 : vector<2x1xi1> to vector<2x32xi1>
    %274 = arith.select %273, %260, %189 : vector<2x32xi1>, vector<2x32xf32>
    %275 = vector.shape_cast %263 : vector<2x1xi1> to vector<2x1xi1>
    %276 = vector.broadcast %275 : vector<2x1xi1> to vector<2x32xi1>
    %277 = arith.select %276, %257, %192 : vector<2x32xi1>, vector<2x32xf32>
    %c3_i32 = arith.constant 3 : i32
    %c0_77 = arith.constant 0 : index
    %278 = arith.index_cast %c3_i32 : i32 to index
    %c0_78 = arith.constant 0 : index
    %c0_79 = arith.constant 0 : index
    %279 = vector.load %arg1[%c0_77, %278, %c0_78, %c0_79] : memref<1x8x2x128xbf16, #tpu.memory_space<vmem>>, vector<1x1x2x128xbf16>
    %280 = vector.shape_cast %279 : vector<1x1x2x128xbf16> to vector<2x128xbf16>
    %281 = arith.extf %280 : vector<2x128xbf16> to vector<2x128xf32>
    %282 = vector.broadcast %8 : vector<1x128xf32> to vector<2x128xf32>
    %283 = arith.addf %281, %282 : vector<2x128xf32>
    %284 = arith.truncf %231 : vector<2x32xf32> to vector<2x32xbf16>
    %cst_80 = arith.constant dense<0.000000e+00> : vector<2x128xf32>
    %285 = tpu.matmul %284, %4, %cst_80 {dimension_numbers = #tpu.dot_dimension_numbers<[1], [0], [0], [1], [0, 0, 1, 1], [], []>} : vector<2x32xbf16>, vector<32x128xbf16>, vector<2x128xf32> -> vector<2x128xf32>
    %286 = arith.addf %283, %285 : vector<2x128xf32>
    %287 = vector.extract_strided_slice %286 {offsets = [0, 0], sizes = [2, 96], strides = [1, 1]} : vector<2x128xf32> to vector<2x96xf32>
    %288 = arith.negf %287 : vector<2x96xf32>
    %289 = math.exp %288 : vector<2x96xf32>
    %cst_81 = arith.constant 1.000000e+00 : f32
    %290 = vector.broadcast %cst_81 : f32 to vector<2x96xf32>
    %291 = arith.addf %290, %289 : vector<2x96xf32>
    %292 = arith.divf %290, %291 : vector<2x96xf32>
    %293 = vector.extract_strided_slice %286 {offsets = [0, 96], sizes = [2, 32], strides = [1, 1]} : vector<2x128xf32> to vector<2x32xf32>
    %294 = math.tanh %293 : vector<2x32xf32>
    %295 = vector.extract_strided_slice %292 {offsets = [0, 32], sizes = [2, 32], strides = [1, 1]} : vector<2x96xf32> to vector<2x32xf32>
    %296 = arith.mulf %295, %234 : vector<2x32xf32>
    %297 = vector.extract_strided_slice %292 {offsets = [0, 0], sizes = [2, 32], strides = [1, 1]} : vector<2x96xf32> to vector<2x32xf32>
    %298 = arith.mulf %297, %294 : vector<2x32xf32>
    %299 = arith.addf %296, %298 : vector<2x32xf32>
    %300 = vector.extract_strided_slice %292 {offsets = [0, 64], sizes = [2, 32], strides = [1, 1]} : vector<2x96xf32> to vector<2x32xf32>
    %301 = math.tanh %299 : vector<2x32xf32>
    %302 = arith.mulf %300, %301 : vector<2x32xf32>
    %303 = arith.addi %12, %c3_i32 : i32
    %304 = vector.broadcast %303 : i32 to vector<2x1xi32>
    %305 = arith.cmpi slt, %304, %11 : vector<2x1xi32>
    %cst_82 = arith.constant 0.000000e+00 : f32
    %306 = vector.shape_cast %305 : vector<2x1xi1> to vector<2x1xi1>
    %307 = vector.broadcast %306 : vector<2x1xi1> to vector<2x32xi1>
    %308 = vector.broadcast %cst_82 : f32 to vector<2x32xf32>
    %309 = arith.select %307, %302, %308 : vector<2x32xi1>, vector<2x32xf32>
    %310 = arith.index_cast %c3_i32 : i32 to index
    %c0_83 = arith.constant 0 : index
    %c0_84 = arith.constant 0 : index
    %311 = vector.load %arg6[%310, %c0_83, %c0_84] : memref<8x2x32xf32, #tpu.memory_space<vmem>>, vector<1x2x32xf32>
    %312 = vector.shape_cast %311 : vector<1x2x32xf32> to vector<2x32xf32>
    %313 = vector.shape_cast %309 : vector<2x32xf32> to vector<1x2x32xf32>
    tpu.vector_store %arg6[%310, %c0_83, %c0_84], %313 {strides = array<i32>} : memref<8x2x32xf32, #tpu.memory_space<vmem>>, vector<1x2x32xf32>,
    %314 = vector.shape_cast %305 : vector<2x1xi1> to vector<2x1xi1>
    %315 = vector.broadcast %314 : vector<2x1xi1> to vector<2x32xi1>
    %316 = arith.select %315, %302, %231 : vector<2x32xi1>, vector<2x32xf32>
    %317 = vector.shape_cast %305 : vector<2x1xi1> to vector<2x1xi1>
    %318 = vector.broadcast %317 : vector<2x1xi1> to vector<2x32xi1>
    %319 = arith.select %318, %299, %234 : vector<2x32xi1>, vector<2x32xf32>
    %c7_i32_85 = arith.constant 7 : i32
    %320 = arith.subi %c7_i32_85, %c3_i32 : i32
    %c0_86 = arith.constant 0 : index
    %321 = arith.index_cast %320 : i32 to index
    %c0_87 = arith.constant 0 : index
    %c0_88 = arith.constant 0 : index
    %322 = vector.load %arg2[%c0_86, %321, %c0_87, %c0_88] : memref<1x8x2x128xbf16, #tpu.memory_space<vmem>>, vector<1x1x2x128xbf16>
    %323 = vector.shape_cast %322 : vector<1x1x2x128xbf16> to vector<2x128xbf16>
    %324 = arith.extf %323 : vector<2x128xbf16> to vector<2x128xf32>
    %325 = vector.broadcast %10 : vector<1x128xf32> to vector<2x128xf32>
    %326 = arith.addf %324, %325 : vector<2x128xf32>
    %327 = arith.truncf %274 : vector<2x32xf32> to vector<2x32xbf16>
    %cst_89 = arith.constant dense<0.000000e+00> : vector<2x128xf32>
    %328 = tpu.matmul %327, %6, %cst_89 {dimension_numbers = #tpu.dot_dimension_numbers<[1], [0], [0], [1], [0, 0, 1, 1], [], []>} : vector<2x32xbf16>, vector<32x128xbf16>, vector<2x128xf32> -> vector<2x128xf32>
    %329 = arith.addf %326, %328 : vector<2x128xf32>
    %330 = vector.extract_strided_slice %329 {offsets = [0, 0], sizes = [2, 96], strides = [1, 1]} : vector<2x128xf32> to vector<2x96xf32>
    %331 = arith.negf %330 : vector<2x96xf32>
    %332 = math.exp %331 : vector<2x96xf32>
    %cst_90 = arith.constant 1.000000e+00 : f32
    %333 = vector.broadcast %cst_90 : f32 to vector<2x96xf32>
    %334 = arith.addf %333, %332 : vector<2x96xf32>
    %335 = arith.divf %333, %334 : vector<2x96xf32>
    %336 = vector.extract_strided_slice %329 {offsets = [0, 96], sizes = [2, 32], strides = [1, 1]} : vector<2x128xf32> to vector<2x32xf32>
    %337 = math.tanh %336 : vector<2x32xf32>
    %338 = vector.extract_strided_slice %335 {offsets = [0, 32], sizes = [2, 32], strides = [1, 1]} : vector<2x96xf32> to vector<2x32xf32>
    %339 = arith.mulf %338, %277 : vector<2x32xf32>
    %340 = vector.extract_strided_slice %335 {offsets = [0, 0], sizes = [2, 32], strides = [1, 1]} : vector<2x96xf32> to vector<2x32xf32>
    %341 = arith.mulf %340, %337 : vector<2x32xf32>
    %342 = arith.addf %339, %341 : vector<2x32xf32>
    %343 = vector.extract_strided_slice %335 {offsets = [0, 64], sizes = [2, 32], strides = [1, 1]} : vector<2x96xf32> to vector<2x32xf32>
    %344 = math.tanh %342 : vector<2x32xf32>
    %345 = arith.mulf %343, %344 : vector<2x32xf32>
    %346 = arith.addi %14, %320 : i32
    %347 = vector.broadcast %346 : i32 to vector<2x1xi32>
    %348 = arith.cmpi slt, %347, %11 : vector<2x1xi32>
    %cst_91 = arith.constant 0.000000e+00 : f32
    %349 = vector.shape_cast %348 : vector<2x1xi1> to vector<2x1xi1>
    %350 = vector.broadcast %349 : vector<2x1xi1> to vector<2x32xi1>
    %351 = vector.broadcast %cst_91 : f32 to vector<2x32xf32>
    %352 = arith.select %350, %345, %351 : vector<2x32xi1>, vector<2x32xf32>
    %353 = arith.index_cast %320 : i32 to index
    %c0_92 = arith.constant 0 : index
    %c0_93 = arith.constant 0 : index
    %354 = vector.load %arg7[%353, %c0_92, %c0_93] : memref<8x2x32xf32, #tpu.memory_space<vmem>>, vector<1x2x32xf32>
    %355 = vector.shape_cast %354 : vector<1x2x32xf32> to vector<2x32xf32>
    %356 = vector.shape_cast %352 : vector<2x32xf32> to vector<1x2x32xf32>
    tpu.vector_store %arg7[%353, %c0_92, %c0_93], %356 {strides = array<i32>} : memref<8x2x32xf32, #tpu.memory_space<vmem>>, vector<1x2x32xf32>,
    %357 = vector.shape_cast %348 : vector<2x1xi1> to vector<2x1xi1>
    %358 = vector.broadcast %357 : vector<2x1xi1> to vector<2x32xi1>
    %359 = arith.select %358, %345, %274 : vector<2x32xi1>, vector<2x32xf32>
    %360 = vector.shape_cast %348 : vector<2x1xi1> to vector<2x1xi1>
    %361 = vector.broadcast %360 : vector<2x1xi1> to vector<2x32xi1>
    %362 = arith.select %361, %342, %277 : vector<2x32xi1>, vector<2x32xf32>
    %c4_i32 = arith.constant 4 : i32
    %c0_94 = arith.constant 0 : index
    %363 = arith.index_cast %c4_i32 : i32 to index
    %c0_95 = arith.constant 0 : index
    %c0_96 = arith.constant 0 : index
    %364 = vector.load %arg1[%c0_94, %363, %c0_95, %c0_96] : memref<1x8x2x128xbf16, #tpu.memory_space<vmem>>, vector<1x1x2x128xbf16>
    %365 = vector.shape_cast %364 : vector<1x1x2x128xbf16> to vector<2x128xbf16>
    %366 = arith.extf %365 : vector<2x128xbf16> to vector<2x128xf32>
    %367 = vector.broadcast %8 : vector<1x128xf32> to vector<2x128xf32>
    %368 = arith.addf %366, %367 : vector<2x128xf32>
    %369 = arith.truncf %316 : vector<2x32xf32> to vector<2x32xbf16>
    %cst_97 = arith.constant dense<0.000000e+00> : vector<2x128xf32>
    %370 = tpu.matmul %369, %4, %cst_97 {dimension_numbers = #tpu.dot_dimension_numbers<[1], [0], [0], [1], [0, 0, 1, 1], [], []>} : vector<2x32xbf16>, vector<32x128xbf16>, vector<2x128xf32> -> vector<2x128xf32>
    %371 = arith.addf %368, %370 : vector<2x128xf32>
    %372 = vector.extract_strided_slice %371 {offsets = [0, 0], sizes = [2, 96], strides = [1, 1]} : vector<2x128xf32> to vector<2x96xf32>
    %373 = arith.negf %372 : vector<2x96xf32>
    %374 = math.exp %373 : vector<2x96xf32>
    %cst_98 = arith.constant 1.000000e+00 : f32
    %375 = vector.broadcast %cst_98 : f32 to vector<2x96xf32>
    %376 = arith.addf %375, %374 : vector<2x96xf32>
    %377 = arith.divf %375, %376 : vector<2x96xf32>
    %378 = vector.extract_strided_slice %371 {offsets = [0, 96], sizes = [2, 32], strides = [1, 1]} : vector<2x128xf32> to vector<2x32xf32>
    %379 = math.tanh %378 : vector<2x32xf32>
    %380 = vector.extract_strided_slice %377 {offsets = [0, 32], sizes = [2, 32], strides = [1, 1]} : vector<2x96xf32> to vector<2x32xf32>
    %381 = arith.mulf %380, %319 : vector<2x32xf32>
    %382 = vector.extract_strided_slice %377 {offsets = [0, 0], sizes = [2, 32], strides = [1, 1]} : vector<2x96xf32> to vector<2x32xf32>
    %383 = arith.mulf %382, %379 : vector<2x32xf32>
    %384 = arith.addf %381, %383 : vector<2x32xf32>
    %385 = vector.extract_strided_slice %377 {offsets = [0, 64], sizes = [2, 32], strides = [1, 1]} : vector<2x96xf32> to vector<2x32xf32>
    %386 = math.tanh %384 : vector<2x32xf32>
    %387 = arith.mulf %385, %386 : vector<2x32xf32>
    %388 = arith.addi %12, %c4_i32 : i32
    %389 = vector.broadcast %388 : i32 to vector<2x1xi32>
    %390 = arith.cmpi slt, %389, %11 : vector<2x1xi32>
    %cst_99 = arith.constant 0.000000e+00 : f32
    %391 = vector.shape_cast %390 : vector<2x1xi1> to vector<2x1xi1>
    %392 = vector.broadcast %391 : vector<2x1xi1> to vector<2x32xi1>
    %393 = vector.broadcast %cst_99 : f32 to vector<2x32xf32>
    %394 = arith.select %392, %387, %393 : vector<2x32xi1>, vector<2x32xf32>
    %395 = arith.index_cast %c4_i32 : i32 to index
    %c0_100 = arith.constant 0 : index
    %c0_101 = arith.constant 0 : index
    %396 = vector.load %arg6[%395, %c0_100, %c0_101] : memref<8x2x32xf32, #tpu.memory_space<vmem>>, vector<1x2x32xf32>
    %397 = vector.shape_cast %396 : vector<1x2x32xf32> to vector<2x32xf32>
    %398 = vector.shape_cast %394 : vector<2x32xf32> to vector<1x2x32xf32>
    tpu.vector_store %arg6[%395, %c0_100, %c0_101], %398 {strides = array<i32>} : memref<8x2x32xf32, #tpu.memory_space<vmem>>, vector<1x2x32xf32>,
    %399 = vector.shape_cast %390 : vector<2x1xi1> to vector<2x1xi1>
    %400 = vector.broadcast %399 : vector<2x1xi1> to vector<2x32xi1>
    %401 = arith.select %400, %387, %316 : vector<2x32xi1>, vector<2x32xf32>
    %402 = vector.shape_cast %390 : vector<2x1xi1> to vector<2x1xi1>
    %403 = vector.broadcast %402 : vector<2x1xi1> to vector<2x32xi1>
    %404 = arith.select %403, %384, %319 : vector<2x32xi1>, vector<2x32xf32>
    %c7_i32_102 = arith.constant 7 : i32
    %405 = arith.subi %c7_i32_102, %c4_i32 : i32
    %c0_103 = arith.constant 0 : index
    %406 = arith.index_cast %405 : i32 to index
    %c0_104 = arith.constant 0 : index
    %c0_105 = arith.constant 0 : index
    %407 = vector.load %arg2[%c0_103, %406, %c0_104, %c0_105] : memref<1x8x2x128xbf16, #tpu.memory_space<vmem>>, vector<1x1x2x128xbf16>
    %408 = vector.shape_cast %407 : vector<1x1x2x128xbf16> to vector<2x128xbf16>
    %409 = arith.extf %408 : vector<2x128xbf16> to vector<2x128xf32>
    %410 = vector.broadcast %10 : vector<1x128xf32> to vector<2x128xf32>
    %411 = arith.addf %409, %410 : vector<2x128xf32>
    %412 = arith.truncf %359 : vector<2x32xf32> to vector<2x32xbf16>
    %cst_106 = arith.constant dense<0.000000e+00> : vector<2x128xf32>
    %413 = tpu.matmul %412, %6, %cst_106 {dimension_numbers = #tpu.dot_dimension_numbers<[1], [0], [0], [1], [0, 0, 1, 1], [], []>} : vector<2x32xbf16>, vector<32x128xbf16>, vector<2x128xf32> -> vector<2x128xf32>
    %414 = arith.addf %411, %413 : vector<2x128xf32>
    %415 = vector.extract_strided_slice %414 {offsets = [0, 0], sizes = [2, 96], strides = [1, 1]} : vector<2x128xf32> to vector<2x96xf32>
    %416 = arith.negf %415 : vector<2x96xf32>
    %417 = math.exp %416 : vector<2x96xf32>
    %cst_107 = arith.constant 1.000000e+00 : f32
    %418 = vector.broadcast %cst_107 : f32 to vector<2x96xf32>
    %419 = arith.addf %418, %417 : vector<2x96xf32>
    %420 = arith.divf %418, %419 : vector<2x96xf32>
    %421 = vector.extract_strided_slice %414 {offsets = [0, 96], sizes = [2, 32], strides = [1, 1]} : vector<2x128xf32> to vector<2x32xf32>
    %422 = math.tanh %421 : vector<2x32xf32>
    %423 = vector.extract_strided_slice %420 {offsets = [0, 32], sizes = [2, 32], strides = [1, 1]} : vector<2x96xf32> to vector<2x32xf32>
    %424 = arith.mulf %423, %362 : vector<2x32xf32>
    %425 = vector.extract_strided_slice %420 {offsets = [0, 0], sizes = [2, 32], strides = [1, 1]} : vector<2x96xf32> to vector<2x32xf32>
    %426 = arith.mulf %425, %422 : vector<2x32xf32>
    %427 = arith.addf %424, %426 : vector<2x32xf32>
    %428 = vector.extract_strided_slice %420 {offsets = [0, 64], sizes = [2, 32], strides = [1, 1]} : vector<2x96xf32> to vector<2x32xf32>
    %429 = math.tanh %427 : vector<2x32xf32>
    %430 = arith.mulf %428, %429 : vector<2x32xf32>
    %431 = arith.addi %14, %405 : i32
    %432 = vector.broadcast %431 : i32 to vector<2x1xi32>
    %433 = arith.cmpi slt, %432, %11 : vector<2x1xi32>
    %cst_108 = arith.constant 0.000000e+00 : f32
    %434 = vector.shape_cast %433 : vector<2x1xi1> to vector<2x1xi1>
    %435 = vector.broadcast %434 : vector<2x1xi1> to vector<2x32xi1>
    %436 = vector.broadcast %cst_108 : f32 to vector<2x32xf32>
    %437 = arith.select %435, %430, %436 : vector<2x32xi1>, vector<2x32xf32>
    %438 = arith.index_cast %405 : i32 to index
    %c0_109 = arith.constant 0 : index
    %c0_110 = arith.constant 0 : index
    %439 = vector.load %arg7[%438, %c0_109, %c0_110] : memref<8x2x32xf32, #tpu.memory_space<vmem>>, vector<1x2x32xf32>
    %440 = vector.shape_cast %439 : vector<1x2x32xf32> to vector<2x32xf32>
    %441 = vector.shape_cast %437 : vector<2x32xf32> to vector<1x2x32xf32>
    tpu.vector_store %arg7[%438, %c0_109, %c0_110], %441 {strides = array<i32>} : memref<8x2x32xf32, #tpu.memory_space<vmem>>, vector<1x2x32xf32>,
    %442 = vector.shape_cast %433 : vector<2x1xi1> to vector<2x1xi1>
    %443 = vector.broadcast %442 : vector<2x1xi1> to vector<2x32xi1>
    %444 = arith.select %443, %430, %359 : vector<2x32xi1>, vector<2x32xf32>
    %445 = vector.shape_cast %433 : vector<2x1xi1> to vector<2x1xi1>
    %446 = vector.broadcast %445 : vector<2x1xi1> to vector<2x32xi1>
    %447 = arith.select %446, %427, %362 : vector<2x32xi1>, vector<2x32xf32>
    %c5_i32 = arith.constant 5 : i32
    %c0_111 = arith.constant 0 : index
    %448 = arith.index_cast %c5_i32 : i32 to index
    %c0_112 = arith.constant 0 : index
    %c0_113 = arith.constant 0 : index
    %449 = vector.load %arg1[%c0_111, %448, %c0_112, %c0_113] : memref<1x8x2x128xbf16, #tpu.memory_space<vmem>>, vector<1x1x2x128xbf16>
    %450 = vector.shape_cast %449 : vector<1x1x2x128xbf16> to vector<2x128xbf16>
    %451 = arith.extf %450 : vector<2x128xbf16> to vector<2x128xf32>
    %452 = vector.broadcast %8 : vector<1x128xf32> to vector<2x128xf32>
    %453 = arith.addf %451, %452 : vector<2x128xf32>
    %454 = arith.truncf %401 : vector<2x32xf32> to vector<2x32xbf16>
    %cst_114 = arith.constant dense<0.000000e+00> : vector<2x128xf32>
    %455 = tpu.matmul %454, %4, %cst_114 {dimension_numbers = #tpu.dot_dimension_numbers<[1], [0], [0], [1], [0, 0, 1, 1], [], []>} : vector<2x32xbf16>, vector<32x128xbf16>, vector<2x128xf32> -> vector<2x128xf32>
    %456 = arith.addf %453, %455 : vector<2x128xf32>
    %457 = vector.extract_strided_slice %456 {offsets = [0, 0], sizes = [2, 96], strides = [1, 1]} : vector<2x128xf32> to vector<2x96xf32>
    %458 = arith.negf %457 : vector<2x96xf32>
    %459 = math.exp %458 : vector<2x96xf32>
    %cst_115 = arith.constant 1.000000e+00 : f32
    %460 = vector.broadcast %cst_115 : f32 to vector<2x96xf32>
    %461 = arith.addf %460, %459 : vector<2x96xf32>
    %462 = arith.divf %460, %461 : vector<2x96xf32>
    %463 = vector.extract_strided_slice %456 {offsets = [0, 96], sizes = [2, 32], strides = [1, 1]} : vector<2x128xf32> to vector<2x32xf32>
    %464 = math.tanh %463 : vector<2x32xf32>
    %465 = vector.extract_strided_slice %462 {offsets = [0, 32], sizes = [2, 32], strides = [1, 1]} : vector<2x96xf32> to vector<2x32xf32>
    %466 = arith.mulf %465, %404 : vector<2x32xf32>
    %467 = vector.extract_strided_slice %462 {offsets = [0, 0], sizes = [2, 32], strides = [1, 1]} : vector<2x96xf32> to vector<2x32xf32>
    %468 = arith.mulf %467, %464 : vector<2x32xf32>
    %469 = arith.addf %466, %468 : vector<2x32xf32>
    %470 = vector.extract_strided_slice %462 {offsets = [0, 64], sizes = [2, 32], strides = [1, 1]} : vector<2x96xf32> to vector<2x32xf32>
    %471 = math.tanh %469 : vector<2x32xf32>
    %472 = arith.mulf %470, %471 : vector<2x32xf32>
    %473 = arith.addi %12, %c5_i32 : i32
    %474 = vector.broadcast %473 : i32 to vector<2x1xi32>
    %475 = arith.cmpi slt, %474, %11 : vector<2x1xi32>
    %cst_116 = arith.constant 0.000000e+00 : f32
    %476 = vector.shape_cast %475 : vector<2x1xi1> to vector<2x1xi1>
    %477 = vector.broadcast %476 : vector<2x1xi1> to vector<2x32xi1>
    %478 = vector.broadcast %cst_116 : f32 to vector<2x32xf32>
    %479 = arith.select %477, %472, %478 : vector<2x32xi1>, vector<2x32xf32>
    %480 = arith.index_cast %c5_i32 : i32 to index
    %c0_117 = arith.constant 0 : index
    %c0_118 = arith.constant 0 : index
    %481 = vector.load %arg6[%480, %c0_117, %c0_118] : memref<8x2x32xf32, #tpu.memory_space<vmem>>, vector<1x2x32xf32>
    %482 = vector.shape_cast %481 : vector<1x2x32xf32> to vector<2x32xf32>
    %483 = vector.shape_cast %479 : vector<2x32xf32> to vector<1x2x32xf32>
    tpu.vector_store %arg6[%480, %c0_117, %c0_118], %483 {strides = array<i32>} : memref<8x2x32xf32, #tpu.memory_space<vmem>>, vector<1x2x32xf32>,
    %484 = vector.shape_cast %475 : vector<2x1xi1> to vector<2x1xi1>
    %485 = vector.broadcast %484 : vector<2x1xi1> to vector<2x32xi1>
    %486 = arith.select %485, %472, %401 : vector<2x32xi1>, vector<2x32xf32>
    %487 = vector.shape_cast %475 : vector<2x1xi1> to vector<2x1xi1>
    %488 = vector.broadcast %487 : vector<2x1xi1> to vector<2x32xi1>
    %489 = arith.select %488, %469, %404 : vector<2x32xi1>, vector<2x32xf32>
    %c7_i32_119 = arith.constant 7 : i32
    %490 = arith.subi %c7_i32_119, %c5_i32 : i32
    %c0_120 = arith.constant 0 : index
    %491 = arith.index_cast %490 : i32 to index
    %c0_121 = arith.constant 0 : index
    %c0_122 = arith.constant 0 : index
    %492 = vector.load %arg2[%c0_120, %491, %c0_121, %c0_122] : memref<1x8x2x128xbf16, #tpu.memory_space<vmem>>, vector<1x1x2x128xbf16>
    %493 = vector.shape_cast %492 : vector<1x1x2x128xbf16> to vector<2x128xbf16>
    %494 = arith.extf %493 : vector<2x128xbf16> to vector<2x128xf32>
    %495 = vector.broadcast %10 : vector<1x128xf32> to vector<2x128xf32>
    %496 = arith.addf %494, %495 : vector<2x128xf32>
    %497 = arith.truncf %444 : vector<2x32xf32> to vector<2x32xbf16>
    %cst_123 = arith.constant dense<0.000000e+00> : vector<2x128xf32>
    %498 = tpu.matmul %497, %6, %cst_123 {dimension_numbers = #tpu.dot_dimension_numbers<[1], [0], [0], [1], [0, 0, 1, 1], [], []>} : vector<2x32xbf16>, vector<32x128xbf16>, vector<2x128xf32> -> vector<2x128xf32>
    %499 = arith.addf %496, %498 : vector<2x128xf32>
    %500 = vector.extract_strided_slice %499 {offsets = [0, 0], sizes = [2, 96], strides = [1, 1]} : vector<2x128xf32> to vector<2x96xf32>
    %501 = arith.negf %500 : vector<2x96xf32>
    %502 = math.exp %501 : vector<2x96xf32>
    %cst_124 = arith.constant 1.000000e+00 : f32
    %503 = vector.broadcast %cst_124 : f32 to vector<2x96xf32>
    %504 = arith.addf %503, %502 : vector<2x96xf32>
    %505 = arith.divf %503, %504 : vector<2x96xf32>
    %506 = vector.extract_strided_slice %499 {offsets = [0, 96], sizes = [2, 32], strides = [1, 1]} : vector<2x128xf32> to vector<2x32xf32>
    %507 = math.tanh %506 : vector<2x32xf32>
    %508 = vector.extract_strided_slice %505 {offsets = [0, 32], sizes = [2, 32], strides = [1, 1]} : vector<2x96xf32> to vector<2x32xf32>
    %509 = arith.mulf %508, %447 : vector<2x32xf32>
    %510 = vector.extract_strided_slice %505 {offsets = [0, 0], sizes = [2, 32], strides = [1, 1]} : vector<2x96xf32> to vector<2x32xf32>
    %511 = arith.mulf %510, %507 : vector<2x32xf32>
    %512 = arith.addf %509, %511 : vector<2x32xf32>
    %513 = vector.extract_strided_slice %505 {offsets = [0, 64], sizes = [2, 32], strides = [1, 1]} : vector<2x96xf32> to vector<2x32xf32>
    %514 = math.tanh %512 : vector<2x32xf32>
    %515 = arith.mulf %513, %514 : vector<2x32xf32>
    %516 = arith.addi %14, %490 : i32
    %517 = vector.broadcast %516 : i32 to vector<2x1xi32>
    %518 = arith.cmpi slt, %517, %11 : vector<2x1xi32>
    %cst_125 = arith.constant 0.000000e+00 : f32
    %519 = vector.shape_cast %518 : vector<2x1xi1> to vector<2x1xi1>
    %520 = vector.broadcast %519 : vector<2x1xi1> to vector<2x32xi1>
    %521 = vector.broadcast %cst_125 : f32 to vector<2x32xf32>
    %522 = arith.select %520, %515, %521 : vector<2x32xi1>, vector<2x32xf32>
    %523 = arith.index_cast %490 : i32 to index
    %c0_126 = arith.constant 0 : index
    %c0_127 = arith.constant 0 : index
    %524 = vector.load %arg7[%523, %c0_126, %c0_127] : memref<8x2x32xf32, #tpu.memory_space<vmem>>, vector<1x2x32xf32>
    %525 = vector.shape_cast %524 : vector<1x2x32xf32> to vector<2x32xf32>
    %526 = vector.shape_cast %522 : vector<2x32xf32> to vector<1x2x32xf32>
    tpu.vector_store %arg7[%523, %c0_126, %c0_127], %526 {strides = array<i32>} : memref<8x2x32xf32, #tpu.memory_space<vmem>>, vector<1x2x32xf32>,
    %527 = vector.shape_cast %518 : vector<2x1xi1> to vector<2x1xi1>
    %528 = vector.broadcast %527 : vector<2x1xi1> to vector<2x32xi1>
    %529 = arith.select %528, %515, %444 : vector<2x32xi1>, vector<2x32xf32>
    %530 = vector.shape_cast %518 : vector<2x1xi1> to vector<2x1xi1>
    %531 = vector.broadcast %530 : vector<2x1xi1> to vector<2x32xi1>
    %532 = arith.select %531, %512, %447 : vector<2x32xi1>, vector<2x32xf32>
    %c6_i32 = arith.constant 6 : i32
    %c0_128 = arith.constant 0 : index
    %533 = arith.index_cast %c6_i32 : i32 to index
    %c0_129 = arith.constant 0 : index
    %c0_130 = arith.constant 0 : index
    %534 = vector.load %arg1[%c0_128, %533, %c0_129, %c0_130] : memref<1x8x2x128xbf16, #tpu.memory_space<vmem>>, vector<1x1x2x128xbf16>
    %535 = vector.shape_cast %534 : vector<1x1x2x128xbf16> to vector<2x128xbf16>
    %536 = arith.extf %535 : vector<2x128xbf16> to vector<2x128xf32>
    %537 = vector.broadcast %8 : vector<1x128xf32> to vector<2x128xf32>
    %538 = arith.addf %536, %537 : vector<2x128xf32>
    %539 = arith.truncf %486 : vector<2x32xf32> to vector<2x32xbf16>
    %cst_131 = arith.constant dense<0.000000e+00> : vector<2x128xf32>
    %540 = tpu.matmul %539, %4, %cst_131 {dimension_numbers = #tpu.dot_dimension_numbers<[1], [0], [0], [1], [0, 0, 1, 1], [], []>} : vector<2x32xbf16>, vector<32x128xbf16>, vector<2x128xf32> -> vector<2x128xf32>
    %541 = arith.addf %538, %540 : vector<2x128xf32>
    %542 = vector.extract_strided_slice %541 {offsets = [0, 0], sizes = [2, 96], strides = [1, 1]} : vector<2x128xf32> to vector<2x96xf32>
    %543 = arith.negf %542 : vector<2x96xf32>
    %544 = math.exp %543 : vector<2x96xf32>
    %cst_132 = arith.constant 1.000000e+00 : f32
    %545 = vector.broadcast %cst_132 : f32 to vector<2x96xf32>
    %546 = arith.addf %545, %544 : vector<2x96xf32>
    %547 = arith.divf %545, %546 : vector<2x96xf32>
    %548 = vector.extract_strided_slice %541 {offsets = [0, 96], sizes = [2, 32], strides = [1, 1]} : vector<2x128xf32> to vector<2x32xf32>
    %549 = math.tanh %548 : vector<2x32xf32>
    %550 = vector.extract_strided_slice %547 {offsets = [0, 32], sizes = [2, 32], strides = [1, 1]} : vector<2x96xf32> to vector<2x32xf32>
    %551 = arith.mulf %550, %489 : vector<2x32xf32>
    %552 = vector.extract_strided_slice %547 {offsets = [0, 0], sizes = [2, 32], strides = [1, 1]} : vector<2x96xf32> to vector<2x32xf32>
    %553 = arith.mulf %552, %549 : vector<2x32xf32>
    %554 = arith.addf %551, %553 : vector<2x32xf32>
    %555 = vector.extract_strided_slice %547 {offsets = [0, 64], sizes = [2, 32], strides = [1, 1]} : vector<2x96xf32> to vector<2x32xf32>
    %556 = math.tanh %554 : vector<2x32xf32>
    %557 = arith.mulf %555, %556 : vector<2x32xf32>
    %558 = arith.addi %12, %c6_i32 : i32
    %559 = vector.broadcast %558 : i32 to vector<2x1xi32>
    %560 = arith.cmpi slt, %559, %11 : vector<2x1xi32>
    %cst_133 = arith.constant 0.000000e+00 : f32
    %561 = vector.shape_cast %560 : vector<2x1xi1> to vector<2x1xi1>
    %562 = vector.broadcast %561 : vector<2x1xi1> to vector<2x32xi1>
    %563 = vector.broadcast %cst_133 : f32 to vector<2x32xf32>
    %564 = arith.select %562, %557, %563 : vector<2x32xi1>, vector<2x32xf32>
    %565 = arith.index_cast %c6_i32 : i32 to index
    %c0_134 = arith.constant 0 : index
    %c0_135 = arith.constant 0 : index
    %566 = vector.load %arg6[%565, %c0_134, %c0_135] : memref<8x2x32xf32, #tpu.memory_space<vmem>>, vector<1x2x32xf32>
    %567 = vector.shape_cast %566 : vector<1x2x32xf32> to vector<2x32xf32>
    %568 = vector.shape_cast %564 : vector<2x32xf32> to vector<1x2x32xf32>
    tpu.vector_store %arg6[%565, %c0_134, %c0_135], %568 {strides = array<i32>} : memref<8x2x32xf32, #tpu.memory_space<vmem>>, vector<1x2x32xf32>,
    %569 = vector.shape_cast %560 : vector<2x1xi1> to vector<2x1xi1>
    %570 = vector.broadcast %569 : vector<2x1xi1> to vector<2x32xi1>
    %571 = arith.select %570, %557, %486 : vector<2x32xi1>, vector<2x32xf32>
    %572 = vector.shape_cast %560 : vector<2x1xi1> to vector<2x1xi1>
    %573 = vector.broadcast %572 : vector<2x1xi1> to vector<2x32xi1>
    %574 = arith.select %573, %554, %489 : vector<2x32xi1>, vector<2x32xf32>
    %c7_i32_136 = arith.constant 7 : i32
    %575 = arith.subi %c7_i32_136, %c6_i32 : i32
    %c0_137 = arith.constant 0 : index
    %576 = arith.index_cast %575 : i32 to index
    %c0_138 = arith.constant 0 : index
    %c0_139 = arith.constant 0 : index
    %577 = vector.load %arg2[%c0_137, %576, %c0_138, %c0_139] : memref<1x8x2x128xbf16, #tpu.memory_space<vmem>>, vector<1x1x2x128xbf16>
    %578 = vector.shape_cast %577 : vector<1x1x2x128xbf16> to vector<2x128xbf16>
    %579 = arith.extf %578 : vector<2x128xbf16> to vector<2x128xf32>
    %580 = vector.broadcast %10 : vector<1x128xf32> to vector<2x128xf32>
    %581 = arith.addf %579, %580 : vector<2x128xf32>
    %582 = arith.truncf %529 : vector<2x32xf32> to vector<2x32xbf16>
    %cst_140 = arith.constant dense<0.000000e+00> : vector<2x128xf32>
    %583 = tpu.matmul %582, %6, %cst_140 {dimension_numbers = #tpu.dot_dimension_numbers<[1], [0], [0], [1], [0, 0, 1, 1], [], []>} : vector<2x32xbf16>, vector<32x128xbf16>, vector<2x128xf32> -> vector<2x128xf32>
    %584 = arith.addf %581, %583 : vector<2x128xf32>
    %585 = vector.extract_strided_slice %584 {offsets = [0, 0], sizes = [2, 96], strides = [1, 1]} : vector<2x128xf32> to vector<2x96xf32>
    %586 = arith.negf %585 : vector<2x96xf32>
    %587 = math.exp %586 : vector<2x96xf32>
    %cst_141 = arith.constant 1.000000e+00 : f32
    %588 = vector.broadcast %cst_141 : f32 to vector<2x96xf32>
    %589 = arith.addf %588, %587 : vector<2x96xf32>
    %590 = arith.divf %588, %589 : vector<2x96xf32>
    %591 = vector.extract_strided_slice %584 {offsets = [0, 96], sizes = [2, 32], strides = [1, 1]} : vector<2x128xf32> to vector<2x32xf32>
    %592 = math.tanh %591 : vector<2x32xf32>
    %593 = vector.extract_strided_slice %590 {offsets = [0, 32], sizes = [2, 32], strides = [1, 1]} : vector<2x96xf32> to vector<2x32xf32>
    %594 = arith.mulf %593, %532 : vector<2x32xf32>
    %595 = vector.extract_strided_slice %590 {offsets = [0, 0], sizes = [2, 32], strides = [1, 1]} : vector<2x96xf32> to vector<2x32xf32>
    %596 = arith.mulf %595, %592 : vector<2x32xf32>
    %597 = arith.addf %594, %596 : vector<2x32xf32>
    %598 = vector.extract_strided_slice %590 {offsets = [0, 64], sizes = [2, 32], strides = [1, 1]} : vector<2x96xf32> to vector<2x32xf32>
    %599 = math.tanh %597 : vector<2x32xf32>
    %600 = arith.mulf %598, %599 : vector<2x32xf32>
    %601 = arith.addi %14, %575 : i32
    %602 = vector.broadcast %601 : i32 to vector<2x1xi32>
    %603 = arith.cmpi slt, %602, %11 : vector<2x1xi32>
    %cst_142 = arith.constant 0.000000e+00 : f32
    %604 = vector.shape_cast %603 : vector<2x1xi1> to vector<2x1xi1>
    %605 = vector.broadcast %604 : vector<2x1xi1> to vector<2x32xi1>
    %606 = vector.broadcast %cst_142 : f32 to vector<2x32xf32>
    %607 = arith.select %605, %600, %606 : vector<2x32xi1>, vector<2x32xf32>
    %608 = arith.index_cast %575 : i32 to index
    %c0_143 = arith.constant 0 : index
    %c0_144 = arith.constant 0 : index
    %609 = vector.load %arg7[%608, %c0_143, %c0_144] : memref<8x2x32xf32, #tpu.memory_space<vmem>>, vector<1x2x32xf32>
    %610 = vector.shape_cast %609 : vector<1x2x32xf32> to vector<2x32xf32>
    %611 = vector.shape_cast %607 : vector<2x32xf32> to vector<1x2x32xf32>
    tpu.vector_store %arg7[%608, %c0_143, %c0_144], %611 {strides = array<i32>} : memref<8x2x32xf32, #tpu.memory_space<vmem>>, vector<1x2x32xf32>,
    %612 = vector.shape_cast %603 : vector<2x1xi1> to vector<2x1xi1>
    %613 = vector.broadcast %612 : vector<2x1xi1> to vector<2x32xi1>
    %614 = arith.select %613, %600, %529 : vector<2x32xi1>, vector<2x32xf32>
    %615 = vector.shape_cast %603 : vector<2x1xi1> to vector<2x1xi1>
    %616 = vector.broadcast %615 : vector<2x1xi1> to vector<2x32xi1>
    %617 = arith.select %616, %597, %532 : vector<2x32xi1>, vector<2x32xf32>
    %c7_i32_145 = arith.constant 7 : i32
    %c0_146 = arith.constant 0 : index
    %618 = arith.index_cast %c7_i32_145 : i32 to index
    %c0_147 = arith.constant 0 : index
    %c0_148 = arith.constant 0 : index
    %619 = vector.load %arg1[%c0_146, %618, %c0_147, %c0_148] : memref<1x8x2x128xbf16, #tpu.memory_space<vmem>>, vector<1x1x2x128xbf16>
    %620 = vector.shape_cast %619 : vector<1x1x2x128xbf16> to vector<2x128xbf16>
    %621 = arith.extf %620 : vector<2x128xbf16> to vector<2x128xf32>
    %622 = vector.broadcast %8 : vector<1x128xf32> to vector<2x128xf32>
    %623 = arith.addf %621, %622 : vector<2x128xf32>
    %624 = arith.truncf %571 : vector<2x32xf32> to vector<2x32xbf16>
    %cst_149 = arith.constant dense<0.000000e+00> : vector<2x128xf32>
    %625 = tpu.matmul %624, %4, %cst_149 {dimension_numbers = #tpu.dot_dimension_numbers<[1], [0], [0], [1], [0, 0, 1, 1], [], []>} : vector<2x32xbf16>, vector<32x128xbf16>, vector<2x128xf32> -> vector<2x128xf32>
    %626 = arith.addf %623, %625 : vector<2x128xf32>
    %627 = vector.extract_strided_slice %626 {offsets = [0, 0], sizes = [2, 96], strides = [1, 1]} : vector<2x128xf32> to vector<2x96xf32>
    %628 = arith.negf %627 : vector<2x96xf32>
    %629 = math.exp %628 : vector<2x96xf32>
    %cst_150 = arith.constant 1.000000e+00 : f32
    %630 = vector.broadcast %cst_150 : f32 to vector<2x96xf32>
    %631 = arith.addf %630, %629 : vector<2x96xf32>
    %632 = arith.divf %630, %631 : vector<2x96xf32>
    %633 = vector.extract_strided_slice %626 {offsets = [0, 96], sizes = [2, 32], strides = [1, 1]} : vector<2x128xf32> to vector<2x32xf32>
    %634 = math.tanh %633 : vector<2x32xf32>
    %635 = vector.extract_strided_slice %632 {offsets = [0, 32], sizes = [2, 32], strides = [1, 1]} : vector<2x96xf32> to vector<2x32xf32>
    %636 = arith.mulf %635, %574 : vector<2x32xf32>
    %637 = vector.extract_strided_slice %632 {offsets = [0, 0], sizes = [2, 32], strides = [1, 1]} : vector<2x96xf32> to vector<2x32xf32>
    %638 = arith.mulf %637, %634 : vector<2x32xf32>
    %639 = arith.addf %636, %638 : vector<2x32xf32>
    %640 = vector.extract_strided_slice %632 {offsets = [0, 64], sizes = [2, 32], strides = [1, 1]} : vector<2x96xf32> to vector<2x32xf32>
    %641 = math.tanh %639 : vector<2x32xf32>
    %642 = arith.mulf %640, %641 : vector<2x32xf32>
    %643 = arith.addi %12, %c7_i32_145 : i32
    %644 = vector.broadcast %643 : i32 to vector<2x1xi32>
    %645 = arith.cmpi slt, %644, %11 : vector<2x1xi32>
    %cst_151 = arith.constant 0.000000e+00 : f32
    %646 = vector.shape_cast %645 : vector<2x1xi1> to vector<2x1xi1>
    %647 = vector.broadcast %646 : vector<2x1xi1> to vector<2x32xi1>
    %648 = vector.broadcast %cst_151 : f32 to vector<2x32xf32>
    %649 = arith.select %647, %642, %648 : vector<2x32xi1>, vector<2x32xf32>
    %650 = arith.index_cast %c7_i32_145 : i32 to index
    %c0_152 = arith.constant 0 : index
    %c0_153 = arith.constant 0 : index
    %651 = vector.load %arg6[%650, %c0_152, %c0_153] : memref<8x2x32xf32, #tpu.memory_space<vmem>>, vector<1x2x32xf32>
    %652 = vector.shape_cast %651 : vector<1x2x32xf32> to vector<2x32xf32>
    %653 = vector.shape_cast %649 : vector<2x32xf32> to vector<1x2x32xf32>
    tpu.vector_store %arg6[%650, %c0_152, %c0_153], %653 {strides = array<i32>} : memref<8x2x32xf32, #tpu.memory_space<vmem>>, vector<1x2x32xf32>,
    %654 = vector.shape_cast %645 : vector<2x1xi1> to vector<2x1xi1>
    %655 = vector.broadcast %654 : vector<2x1xi1> to vector<2x32xi1>
    %656 = arith.select %655, %642, %571 : vector<2x32xi1>, vector<2x32xf32>
    %657 = vector.shape_cast %645 : vector<2x1xi1> to vector<2x1xi1>
    %658 = vector.broadcast %657 : vector<2x1xi1> to vector<2x32xi1>
    %659 = arith.select %658, %639, %574 : vector<2x32xi1>, vector<2x32xf32>
    %c7_i32_154 = arith.constant 7 : i32
    %660 = arith.subi %c7_i32_154, %c7_i32_145 : i32
    %c0_155 = arith.constant 0 : index
    %661 = arith.index_cast %660 : i32 to index
    %c0_156 = arith.constant 0 : index
    %c0_157 = arith.constant 0 : index
    %662 = vector.load %arg2[%c0_155, %661, %c0_156, %c0_157] : memref<1x8x2x128xbf16, #tpu.memory_space<vmem>>, vector<1x1x2x128xbf16>
    %663 = vector.shape_cast %662 : vector<1x1x2x128xbf16> to vector<2x128xbf16>
    %664 = arith.extf %663 : vector<2x128xbf16> to vector<2x128xf32>
    %665 = vector.broadcast %10 : vector<1x128xf32> to vector<2x128xf32>
    %666 = arith.addf %664, %665 : vector<2x128xf32>
    %667 = arith.truncf %614 : vector<2x32xf32> to vector<2x32xbf16>
    %cst_158 = arith.constant dense<0.000000e+00> : vector<2x128xf32>
    %668 = tpu.matmul %667, %6, %cst_158 {dimension_numbers = #tpu.dot_dimension_numbers<[1], [0], [0], [1], [0, 0, 1, 1], [], []>} : vector<2x32xbf16>, vector<32x128xbf16>, vector<2x128xf32> -> vector<2x128xf32>
    %669 = arith.addf %666, %668 : vector<2x128xf32>
    %670 = vector.extract_strided_slice %669 {offsets = [0, 0], sizes = [2, 96], strides = [1, 1]} : vector<2x128xf32> to vector<2x96xf32>
    %671 = arith.negf %670 : vector<2x96xf32>
    %672 = math.exp %671 : vector<2x96xf32>
    %cst_159 = arith.constant 1.000000e+00 : f32
    %673 = vector.broadcast %cst_159 : f32 to vector<2x96xf32>
    %674 = arith.addf %673, %672 : vector<2x96xf32>
    %675 = arith.divf %673, %674 : vector<2x96xf32>
    %676 = vector.extract_strided_slice %669 {offsets = [0, 96], sizes = [2, 32], strides = [1, 1]} : vector<2x128xf32> to vector<2x32xf32>
    %677 = math.tanh %676 : vector<2x32xf32>
    %678 = vector.extract_strided_slice %675 {offsets = [0, 32], sizes = [2, 32], strides = [1, 1]} : vector<2x96xf32> to vector<2x32xf32>
    %679 = arith.mulf %678, %617 : vector<2x32xf32>
    %680 = vector.extract_strided_slice %675 {offsets = [0, 0], sizes = [2, 32], strides = [1, 1]} : vector<2x96xf32> to vector<2x32xf32>
    %681 = arith.mulf %680, %677 : vector<2x32xf32>
    %682 = arith.addf %679, %681 : vector<2x32xf32>
    %683 = vector.extract_strided_slice %675 {offsets = [0, 64], sizes = [2, 32], strides = [1, 1]} : vector<2x96xf32> to vector<2x32xf32>
    %684 = math.tanh %682 : vector<2x32xf32>
    %685 = arith.mulf %683, %684 : vector<2x32xf32>
    %686 = arith.addi %14, %660 : i32
    %687 = vector.broadcast %686 : i32 to vector<2x1xi32>
    %688 = arith.cmpi slt, %687, %11 : vector<2x1xi32>
    %cst_160 = arith.constant 0.000000e+00 : f32
    %689 = vector.shape_cast %688 : vector<2x1xi1> to vector<2x1xi1>
    %690 = vector.broadcast %689 : vector<2x1xi1> to vector<2x32xi1>
    %691 = vector.broadcast %cst_160 : f32 to vector<2x32xf32>
    %692 = arith.select %690, %685, %691 : vector<2x32xi1>, vector<2x32xf32>
    %693 = arith.index_cast %660 : i32 to index
    %c0_161 = arith.constant 0 : index
    %c0_162 = arith.constant 0 : index
    %694 = vector.load %arg7[%693, %c0_161, %c0_162] : memref<8x2x32xf32, #tpu.memory_space<vmem>>, vector<1x2x32xf32>
    %695 = vector.shape_cast %694 : vector<1x2x32xf32> to vector<2x32xf32>
    %696 = vector.shape_cast %692 : vector<2x32xf32> to vector<1x2x32xf32>
    tpu.vector_store %arg7[%693, %c0_161, %c0_162], %696 {strides = array<i32>} : memref<8x2x32xf32, #tpu.memory_space<vmem>>, vector<1x2x32xf32>,
    %697 = vector.shape_cast %688 : vector<2x1xi1> to vector<2x1xi1>
    %698 = vector.broadcast %697 : vector<2x1xi1> to vector<2x32xi1>
    %699 = arith.select %698, %685, %614 : vector<2x32xi1>, vector<2x32xf32>
    %700 = vector.shape_cast %688 : vector<2x1xi1> to vector<2x1xi1>
    %701 = vector.broadcast %700 : vector<2x1xi1> to vector<2x32xi1>
    %702 = arith.select %701, %682, %617 : vector<2x32xi1>, vector<2x32xf32>
    %c8_i32_163 = arith.constant 8 : i32
    %c0_164 = arith.constant 0 : index
    %c0_165 = arith.constant 0 : index
    %c0_166 = arith.constant 0 : index
    %703 = vector.load %arg8[%c0_164, %c0_165, %c0_166] : memref<2x2x32xf32, #tpu.memory_space<vmem>>, vector<1x2x32xf32>
    %704 = vector.shape_cast %703 : vector<1x2x32xf32> to vector<2x32xf32>
    %705 = vector.shape_cast %656 : vector<2x32xf32> to vector<1x2x32xf32>
    tpu.vector_store %arg8[%c0_164, %c0_165, %c0_166], %705 {strides = array<i32>} : memref<2x2x32xf32, #tpu.memory_space<vmem>>, vector<1x2x32xf32>,
    %c0_167 = arith.constant 0 : index
    %c0_168 = arith.constant 0 : index
    %c0_169 = arith.constant 0 : index
    %706 = vector.load %arg9[%c0_167, %c0_168, %c0_169] : memref<2x2x32xf32, #tpu.memory_space<vmem>>, vector<1x2x32xf32>
    %707 = vector.shape_cast %706 : vector<1x2x32xf32> to vector<2x32xf32>
    %708 = vector.shape_cast %659 : vector<2x32xf32> to vector<1x2x32xf32>
    tpu.vector_store %arg9[%c0_167, %c0_168, %c0_169], %708 {strides = array<i32>} : memref<2x2x32xf32, #tpu.memory_space<vmem>>, vector<1x2x32xf32>,
    %c1_170 = arith.constant 1 : index
    %c0_171 = arith.constant 0 : index
    %c0_172 = arith.constant 0 : index
    %709 = vector.load %arg8[%c1_170, %c0_171, %c0_172] : memref<2x2x32xf32, #tpu.memory_space<vmem>>, vector<1x2x32xf32>
    %710 = vector.shape_cast %709 : vector<1x2x32xf32> to vector<2x32xf32>
    %711 = vector.shape_cast %699 : vector<2x32xf32> to vector<1x2x32xf32>
    tpu.vector_store %arg8[%c1_170, %c0_171, %c0_172], %711 {strides = array<i32>} : memref<2x2x32xf32, #tpu.memory_space<vmem>>, vector<1x2x32xf32>,
    %c1_173 = arith.constant 1 : index
    %c0_174 = arith.constant 0 : index
    %c0_175 = arith.constant 0 : index
    %712 = vector.load %arg9[%c1_173, %c0_174, %c0_175] : memref<2x2x32xf32, #tpu.memory_space<vmem>>, vector<1x2x32xf32>
    %713 = vector.shape_cast %712 : vector<1x2x32xf32> to vector<2x32xf32>
    %714 = vector.shape_cast %702 : vector<2x32xf32> to vector<1x2x32xf32>
    tpu.vector_store %arg9[%c1_173, %c0_174, %c0_175], %714 {strides = array<i32>} : memref<2x2x32xf32, #tpu.memory_space<vmem>>, vector<1x2x32xf32>,
    return
  }
  func.func @transform_0(%arg0: i32) -> (i32, i32, i32, i32) {
    %c0_i32 = arith.constant 0 : i32
    %c0_i32_0 = arith.constant 0 : i32
    %c0_i32_1 = arith.constant 0 : i32
    %c0_i32_2 = arith.constant 0 : i32
    return %c0_i32, %arg0, %c0_i32_0, %c0_i32_1 : i32, i32, i32, i32
  }
  func.func @transform_1(%arg0: i32) -> (i32, i32, i32, i32) {
    %c0_i32 = arith.constant 0 : i32
    %0 = arith.subi %c0_i32, %arg0 : i32
    %c1_i32 = arith.constant 1 : i32
    %c0_i32_0 = arith.constant 0 : i32
    %c0_i32_1 = arith.constant 0 : i32
    %c0_i32_2 = arith.constant 0 : i32
    return %c1_i32, %0, %c0_i32_0, %c0_i32_1 : i32, i32, i32, i32
  }
  func.func @transform_2(%arg0: i32) -> (i32, i32, i32) {
    %c0_i32 = arith.constant 0 : i32
    %c0_i32_0 = arith.constant 0 : i32
    %c0_i32_1 = arith.constant 0 : i32
    %c0_i32_2 = arith.constant 0 : i32
    return %c0_i32, %c0_i32_0, %c0_i32_1 : i32, i32, i32
  }
  func.func @transform_3(%arg0: i32) -> (i32, i32, i32) {
    %c0_i32 = arith.constant 0 : i32
    %c0_i32_0 = arith.constant 0 : i32
    %c0_i32_1 = arith.constant 0 : i32
    %c0_i32_2 = arith.constant 0 : i32
    return %c0_i32, %c0_i32_0, %c0_i32_1 : i32, i32, i32
  }
  func.func @transform_4(%arg0: i32) -> (i32, i32) {
    %c0_i32 = arith.constant 0 : i32
    %c0_i32_0 = arith.constant 0 : i32
    %c0_i32_1 = arith.constant 0 : i32
    return %c0_i32, %c0_i32_0 : i32, i32
  }
  func.func @transform_5(%arg0: i32) -> (i32, i32, i32) {
    %c0_i32 = arith.constant 0 : i32
    %c0_i32_0 = arith.constant 0 : i32
    %c0_i32_1 = arith.constant 0 : i32
    return %arg0, %c0_i32, %c0_i32_0 : i32, i32, i32
  }
  func.func @transform_6(%arg0: i32) -> (i32, i32, i32) {
    %c0_i32 = arith.constant 0 : i32
    %0 = arith.subi %c0_i32, %arg0 : i32
    %c0_i32_0 = arith.constant 0 : i32
    %c0_i32_1 = arith.constant 0 : i32
    %c0_i32_2 = arith.constant 0 : i32
    return %0, %c0_i32_0, %c0_i32_1 : i32, i32, i32
  }
  func.func @transform_7(%arg0: i32) -> (i32, i32, i32) {
    %c0_i32 = arith.constant 0 : i32
    %c0_i32_0 = arith.constant 0 : i32
    %c0_i32_1 = arith.constant 0 : i32
    %c0_i32_2 = arith.constant 0 : i32
    return %c0_i32, %c0_i32_0, %c0_i32_1 : i32, i32, i32
  }
  func.func @transform_8(%arg0: i32) -> (i32, i32, i32) {
    %c0_i32 = arith.constant 0 : i32
    %c0_i32_0 = arith.constant 0 : i32
    %c0_i32_1 = arith.constant 0 : i32
    %c0_i32_2 = arith.constant 0 : i32
    return %c0_i32, %c0_i32_0, %c0_i32_1 : i32, i32, i32
  }
}

</mosaic_0001>

<bundles_post_ra>
// kernel: lstm_layer_forward.4
= control target key start
LH: loop header
LB: loop body
LE: loop exit
PB: predicated region body
PF: predicated region fallthrough
CT: control target
= control target key end

     0   :  { %14 = vsyncpa [#allocation3], 0  ;;  %v2571_v1 = vmov 0.0   ;;  %v172_v3 = vlaneseq  ;;  %vm2572_vm0 = vmmov 0   ;;  %vm67_vm1 = vcmask 254976   ;;  %s3357_s0 = inlined_call_operand.vmem [shape: bf16[2,8,2,128], index: 0, kind: input, shape index: {}, may-alias: {0,1}]   ;;  %s3358_s1 = inlined_call_operand.vmem [shape: bf16[2,8,2,128], index: 1, kind: input, shape index: {}, may-alias: {0,1}]   ;;  %s3359_s2 = inlined_call_operand.vmem [shape: bf16[2,32,128], index: 2, kind: input, shape index: {}]   ;;  %s3360_s3 = inlined_call_operand.vmem [shape: f32[2,1,128], index: 3, kind: input, shape index: {}]   ;;  %s3361_s4 = inlined_call_operand.vmem [shape: s32[2,1], index: 4, kind: input, shape index: {}]   ;;  %s3362_s5 = inlined_call_operand.vmem [shape: f32[8,2,32], index: 5, kind: output, shape index: {0}]   ;;  %s3363_s6 = inlined_call_operand.vmem [shape: f32[8,2,32], index: 6, kind: output, shape index: {1}]   ;;  %s3364_s7 = inlined_call_operand.hbm [shape: f32[2,2,32], index: 7, kind: output, shape index: {2}]   ;;  %s3365_s8 = inlined_call_operand.hbm [shape: f32[2,2,32], index: 8, kind: output, shape index: {3}]  }
   0x1   :  { %v2629_v0 = vld [vmem:[%s3359_s2] sm:$0xff]   ;;  %2245 = vmatprep.subr.bf16.mxu0 %v2571_v1  ;;  %2253 = vmatprep.subr.bf16.mxu1 %v2571_v1  ;;  %v2636_v2 = vld [vmem:[%s3359_s2 + $0x10] sm:$0xff]   ;;  %v2642_v4 = vld [vmem:[%s3359_s2 + $0x8] sm:$0xff]   ;;  %68 = vst.msk [vmem:[#allocation2] sm:$0x3] %vm67_vm1, %v2571_v1 }
   0x2   :  { %2246 = vmatpush3.bf16.msra.mxu0 %v2629_v0  ;;  %2249 = vmatprep.mubr.msk.bf16.mxu0 %vm2572_vm0, %v2571_v1  ;;  %v2651_v5 = vld [vmem:[%s3359_s2 + $0x18] sm:$0xff]   ;;  %69 = vst.msk [vmem:[#allocation2 + $0x2] sm:$0x3] %vm67_vm1, %v2571_v1  ;;  %70 = vst.msk [vmem:[#allocation4] sm:$0x3] %vm67_vm1, %v2571_v1  ;;  %v173_v8 = vshrl.u32 %v172_v3, 7 }
   0x3   :  { %2254 = vmatpush3.bf16.msra.mxu1 %v2636_v2  ;;  %2247 = vmatprep.subr.bf16.mxu0 %v2571_v1  ;;  %71 = vst.msk [vmem:[#allocation4 + $0x2] sm:$0x3] %vm67_vm1, %v2571_v1  ;;  %v2573_v6 = vmov 1983009808  }
   0x4   :  { %2255 = vmatprep.subr.bf16.mxu1 %v2571_v1  ;;  %2257 = vmatprep.mubr.msk.bf16.mxu1 %vm2572_vm0, %v2571_v1  ;;  %v170_v7 = vunpack.c.l.s4 %v2573_v6 }
   0x5   :  { %15 = vsyncpa [#allocation5], 0  ;;  %vm116_vm2 = vcmask 261120   ;;  %s2574_s13 = smov 32   ;;  %v94_v19 = vld [vmem:[%s3357_s0] sm:$0x1] }
   0x6   :  { %2248 = vmatpush3.bf16.msra.mxu0 %v2642_v4  ;;  %v171_v9 = vunpack.c.0.s8 %v170_v7  ;;  %v2120_v20 = vld [vmem:[%s3358_s1 + $0xf] sm:$0x1]  ;;  %v95_v21 = vunpack.c.l.bf16 %v94_v19  ;;  %v2711_v23 = vld [vmem:[%s3360_s3] ss:$0 sm:$0xff]  ;;  %v2716_v24 = vld [vmem:[%s3360_s3 + $0x1] ss:$0 sm:$0xff] }
   0x7   :  { %2256 = vmatpush3.bf16.msra.mxu1 %v2651_v5  ;;  %2261 = vmatprep.subr.bf16.mxu0 %v2571_v1  ;;  %v232_v22 = vunpack.c.l.bf16 %v2120_v20  ;;  %v2575_v51 = vmov 0   ;;  %v2729_v60 = vld [vmem:[%s3361_s4] sm:$0x3]  ;;  %s2576_s4 = smov 64   ;;  %s2577_s24 = smov 96  }
   0x8   :  { %2269 = vmatprep.subr.bf16.mxu1 %v2571_v1  ;;  %v2668_v10 = vsub.s32 %v171_v9, %v173_v8  ;;  %v2670_v11 = vld [vmem:[#allocation2] sm:$0x3]  ;;  %v102_v25 = vadd.f32 %v2711_v23, %v95_v21  ;;  %2384 = vset.pattern.permute.xlu1 %v2575_v51  ;;  %vm2119_vm3 = vcmp.gt.s32.totalorder %v2729_v60, 0  ;;  %vm2126_vm4 = vcmp.gt.s32.totalorder %v2729_v60, 7 }
   0x9   :  { %v2672_v12 = vld [vmem:[#allocation2 + $0x2] sm:$0x3]  ;;  %v2674_v13 = vld [vmem:[#allocation4] sm:$0x3]  ;;  %v103_v14 = vpack.c.bf16 %v2670_v11, %v2670_v11  ;;  %v239_v26 = vadd.f32 %v2716_v24, %v232_v22  ;;  %2383 = vset.pattern.permute.xlu0 %v2575_v51  ;;  %v2734_v62 = vsel %vm2119_vm3, 1, %v2575_v51  ;;  %v2740_v3 = vsel %vm2126_vm4, 1, %v2575_v51 }
   0xa   :  { %v240_v15 = vpack.c.bf16 %v2672_v12, %v2672_v12  ;;  %v175_v16 = vrot.slane %v2674_v13, %v2668_v10  ;;  %v2682_v17 = vld [vmem:[#allocation4 + $0x2] sm:$0x3]  ;;  %vm2131_vm7 = vcmp.gt.s32.totalorder %v2729_v60, 1  ;;  %vm2136_vm8 = vcmp.gt.s32.totalorder %v2729_v60, 6 }
   0xb   :  { %2250 = vmatmul.mubr.msk.bf16.vlgmr.msra.gmra.mrb[0].mxu0 %vm116_vm2, %v103_v14  ;;  %v311_v18 = vrot.slane %v2682_v17, %v2668_v10  ;;  %vm2141_vm11 = vcmp.gt.s32.totalorder %v2729_v60, 2  ;;  %vm2146_vm12 = vcmp.gt.s32.totalorder %v2729_v60, 5  ;;  %vm2151_vm15 = vcmp.gt.s32.totalorder %v2729_v60, 3 }
   0xc   :  { %2258 = vmatmul.mubr.msk.bf16.vlgmr.msra.gmra.mrb[0].mxu1 %vm116_vm2, %v240_v15  ;;  %176 = vrot.lane.b32.xlu1 %v175_v16, %s2574_s13  ;;  %vm2156_vm3 = vcmp.gt.s32.totalorder %v2729_v60, 4 }
   0xd   :  { %2262 = vmatpush3.bf16.msra.mxu0 %v2629_v0  ;;  %2270 = vmatpush3.bf16.msra.mxu1 %v2636_v2 }
   0xe   :  { %2263 = vmatprep.subr.bf16.mxu0 %v2571_v1  ;;  %2265 = vmatprep.mubr.msk.bf16.mxu0 %vm2572_vm0, %v2571_v1 }
   0xf   :  { %2271 = vmatprep.subr.bf16.mxu1 %v2571_v1  ;;  %2273 = vmatprep.mubr.msk.bf16.mxu1 %vm2572_vm0, %v2571_v1 }
  0x10   :  { %312 = vrot.lane.b32.xlu1 %v311_v18, %s2574_s13 }
  0x11   :  { %2264 = vmatpush3.bf16.msra.mxu0 %v2642_v4  ;;  %2272 = vmatpush3.bf16.msra.mxu1 %v2651_v5 }
  0x12   :  { %2277 = vmatprep.subr.bf16.mxu0 %v2571_v1  ;;  %2285 = vmatprep.subr.bf16.mxu1 %v2571_v1 }
  0x7e   :  { %v177_v52 = vpop.permute.xlu1 %176 }
  0x82   :  { %v313_v54 = vpop.permute.xlu1 %312 }
  0xde   :  { %v154_v27 = vpop.f32.mrb[0].mxu0 }
  0xdf   :  { %v290_v28 = vpop.f32.mrb[0].mxu1  ;;  %v160_v29 = vadd.f32 %v154_v27, %v102_v25  ;;  %v2251_v30 = vpop.f32.mrb[1].mxu0 }
  0xe0   :  { %v296_v31 = vadd.f32 %v290_v28, %v239_v26  ;;  %v2259_v32 = vpop.f32.mrb[1].mxu1  ;;  %v157_v33 = vpop.f32.mrb[2].mxu0 }
  0xe1   :  { %v293_v34 = vpop.f32.mrb[2].mxu1  ;;  %2389 = vtanh.f32 %v160_v29  ;;  %v2252_v35 = vpop.f32.mrb[3].mxu0  ;;  %v2118_v39 = vmul.f32 -1.442695, %v160_v29 }
  0xe2   :  { %v2260_v36 = vpop.f32.mrb[3].mxu1  ;;  %2391 = vtanh.f32 %v296_v31  ;;  %v2125_v40 = vmul.f32 -1.442695, %v296_v31  ;;  %v2133_v31 = vld [vmem:[%s3358_s1 + $0xe] sm:$0x1] }
  0xe3   :  { %2393 = vpow2.f32 %v2118_v39  ;;  %v488_v33 = vunpack.c.l.bf16 %v2133_v31 }
  0xe4   :  { %2395 = vpow2.f32 %v2125_v40 }
  0xeb   :  { %v2390_v37 = vpop.eup %2389 }
  0xec   :  { %181 = vrot.lane.b32.xlu0 %v2390_v37, %s2574_s13  ;;  %v2392_v38 = vpop.eup %2391  ;;  %v489_v37 = vadd.f32 %v2716_v24, %v488_v33 }
  0xed   :  { %v2394_v41 = vpop.eup %2393 }
  0xee   :  { %v164_v42 = vadd.f32 1.0, %v2394_v41  ;;  %v2396_v43 = vpop.eup %2395 }
  0xef   :  { %v300_v44 = vadd.f32 1.0, %v2396_v43 }
  0xf0   :  { %317 = vrot.lane.b32.xlu0 %v2392_v38, %s2574_s13  ;;  %2397 = vrcp.f32 %v164_v42 }
  0xf1   :  { %2399 = vrcp.f32 %v300_v44 }
  0xfa   :  { %v2398_v45 = vpop.eup %2397 }
  0xfb   :  { %v2400_v48 = vpop.eup %2399  ;;  %v179_v53 = vmul.f32 %v2398_v45, %v177_v52 }
  0xfc   :  { %v315_v57 = vmul.f32 %v2400_v48, %v313_v54 }
 0x15e   :  { %v182_v46 = vpop.permute.xlu0 %181 }
 0x15f   :  { %v184_v47 = vmul.f32 %v2398_v45, %v182_v46 }
 0x161   :  { %186 = vrot.lane.b32.xlu0 %v184_v47, %s2574_s13 }
 0x162   :  { %v318_v49 = vpop.permute.xlu0 %317 }
 0x163   :  { %v320_v50 = vmul.f32 %v2400_v48, %v318_v49 }
 0x165   :  { %322 = vrot.lane.b32.xlu1 %v320_v50, %s2574_s13 }
 0x1d3   :  { %v187_v55 = vpop.permute.xlu0 %186 }
 0x1d4   :  { %v189_v56 = vadd.f32 %v187_v55, %v179_v53 }
 0x1d6   :  { %2401 = vtanh.f32 %v189_v56  ;;  %v225_v15 = vrot.slane %v189_v56, %v2668_v10 }
 0x1d7   :  { %v323_v58 = vpop.permute.xlu1 %322 }
 0x1d8   :  { %v325_v59 = vadd.f32 %v323_v58, %v315_v57 }
 0x1da   :  { %2403 = vtanh.f32 %v325_v59  ;;  %v362_v18 = vrot.slane %v325_v59, %v2668_v10 }
 0x1e0   :  { %v2402_v61 = vpop.eup %2401 }
 0x1e1   :  { %192 = vrot.lane.b32.xlu0 %v2402_v61, %s2574_s13 }
 0x1e4   :  { %v2404_v63 = vpop.eup %2403 }
 0x1e5   :  { %328 = vrot.lane.b32.xlu1 %v2404_v63, %s2574_s13  ;;  %200 = vperm.xlu0 %2383, %v2734_v62  }
 0x1e9   :  { %337 = vperm.xlu1 %2384, %v2740_v3  }
 0x253   :  { %v193_v6 = vpop.permute.xlu0 %192 }
 0x254   :  { %v195_v7 = vmul.f32 %v2398_v45, %v193_v6 }
 0x256   :  { %v210_v8 = vrot.slane %v195_v7, %v2668_v10 }
 0x257   :  { %v329_v9 = vpop.permute.xlu1 %328 }
 0x258   :  { %v331_v14 = vmul.f32 %v2400_v48, %v329_v9  ;;  %211 = vrot.lane.b32.xlu1 %v210_v8, %s2576_s4 }
 0x25a   :  { %v347_v16 = vrot.slane %v331_v14, %v2668_v10 }
 0x25c   :  { %348 = vrot.lane.b32.xlu0 %v347_v16, %s2576_s4  ;;  %226 = vrot.lane.b32.xlu1 %v225_v15, %s2577_s24 }
 0x260   :  { %363 = vrot.lane.b32.xlu0 %v362_v18, %s2577_s24 }
 0x264   :  { %v201_v20 = vpop.permute.xlu0 %200 }
 0x265   :  { %vm202_vm5 = vcmp.eq.s32.totalorder %v201_v20, 1 }
 0x268   :  { %v338_v19 = vpop.permute.xlu1 %337 }
 0x269   :  { %vm339_vm6 = vcmp.eq.s32.totalorder %v338_v19, 1 }
 0x2ca   :  { %v212_v21 = vpop.permute.xlu1 %211 }
 0x2cb   :  { %v214_v22 = vsel %vm202_vm5, %v212_v21, 0.0  ;;  %v2754_v25 = vsel %vm202_vm5, %v212_v21, %v2670_v11 }
 0x2cc   :  { %216 = vst.msk [vmem:[%s3362_s5] sm:$0x3] %vm67_vm1, %v214_v22  ;;  %v371_v26 = vpack.c.bf16 %v2754_v25, %v2754_v25  ;;  %v2816_v22 = vsel %vm2131_vm7, 1, %v2575_v51 }
 0x2ce   :  { %2266 = vmatmul.mubr.msk.bf16.vlgmr.msra.gmra.mrb[4].mxu0 %vm116_vm2, %v371_v26  ;;  %v349_v27 = vpop.permute.xlu0 %348  ;;  %v227_v45 = vpop.permute.xlu1 %226 }
 0x2cf   :  { %v351_v28 = vsel %vm339_vm6, %v349_v27, 0.0  ;;  %v2766_v29 = vsel %vm339_vm6, %v349_v27, %v2672_v12  ;;  %2278 = vmatpush3.bf16.msra.mxu0 %v2629_v0  ;;  %2281 = vmatprep.mubr.msk.bf16.mxu0 %vm2572_vm0, %v2571_v1  ;;  %v2128_v12 = vld [vmem:[%s3357_s0 + $0x1] sm:$0x1]  ;;  %v2797_v47 = vsel %vm202_vm5, %v227_v45, %v2674_v13  ;;  %v2822_v27 = vsel %vm2136_vm8, 1, %v2575_v51  ;;  %v2143_v45 = vld [vmem:[%s3358_s1 + $0xd] sm:$0x1] }
 0x2d0   :  { %2127 = vst.msk [vmem:[%s3363_s6 + $0xe] sm:$0x3] %vm67_vm1, %v351_v28  ;;  %v490_v11 = vpack.c.bf16 %v2766_v29, %v2766_v29  ;;  %2279 = vmatprep.subr.bf16.mxu0 %v2571_v1  ;;  %v369_v30 = vunpack.c.l.bf16 %v2128_v12  ;;  %v430_v49 = vrot.slane %v2797_v47, %v2668_v10 }
 0x2d2   :  { %2274 = vmatmul.mubr.msk.bf16.vlgmr.msra.gmra.mrb[4].mxu1 %vm116_vm2, %v490_v11  ;;  %v370_v32 = vadd.f32 %v2711_v23, %v369_v30  ;;  %v364_v48 = vpop.permute.xlu0 %363 }
 0x2d3   :  { %2280 = vmatpush3.bf16.msra.mxu0 %v2642_v4  ;;  %2286 = vmatpush3.bf16.msra.mxu1 %v2636_v2  ;;  %v2804_v52 = vsel %vm339_vm6, %v364_v48, %v2682_v17  ;;  %v726_v48 = vunpack.c.l.bf16 %v2143_v45 }
 0x2d4   :  { %2287 = vmatprep.subr.bf16.mxu1 %v2571_v1  ;;  %2289 = vmatprep.mubr.msk.bf16.mxu1 %vm2572_vm0, %v2571_v1  ;;  %v549_v53 = vrot.slane %v2804_v52, %v2668_v10 }
 0x2d5   :  { %2293 = vmatprep.subr.bf16.mxu0 %v2571_v1 }
 0x2d7   :  { %2288 = vmatpush3.bf16.msra.mxu1 %v2651_v5 }
 0x2d8   :  { %2301 = vmatprep.subr.bf16.mxu1 %v2571_v1 }
 0x3a1   :  { %v409_v34 = vpop.f32.mrb[4].mxu0 }
 0x3a2   :  { %v415_v35 = vadd.f32 %v409_v34, %v370_v32  ;;  %v2267_v36 = vpop.f32.mrb[5].mxu0 }
 0x3a3   :  { %v412_v38 = vpop.f32.mrb[6].mxu0 }
 0x3a4   :  { %2405 = vtanh.f32 %v415_v35  ;;  %v2268_v39 = vpop.f32.mrb[7].mxu0  ;;  %v2130_v13 = vmul.f32 -1.442695, %v415_v35 }
 0x3a5   :  { %v528_v40 = vpop.f32.mrb[4].mxu1 }
 0x3a6   :  { %v534_v41 = vadd.f32 %v528_v40, %v489_v37  ;;  %v2275_v42 = vpop.f32.mrb[5].mxu1 }
 0x3a7   :  { %v531_v43 = vpop.f32.mrb[6].mxu1 }
 0x3a8   :  { %2407 = vtanh.f32 %v534_v41  ;;  %v2276_v44 = vpop.f32.mrb[7].mxu1  ;;  %v2135_v54 = vmul.f32 -1.442695, %v534_v41 }
 0x3a9   :  { %2409 = vpow2.f32 %v2130_v13  ;;  %v727_v13 = vadd.f32 %v2716_v24, %v726_v48 }
 0x3aa   :  { %2411 = vpow2.f32 %v2135_v54 }
 0x3ae   :  { %v2406_v46 = vpop.eup %2405 }
 0x3af   :  { %436 = vrot.lane.b32.xlu1 %v2406_v46, %s2574_s13 }
 0x3b2   :  { %v2408_v50 = vpop.eup %2407 }
 0x3b3   :  { %555 = vrot.lane.b32.xlu0 %v2408_v50, %s2574_s13  ;;  %431 = vrot.lane.b32.xlu1 %v430_v49, %s2574_s13  ;;  %v2410_v55 = vpop.eup %2409 }
 0x3b4   :  { %v419_v56 = vadd.f32 1.0, %v2410_v55  ;;  %v2412_v57 = vpop.eup %2411 }
 0x3b5   :  { %v538_v58 = vadd.f32 1.0, %v2412_v57 }
 0x3b6   :  { %2413 = vrcp.f32 %v419_v56 }
 0x3b7   :  { %550 = vrot.lane.b32.xlu0 %v549_v53, %s2574_s13  ;;  %2415 = vrcp.f32 %v538_v58 }
 0x3c0   :  { %v2414_v17 = vpop.eup %2413 }
 0x3c1   :  { %v2416_v63 = vpop.eup %2415 }
 0x421   :  { %v437_v59 = vpop.permute.xlu1 %436 }
 0x422   :  { %v439_v61 = vmul.f32 %v2414_v17, %v437_v59 }
 0x424   :  { %441 = vrot.lane.b32.xlu1 %v439_v61, %s2574_s13 }
 0x425   :  { %v556_v6 = vpop.permute.xlu0 %555  ;;  %v432_v8 = vpop.permute.xlu1 %431 }
 0x426   :  { %v558_v7 = vmul.f32 %v2416_v63, %v556_v6  ;;  %v434_v9 = vmul.f32 %v2414_v17, %v432_v8 }
 0x428   :  { %560 = vrot.lane.b32.xlu0 %v558_v7, %s2574_s13 }
 0x429   :  { %v551_v14 = vpop.permute.xlu0 %550 }
 0x42a   :  { %v553_v18 = vmul.f32 %v2416_v63, %v551_v14 }
 0x496   :  { %v442_v15 = vpop.permute.xlu1 %441 }
 0x497   :  { %v444_v16 = vadd.f32 %v442_v15, %v434_v9 }
 0x499   :  { %2417 = vtanh.f32 %v444_v16  ;;  %v481_v32 = vrot.slane %v444_v16, %v2668_v10 }
 0x49a   :  { %v561_v19 = vpop.permute.xlu0 %560 }
 0x49b   :  { %v563_v20 = vadd.f32 %v561_v19, %v553_v18 }
 0x49d   :  { %2419 = vtanh.f32 %v563_v20  ;;  %v600_v34 = vrot.slane %v563_v20, %v2668_v10 }
 0x4a3   :  { %v2418_v21 = vpop.eup %2417 }
 0x4a4   :  { %447 = vrot.lane.b32.xlu1 %v2418_v21, %s2574_s13 }
 0x4a7   :  { %v2420_v26 = vpop.eup %2419 }
 0x4a8   :  { %566 = vrot.lane.b32.xlu0 %v2420_v26, %s2574_s13  ;;  %456 = vperm.xlu1 %2384, %v2816_v22  }
 0x4ac   :  { %575 = vperm.xlu0 %2383, %v2822_v27  }
 0x516   :  { %v448_v28 = vpop.permute.xlu1 %447 }
 0x517   :  { %v450_v11 = vmul.f32 %v2414_v17, %v448_v28 }
 0x519   :  { %v466_v12 = vrot.slane %v450_v11, %v2668_v10 }
 0x51a   :  { %v567_v30 = vpop.permute.xlu0 %566 }
 0x51b   :  { %v569_v31 = vmul.f32 %v2416_v63, %v567_v30  ;;  %467 = vrot.lane.b32.xlu1 %v466_v12, %s2576_s4 }
 0x51d   :  { %v585_v33 = vrot.slane %v569_v31, %v2668_v10 }
 0x51f   :  { %586 = vrot.lane.b32.xlu0 %v585_v33, %s2576_s4  ;;  %482 = vrot.lane.b32.xlu1 %v481_v32, %s2577_s24 }
 0x523   :  { %601 = vrot.lane.b32.xlu0 %v600_v34, %s2577_s24 }
 0x527   :  { %v457_v35 = vpop.permute.xlu1 %456 }
 0x528   :  { %vm458_vm9 = vcmp.eq.s32.totalorder %v457_v35, 1 }
 0x52b   :  { %v576_v36 = vpop.permute.xlu0 %575 }
 0x52c   :  { %vm577_vm10 = vcmp.eq.s32.totalorder %v576_v36, 1 }
 0x58d   :  { %v468_v37 = vpop.permute.xlu1 %467 }
 0x58e   :  { %v470_v38 = vsel %vm458_vm9, %v468_v37, 0.0  ;;  %v2836_v39 = vsel %vm458_vm9, %v468_v37, %v2754_v25 }
 0x58f   :  { %2132 = vst.msk [vmem:[%s3362_s5 + $0x2] sm:$0x3] %vm67_vm1, %v470_v38  ;;  %v609_v40 = vpack.c.bf16 %v2836_v39, %v2836_v39 }
 0x591   :  { %v587_v41 = vpop.permute.xlu0 %586  ;;  %2282 = vmatmul.mubr.msk.bf16.vlgmr.msra.gmra.mrb[8].mxu0 %vm116_vm2, %v609_v40  ;;  %v483_v61 = vpop.permute.xlu1 %482 }
 0x592   :  { %v589_v42 = vsel %vm577_vm10, %v587_v41, 0.0  ;;  %v2848_v43 = vsel %vm577_vm10, %v587_v41, %v2766_v29  ;;  %2294 = vmatpush3.bf16.msra.mxu0 %v2629_v0  ;;  %2297 = vmatprep.mubr.msk.bf16.mxu0 %vm2572_vm0, %v2571_v1  ;;  %v2138_v29 = vld [vmem:[%s3357_s0 + $0x2] sm:$0x1]  ;;  %v2879_v6 = vsel %vm458_vm9, %v483_v61, %v2797_v47  ;;  %v2898_v41 = vsel %vm2141_vm11, 1, %v2575_v51 }
 0x593   :  { %2137 = vst.msk [vmem:[%s3363_s6 + $0xc] sm:$0x3] %vm67_vm1, %v589_v42  ;;  %v728_v25 = vpack.c.bf16 %v2848_v43, %v2848_v43  ;;  %2295 = vmatprep.subr.bf16.mxu0 %v2571_v1  ;;  %v607_v44 = vunpack.c.l.bf16 %v2138_v29  ;;  %v668_v8 = vrot.slane %v2879_v6, %v2668_v10 }
 0x595   :  { %2290 = vmatmul.mubr.msk.bf16.vlgmr.msra.gmra.mrb[8].mxu1 %vm116_vm2, %v728_v25  ;;  %v608_v46 = vadd.f32 %v2711_v23, %v607_v44  ;;  %v602_v7 = vpop.permute.xlu0 %601  ;;  %v2904_v25 = vsel %vm2146_vm12, 1, %v2575_v51 }
 0x596   :  { %2296 = vmatpush3.bf16.msra.mxu0 %v2642_v4  ;;  %2302 = vmatpush3.bf16.msra.mxu1 %v2636_v2  ;;  %v2886_v14 = vsel %vm577_vm10, %v602_v7, %v2804_v52  ;;  %v2153_v7 = vld [vmem:[%s3358_s1 + $0xc] sm:$0x1] }
 0x597   :  { %2303 = vmatprep.subr.bf16.mxu1 %v2571_v1  ;;  %2305 = vmatprep.mubr.msk.bf16.mxu1 %vm2572_vm0, %v2571_v1  ;;  %v787_v15 = vrot.slane %v2886_v14, %v2668_v10 }
 0x598   :  { %2309 = vmatprep.subr.bf16.mxu0 %v2571_v1 }
 0x59a   :  { %2304 = vmatpush3.bf16.msra.mxu1 %v2651_v5 }
 0x59b   :  { %2317 = vmatprep.subr.bf16.mxu1 %v2571_v1 }
 0x664   :  { %v647_v49 = vpop.f32.mrb[8].mxu0 }
 0x665   :  { %v653_v50 = vadd.f32 %v647_v49, %v608_v46  ;;  %v2283_v53 = vpop.f32.mrb[9].mxu0 }
 0x666   :  { %v650_v54 = vpop.f32.mrb[10].mxu0 }
 0x667   :  { %2421 = vtanh.f32 %v653_v50  ;;  %v2284_v55 = vpop.f32.mrb[11].mxu0  ;;  %v2140_v47 = vmul.f32 -1.442695, %v653_v50 }
 0x668   :  { %v766_v56 = vpop.f32.mrb[8].mxu1 }
 0x669   :  { %v772_v57 = vadd.f32 %v766_v56, %v727_v13  ;;  %v2291_v58 = vpop.f32.mrb[9].mxu1 }
 0x66a   :  { %v769_v17 = vpop.f32.mrb[10].mxu1 }
 0x66b   :  { %2423 = vtanh.f32 %v772_v57  ;;  %v2292_v59 = vpop.f32.mrb[11].mxu1  ;;  %v2145_v16 = vmul.f32 -1.442695, %v772_v57 }
 0x66c   :  { %2425 = vpow2.f32 %v2140_v47 }
 0x66d   :  { %2427 = vpow2.f32 %v2145_v16 }
 0x671   :  { %v2422_v63 = vpop.eup %2421 }
 0x672   :  { %674 = vrot.lane.b32.xlu1 %v2422_v63, %s2574_s13 }
 0x675   :  { %v2424_v9 = vpop.eup %2423 }
 0x676   :  { %793 = vrot.lane.b32.xlu0 %v2424_v9, %s2574_s13  ;;  %669 = vrot.lane.b32.xlu1 %v668_v8, %s2574_s13  ;;  %v2426_v18 = vpop.eup %2425  ;;  %v964_v9 = vunpack.c.l.bf16 %v2153_v7 }
 0x677   :  { %v657_v19 = vadd.f32 1.0, %v2426_v18  ;;  %v2428_v20 = vpop.eup %2427 }
 0x678   :  { %v776_v21 = vadd.f32 1.0, %v2428_v20  ;;  %v965_v18 = vadd.f32 %v2716_v24, %v964_v9 }
 0x679   :  { %2429 = vrcp.f32 %v657_v19 }
 0x67a   :  { %788 = vrot.lane.b32.xlu0 %v787_v15, %s2574_s13  ;;  %2431 = vrcp.f32 %v776_v21 }
 0x683   :  { %v2430_v52 = vpop.eup %2429 }
 0x684   :  { %v2432_v11 = vpop.eup %2431 }
 0x6e4   :  { %v675_v26 = vpop.permute.xlu1 %674 }
 0x6e5   :  { %v677_v28 = vmul.f32 %v2430_v52, %v675_v26 }
 0x6e7   :  { %679 = vrot.lane.b32.xlu1 %v677_v28, %s2574_s13 }
 0x6e8   :  { %v794_v12 = vpop.permute.xlu0 %793  ;;  %v670_v31 = vpop.permute.xlu1 %669 }
 0x6e9   :  { %v796_v30 = vmul.f32 %v2432_v11, %v794_v12  ;;  %v672_v32 = vmul.f32 %v2430_v52, %v670_v31 }
 0x6eb   :  { %798 = vrot.lane.b32.xlu0 %v796_v30, %s2574_s13 }
 0x6ec   :  { %v789_v33 = vpop.permute.xlu0 %788 }
 0x6ed   :  { %v791_v36 = vmul.f32 %v2432_v11, %v789_v33 }
 0x759   :  { %v680_v34 = vpop.permute.xlu1 %679 }
 0x75a   :  { %v682_v35 = vadd.f32 %v680_v34, %v672_v32 }
 0x75c   :  { %2433 = vtanh.f32 %v682_v35  ;;  %v719_v49 = vrot.slane %v682_v35, %v2668_v10 }
 0x75d   :  { %v799_v37 = vpop.permute.xlu0 %798 }
 0x75e   :  { %v801_v38 = vadd.f32 %v799_v37, %v791_v36 }
 0x760   :  { %2435 = vtanh.f32 %v801_v38  ;;  %v838_v53 = vrot.slane %v801_v38, %v2668_v10 }
 0x766   :  { %v2434_v40 = vpop.eup %2433 }
 0x767   :  { %685 = vrot.lane.b32.xlu1 %v2434_v40, %s2574_s13 }
 0x76a   :  { %v2436_v42 = vpop.eup %2435 }
 0x76b   :  { %804 = vrot.lane.b32.xlu0 %v2436_v42, %s2574_s13  ;;  %694 = vperm.xlu1 %2384, %v2898_v41  }
 0x76f   :  { %813 = vperm.xlu0 %2383, %v2904_v25  }
 0x7d9   :  { %v686_v29 = vpop.permute.xlu1 %685 }
 0x7da   :  { %v688_v44 = vmul.f32 %v2430_v52, %v686_v29 }
 0x7dc   :  { %v704_v45 = vrot.slane %v688_v44, %v2668_v10 }
 0x7dd   :  { %v805_v46 = vpop.permute.xlu0 %804 }
 0x7de   :  { %v807_v48 = vmul.f32 %v2432_v11, %v805_v46  ;;  %705 = vrot.lane.b32.xlu1 %v704_v45, %s2576_s4 }
 0x7e0   :  { %v823_v50 = vrot.slane %v807_v48, %v2668_v10 }
 0x7e2   :  { %824 = vrot.lane.b32.xlu0 %v823_v50, %s2576_s4  ;;  %720 = vrot.lane.b32.xlu1 %v719_v49, %s2577_s24 }
 0x7e6   :  { %839 = vrot.lane.b32.xlu0 %v838_v53, %s2577_s24 }
 0x7ea   :  { %v695_v13 = vpop.permute.xlu1 %694 }
 0x7eb   :  { %vm696_vm13 = vcmp.eq.s32.totalorder %v695_v13, 1 }
 0x7ee   :  { %v814_v54 = vpop.permute.xlu0 %813 }
 0x7ef   :  { %vm815_vm14 = vcmp.eq.s32.totalorder %v814_v54, 1 }
 0x850   :  { %v706_v55 = vpop.permute.xlu1 %705 }
 0x851   :  { %v708_v56 = vsel %vm696_vm13, %v706_v55, 0.0  ;;  %v2918_v57 = vsel %vm696_vm13, %v706_v55, %v2836_v39 }
 0x852   :  { %2142 = vst.msk [vmem:[%s3362_s5 + $0x4] sm:$0x3] %vm67_vm1, %v708_v56  ;;  %v847_v58 = vpack.c.bf16 %v2918_v57, %v2918_v57 }
 0x854   :  { %v825_v17 = vpop.permute.xlu0 %824  ;;  %2298 = vmatmul.mubr.msk.bf16.vlgmr.msra.gmra.mrb[12].mxu0 %vm116_vm2, %v847_v58  ;;  %v721_v12 = vpop.permute.xlu1 %720 }
 0x855   :  { %v827_v59 = vsel %vm815_vm14, %v825_v17, 0.0  ;;  %v2930_v61 = vsel %vm815_vm14, %v825_v17, %v2848_v43  ;;  %2310 = vmatpush3.bf16.msra.mxu0 %v2629_v0  ;;  %2313 = vmatprep.mubr.msk.bf16.mxu0 %vm2572_vm0, %v2571_v1  ;;  %v2148_v43 = vld [vmem:[%s3357_s0 + $0x3] sm:$0x1]  ;;  %v2961_v31 = vsel %vm696_vm13, %v721_v12, %v2879_v6 }
 0x856   :  { %2147 = vst.msk [vmem:[%s3363_s6 + $0xa] sm:$0x3] %vm67_vm1, %v827_v59  ;;  %v966_v39 = vpack.c.bf16 %v2930_v61, %v2930_v61  ;;  %2311 = vmatprep.subr.bf16.mxu0 %v2571_v1  ;;  %v845_v63 = vunpack.c.l.bf16 %v2148_v43  ;;  %v906_v33 = vrot.slane %v2961_v31, %v2668_v10 }
 0x858   :  { %2306 = vmatmul.mubr.msk.bf16.vlgmr.msra.gmra.mrb[12].mxu1 %vm116_vm2, %v966_v39  ;;  %v846_v8 = vadd.f32 %v2711_v23, %v845_v63  ;;  %v840_v32 = vpop.permute.xlu0 %839  ;;  %v2980_v39 = vsel %vm2151_vm15, 1, %v2575_v51  ;;  %v2986_v63 = vsel %vm2156_vm3, 1, %v2575_v51 }
 0x859   :  { %2312 = vmatpush3.bf16.msra.mxu0 %v2642_v4  ;;  %2318 = vmatpush3.bf16.msra.mxu1 %v2636_v2  ;;  %v2968_v35 = vsel %vm815_vm14, %v840_v32, %v2886_v14 }
 0x85a   :  { %2319 = vmatprep.subr.bf16.mxu1 %v2571_v1  ;;  %2321 = vmatprep.mubr.msk.bf16.mxu1 %vm2572_vm0, %v2571_v1  ;;  %v1025_v36 = vrot.slane %v2968_v35, %v2668_v10 }
 0x85b   :  { %2325 = vmatprep.subr.bf16.mxu0 %v2571_v1 }
 0x85d   :  { %2320 = vmatpush3.bf16.msra.mxu1 %v2651_v5 }
 0x85e   :  { %2333 = vmatprep.subr.bf16.mxu1 %v2571_v1 }
 0x927   :  { %v885_v15 = vpop.f32.mrb[12].mxu0 }
 0x928   :  { %v891_v47 = vadd.f32 %v885_v15, %v846_v8  ;;  %v2299_v16 = vpop.f32.mrb[13].mxu0 }
 0x929   :  { %v888_v19 = vpop.f32.mrb[14].mxu0 }
 0x92a   :  { %2437 = vtanh.f32 %v891_v47  ;;  %v2300_v20 = vpop.f32.mrb[15].mxu0  ;;  %v2150_v6 = vmul.f32 -1.442695, %v891_v47 }
 0x92b   :  { %v1004_v21 = vpop.f32.mrb[12].mxu1 }
 0x92c   :  { %v1010_v52 = vadd.f32 %v1004_v21, %v965_v18  ;;  %v2307_v26 = vpop.f32.mrb[13].mxu1 }
 0x92d   :  { %v1007_v28 = vpop.f32.mrb[14].mxu1 }
 0x92e   :  { %2439 = vtanh.f32 %v1010_v52  ;;  %v2308_v11 = vpop.f32.mrb[15].mxu1  ;;  %v2155_v37 = vmul.f32 -1.442695, %v1010_v52 }
 0x92f   :  { %2441 = vpow2.f32 %v2150_v6 }
 0x930   :  { %2443 = vpow2.f32 %v2155_v37 }
 0x934   :  { %v2438_v30 = vpop.eup %2437 }
 0x935   :  { %912 = vrot.lane.b32.xlu1 %v2438_v30, %s2574_s13 }
 0x938   :  { %v2440_v34 = vpop.eup %2439 }
 0x939   :  { %1031 = vrot.lane.b32.xlu0 %v2440_v34, %s2574_s13  ;;  %907 = vrot.lane.b32.xlu1 %v906_v33, %s2574_s13  ;;  %v2442_v38 = vpop.eup %2441 }
 0x93a   :  { %v895_v40 = vadd.f32 1.0, %v2442_v38  ;;  %v2444_v42 = vpop.eup %2443 }
 0x93b   :  { %v1014_v29 = vadd.f32 1.0, %v2444_v42 }
 0x93c   :  { %2445 = vrcp.f32 %v895_v40 }
 0x93d   :  { %1026 = vrot.lane.b32.xlu0 %v1025_v36, %s2574_s13  ;;  %2447 = vrcp.f32 %v1014_v29 }
 0x946   :  { %v2446_v14 = vpop.eup %2445 }
 0x947   :  { %v2448_v46 = vpop.eup %2447 }
 0x9a7   :  { %v913_v44 = vpop.permute.xlu1 %912 }
 0x9a8   :  { %v915_v45 = vmul.f32 %v2446_v14, %v913_v44 }
 0x9aa   :  { %917 = vrot.lane.b32.xlu1 %v915_v45, %s2574_s13 }
 0x9ab   :  { %v1032_v48 = vpop.permute.xlu0 %1031  ;;  %v908_v50 = vpop.permute.xlu1 %907 }
 0x9ac   :  { %v1034_v49 = vmul.f32 %v2448_v46, %v1032_v48  ;;  %v910_v53 = vmul.f32 %v2446_v14, %v908_v50 }
 0x9ae   :  { %1036 = vrot.lane.b32.xlu0 %v1034_v49, %s2574_s13 }
 0x9af   :  { %v1027_v13 = vpop.permute.xlu0 %1026 }
 0x9b0   :  { %v1029_v56 = vmul.f32 %v2448_v46, %v1027_v13 }
 0xa1c   :  { %v918_v54 = vpop.permute.xlu1 %917 }
 0xa1d   :  { %v920_v55 = vadd.f32 %v918_v54, %v910_v53 }
 0xa1f   :  { %2449 = vtanh.f32 %v920_v55  ;;  %v957_v60 = vrot.slane %v920_v55, %v2668_v10 }
 0xa20   :  { %v1037_v58 = vpop.permute.xlu0 %1036 }
 0xa21   :  { %v1039_v17 = vadd.f32 %v1037_v58, %v1029_v56 }
 0xa23   :  { %2451 = vtanh.f32 %v1039_v17  ;;  %v1076_v51 = vrot.slane %v1039_v17, %v2668_v10 }
 0xa29   :  { %v2450_v59 = vpop.eup %2449 }
 0xa2a   :  { %923 = vrot.lane.b32.xlu1 %v2450_v59, %s2574_s13 }
 0xa2d   :  { %v2452_v43 = vpop.eup %2451 }
 0xa2e   :  { %1042 = vrot.lane.b32.xlu0 %v2452_v43, %s2574_s13  ;;  %932 = vperm.xlu1 %2384, %v2980_v39  }
 0xa32   :  { %1051 = vperm.xlu0 %2383, %v2986_v63  }
 0xa9c   :  { %v924_v7 = vpop.permute.xlu1 %923 }
 0xa9d   :  { %v926_v8 = vmul.f32 %v2446_v14, %v924_v7 }
 0xa9f   :  { %v942_v9 = vrot.slane %v926_v8, %v2668_v10 }
 0xaa0   :  { %v1043_v15 = vpop.permute.xlu0 %1042 }
 0xaa1   :  { %v1045_v47 = vmul.f32 %v2448_v46, %v1043_v15  ;;  %943 = vrot.lane.b32.xlu1 %v942_v9, %s2576_s4 }
 0xaa3   :  { %v1061_v16 = vrot.slane %v1045_v47, %v2668_v10 }
 0xaa5   :  { %1062 = vrot.lane.b32.xlu0 %v1061_v16, %s2576_s4  ;;  %958 = vrot.lane.b32.xlu1 %v957_v60, %s2577_s24 }
 0xaa9   :  { %1077 = vrot.lane.b32.xlu0 %v1076_v51, %s2577_s24 }
 0xaad   :  { %v933_v18 = vpop.permute.xlu1 %932 }
 0xaae   :  { %vm934_vm4 = vcmp.eq.s32.totalorder %v933_v18, 1 }
 0xab1   :  { %v1052_v19 = vpop.permute.xlu0 %1051 }
 0xab2   :  { %vm1053_vm5 = vcmp.eq.s32.totalorder %v1052_v19, 1 }
 0xb13   :  { %v944_v20 = vpop.permute.xlu1 %943 }
 0xb14   :  { %v946_v21 = vsel %vm934_vm4, %v944_v20, 0.0  ;;  %v3000_v52 = vsel %vm934_vm4, %v944_v20, %v2918_v57 }
 0xb15   :  { %2152 = vst.msk [vmem:[%s3362_s5 + $0x6] sm:$0x3] %vm67_vm1, %v946_v21  ;;  %v1085_v26 = vpack.c.bf16 %v3000_v52, %v3000_v52 }
 0xb17   :  { %v1063_v28 = vpop.permute.xlu0 %1062  ;;  %2314 = vmatmul.mubr.msk.bf16.vlgmr.msra.gmra.mrb[16].mxu0 %vm116_vm2, %v1085_v26  ;;  %v959_v14 = vpop.permute.xlu1 %958 }
 0xb18   :  { %v1065_v11 = vsel %vm1053_vm5, %v1063_v28, 0.0  ;;  %v3012_v12 = vsel %vm1053_vm5, %v1063_v28, %v2930_v61  ;;  %2326 = vmatpush3.bf16.msra.mxu0 %v2629_v0  ;;  %2329 = vmatprep.mubr.msk.bf16.mxu0 %vm2572_vm0, %v2571_v1  ;;  %v2158_v0 = vld [vmem:[%s3357_s0 + $0x4] sm:$0x1] }
 0xb19   :  { %2157 = vst.msk [vmem:[%s3363_s6 + $0x8] sm:$0x3] %vm67_vm1, %v1065_v11  ;;  %v1204_v57 = vpack.c.bf16 %v3012_v12, %v3012_v12  ;;  %2327 = vmatprep.subr.bf16.mxu0 %v2571_v1  ;;  %v1083_v61 = vunpack.c.l.bf16 %v2158_v0 }
 0xb1b   :  { %2322 = vmatmul.mubr.msk.bf16.vlgmr.msra.gmra.mrb[16].mxu1 %vm116_vm2, %v1204_v57  ;;  %v1078_v45 = vpop.permute.xlu0 %1077 }
 0xb1c   :  { %2328 = vmatpush3.bf16.msra.mxu0 %v2642_v4  ;;  %2334 = vmatpush3.bf16.msra.mxu1 %v2636_v2  ;;  %v2163_v2 = vld [vmem:[%s3358_s1 + $0xb] sm:$0x1]  ;;  %v1084_v4 = vadd.f32 %v2711_v23, %v1083_v61  ;;  %v3043_v23 = vsel %vm934_vm4, %v959_v14, %v2961_v31  ;;  %v3050_v48 = vsel %vm1053_vm5, %v1078_v45, %v2968_v35 }
 0xb1d   :  { %2335 = vmatprep.subr.bf16.mxu1 %v2571_v1  ;;  %2337 = vmatprep.mubr.msk.bf16.mxu1 %vm2572_vm0, %v2571_v1  ;;  %v1202_v30 = vunpack.c.l.bf16 %v2163_v2  ;;  %v1263_v49 = vrot.slane %v3050_v48, %v2668_v10 }
 0xb1e   :  { %2341 = vmatprep.subr.bf16.mxu0 %v2571_v1 }
 0xb1f   :  { %v1203_v36 = vadd.f32 %v2716_v24, %v1202_v30  ;;  %v1144_v24 = vrot.slane %v3043_v23, %v2668_v10 }
 0xb20   :  { %2336 = vmatpush3.bf16.msra.mxu1 %v2651_v5 }
 0xb21   :  { %2349 = vmatprep.subr.bf16.mxu1 %v2571_v1 }
 0xbea   :  { %v1123_v32 = vpop.f32.mrb[16].mxu0 }
 0xbeb   :  { %v1129_v33 = vadd.f32 %v1123_v32, %v1084_v4  ;;  %v2315_v34 = vpop.f32.mrb[17].mxu0 }
 0xbec   :  { %v1126_v5 = vpop.f32.mrb[18].mxu0 }
 0xbed   :  { %2453 = vtanh.f32 %v1129_v33  ;;  %v2316_v6 = vpop.f32.mrb[19].mxu0  ;;  %v2160_v31 = vmul.f32 -1.442695, %v1129_v33 }
 0xbee   :  { %v1242_v37 = vpop.f32.mrb[16].mxu1  ;;  %v3113_v6 = vld [vmem:[%s3359_s2 + $0x10] sm:$0xff]  }
 0xbef   :  { %v1248_v38 = vadd.f32 %v1242_v37, %v1203_v36  ;;  %v2323_v40 = vpop.f32.mrb[17].mxu1  ;;  %v3123_v37 = vld [vmem:[%s3359_s2 + $0x18] sm:$0xff]  }
 0xbf0   :  { %v1245_v42 = vpop.f32.mrb[18].mxu1 }
 0xbf1   :  { %2455 = vtanh.f32 %v1248_v38  ;;  %v2324_v29 = vpop.f32.mrb[19].mxu1  ;;  %v2165_v50 = vmul.f32 -1.442695, %v1248_v38  ;;  %v2168_v38 = vld [vmem:[%s3357_s0 + $0x5] sm:$0x1] }
 0xbf2   :  { %2457 = vpow2.f32 %v2160_v31  ;;  %v1321_v40 = vunpack.c.l.bf16 %v2168_v38  ;;  %v2173_v42 = vld [vmem:[%s3358_s1 + $0xa] sm:$0x1]  ;;  %v3136_v29 = vld [vmem:[%s3360_s3] ss:$0 sm:$0xff] }
 0xbf3   :  { %2459 = vpow2.f32 %v2165_v50 }
 0xbf4   :  { %v1322_v14 = vadd.f32 %v3136_v29, %v1321_v40 }
 0xbf7   :  { %v2454_v44 = vpop.eup %2453 }
 0xbf8   :  { %1150 = vrot.lane.b32.xlu1 %v2454_v44, %s2574_s13  ;;  %v1440_v44 = vunpack.c.l.bf16 %v2173_v42 }
 0xbfb   :  { %v2456_v46 = vpop.eup %2455 }
 0xbfc   :  { %1269 = vrot.lane.b32.xlu0 %v2456_v46, %s2574_s13  ;;  %1145 = vrot.lane.b32.xlu1 %v1144_v24, %s2574_s13  ;;  %v2458_v53 = vpop.eup %2457 }
 0xbfd   :  { %v1133_v13 = vadd.f32 1.0, %v2458_v53  ;;  %v2460_v54 = vpop.eup %2459 }
 0xbfe   :  { %v1252_v55 = vadd.f32 1.0, %v2460_v54 }
 0xbff   :  { %2461 = vrcp.f32 %v1133_v13 }
 0xc00   :  { %1264 = vrot.lane.b32.xlu0 %v1263_v49, %s2574_s13  ;;  %2463 = vrcp.f32 %v1252_v55  ;;  %v3142_v49 = vld [vmem:[%s3360_s3 + $0x1] ss:$0 sm:$0xff] }
 0xc01   :  { %v1441_v31 = vadd.f32 %v3142_v49, %v1440_v44 }
 0xc09   :  { %v2462_v35 = vpop.eup %2461 }
 0xc0a   :  { %v2464_v17 = vpop.eup %2463 }
 0xc6a   :  { %v1151_v56 = vpop.permute.xlu1 %1150 }
 0xc6b   :  { %v1153_v58 = vmul.f32 %v2462_v35, %v1151_v56 }
 0xc6d   :  { %1155 = vrot.lane.b32.xlu1 %v1153_v58, %s2574_s13 }
 0xc6e   :  { %v1270_v59 = vpop.permute.xlu0 %1269  ;;  %v1146_v7 = vpop.permute.xlu1 %1145 }
 0xc6f   :  { %v1272_v43 = vmul.f32 %v2464_v17, %v1270_v59  ;;  %v1148_v8 = vmul.f32 %v2462_v35, %v1146_v7 }
 0xc71   :  { %1274 = vrot.lane.b32.xlu0 %v1272_v43, %s2574_s13 }
 0xc72   :  { %v1265_v9 = vpop.permute.xlu0 %1264 }
 0xc73   :  { %v1267_v60 = vmul.f32 %v2464_v17, %v1265_v9 }
 0xcdf   :  { %v1156_v15 = vpop.permute.xlu1 %1155 }
 0xce0   :  { %v1158_v47 = vadd.f32 %v1156_v15, %v1148_v8 }
 0xce2   :  { %2465 = vtanh.f32 %v1158_v47  ;;  %v1195_v57 = vrot.slane %v1158_v47, %v2668_v10 }
 0xce3   :  { %v1275_v16 = vpop.permute.xlu0 %1274 }
 0xce4   :  { %v1277_v51 = vadd.f32 %v1275_v16, %v1267_v60 }
 0xce6   :  { %2467 = vtanh.f32 %v1277_v51 }
 0xcec   :  { %v2466_v18 = vpop.eup %2465 }
 0xced   :  { %1161 = vrot.lane.b32.xlu1 %v2466_v18, %s2574_s13 }
 0xcf0   :  { %v2468_v19 = vpop.eup %2467 }
 0xcf1   :  { %1280 = vrot.lane.b32.xlu0 %v2468_v19, %s2574_s13  ;;  %1170 = vperm.xlu1 %2384, %v2986_v63   ;;  %v1314_v63 = vrot.slane %v1277_v51, %v2668_v10 }
 0xcf5   :  { %1289 = vperm.xlu0 %2383, %v2980_v39  }
 0xd5f   :  { %v1162_v20 = vpop.permute.xlu1 %1161 }
 0xd60   :  { %v1164_v21 = vmul.f32 %v2462_v35, %v1162_v20 }
 0xd62   :  { %v1180_v26 = vrot.slane %v1164_v21, %v2668_v10 }
 0xd63   :  { %v1281_v28 = vpop.permute.xlu0 %1280 }
 0xd64   :  { %v1283_v11 = vmul.f32 %v2464_v17, %v1281_v28  ;;  %1181 = vrot.lane.b32.xlu1 %v1180_v26, %s2576_s4 }
 0xd66   :  { %v1299_v0 = vrot.slane %v1283_v11, %v2668_v10 }
 0xd68   :  { %1300 = vrot.lane.b32.xlu0 %v1299_v0, %s2576_s4  ;;  %1196 = vrot.lane.b32.xlu1 %v1195_v57, %s2577_s24 }
 0xd6c   :  { %1315 = vrot.lane.b32.xlu0 %v1314_v63, %s2577_s24 }
 0xd70   :  { %v1171_v39 = vpop.permute.xlu1 %1170 }
 0xd71   :  { %vm1172_vm6 = vcmp.eq.s32.totalorder %v1171_v39, 1 }
 0xd74   :  { %v1290_v61 = vpop.permute.xlu0 %1289 }
 0xd75   :  { %vm1291_vm7 = vcmp.eq.s32.totalorder %v1290_v61, 1 }
 0xdd6   :  { %v1182_v2 = vpop.permute.xlu1 %1181 }
 0xdd7   :  { %v1184_v4 = vsel %vm1172_vm6, %v1182_v2, 0.0  ;;  %v3074_v30 = vsel %vm1172_vm6, %v1182_v2, %v3000_v52  ;;  %v3091_v52 = vld [vmem:[%s3359_s2] sm:$0xff]  }
 0xdd8   :  { %2162 = vst.msk [vmem:[%s3362_s5 + $0x8] sm:$0x3] %vm67_vm1, %v1184_v4  ;;  %v1323_v32 = vpack.c.bf16 %v3074_v30, %v3074_v30 }
 0xdda   :  { %v1301_v33 = vpop.permute.xlu0 %1300  ;;  %2330 = vmatmul.mubr.msk.bf16.vlgmr.msra.gmra.mrb[20].mxu0 %vm116_vm2, %v1323_v32  ;;  %v1197_v58 = vpop.permute.xlu1 %1196 }
 0xddb   :  { %v1303_v34 = vsel %vm1291_vm7, %v1301_v33, 0.0  ;;  %v3086_v36 = vsel %vm1291_vm7, %v1301_v33, %v3012_v12  ;;  %2342 = vmatpush3.bf16.msra.mxu0 %v3091_v52  ;;  %2345 = vmatprep.mubr.msk.bf16.mxu0 %vm2572_vm0, %v2571_v1  ;;  %v3107_v12 = vld [vmem:[%s3359_s2 + $0x8] sm:$0xff]   ;;  %v3147_v59 = vsel %vm1172_vm6, %v1197_v58, %v3043_v23 }
 0xddc   :  { %2167 = vst.msk [vmem:[%s3363_s6 + $0x6] sm:$0x3] %vm67_vm1, %v1303_v34  ;;  %v1442_v5 = vpack.c.bf16 %v3086_v36, %v3086_v36  ;;  %2343 = vmatprep.subr.bf16.mxu0 %v2571_v1  ;;  %v1382_v7 = vrot.slane %v3147_v59, %v2668_v10 }
 0xdde   :  { %2338 = vmatmul.mubr.msk.bf16.vlgmr.msra.gmra.mrb[20].mxu1 %vm116_vm2, %v1442_v5  ;;  %v1316_v43 = vpop.permute.xlu0 %1315 }
 0xddf   :  { %2344 = vmatpush3.bf16.msra.mxu0 %v3107_v12  ;;  %2350 = vmatpush3.bf16.msra.mxu1 %v3113_v6  ;;  %v3154_v9 = vsel %vm1291_vm7, %v1316_v43, %v3050_v48 }
 0xde0   :  { %2351 = vmatprep.subr.bf16.mxu1 %v2571_v1  ;;  %2353 = vmatprep.mubr.msk.bf16.mxu1 %vm2572_vm0, %v2571_v1  ;;  %v1501_v15 = vrot.slane %v3154_v9, %v2668_v10 }
 0xde1   :  { %2357 = vmatprep.subr.bf16.mxu0 %v2571_v1 }
 0xde3   :  { %2352 = vmatpush3.bf16.msra.mxu1 %v3123_v37 }
 0xde4   :  { %2365 = vmatprep.subr.bf16.mxu1 %v2571_v1 }
 0xead   :  { %v1361_v45 = vpop.f32.mrb[20].mxu0 }
 0xeae   :  { %v1367_v24 = vadd.f32 %v1361_v45, %v1322_v14  ;;  %v2331_v46 = vpop.f32.mrb[21].mxu0 }
 0xeaf   :  { %v1364_v50 = vpop.f32.mrb[22].mxu0 }
 0xeb0   :  { %2469 = vtanh.f32 %v1367_v24  ;;  %v2332_v53 = vpop.f32.mrb[23].mxu0  ;;  %v2170_v23 = vmul.f32 -1.442695, %v1367_v24 }
 0xeb1   :  { %v1480_v13 = vpop.f32.mrb[20].mxu1 }
 0xeb2   :  { %v1486_v54 = vadd.f32 %v1480_v13, %v1441_v31  ;;  %v2339_v55 = vpop.f32.mrb[21].mxu1 }
 0xeb3   :  { %v1483_v35 = vpop.f32.mrb[22].mxu1  ;;  %v2183_v55 = vld [vmem:[%s3358_s1 + $0x9] sm:$0x1] }
 0xeb4   :  { %2471 = vtanh.f32 %v1486_v54  ;;  %v2340_v56 = vpop.f32.mrb[23].mxu1  ;;  %v2175_v47 = vmul.f32 -1.442695, %v1486_v54  ;;  %v1678_v35 = vunpack.c.l.bf16 %v2183_v55 }
 0xeb5   :  { %2473 = vpow2.f32 %v2170_v23 }
 0xeb6   :  { %2475 = vpow2.f32 %v2175_v47 }
 0xeba   :  { %v2470_v17 = vpop.eup %2469 }
 0xebb   :  { %1388 = vrot.lane.b32.xlu1 %v2470_v17, %s2574_s13  ;;  %v1679_v17 = vadd.f32 %v3142_v49, %v1678_v35 }
 0xebe   :  { %v2472_v8 = vpop.eup %2471 }
 0xebf   :  { %1507 = vrot.lane.b32.xlu0 %v2472_v8, %s2574_s13  ;;  %1383 = vrot.lane.b32.xlu1 %v1382_v7, %s2574_s13  ;;  %v2474_v60 = vpop.eup %2473 }
 0xec0   :  { %v1371_v16 = vadd.f32 1.0, %v2474_v60  ;;  %v2476_v51 = vpop.eup %2475 }
 0xec1   :  { %v1490_v18 = vadd.f32 1.0, %v2476_v51 }
 0xec2   :  { %2477 = vrcp.f32 %v1371_v16 }
 0xec3   :  { %1502 = vrot.lane.b32.xlu0 %v1501_v15, %s2574_s13  ;;  %2479 = vrcp.f32 %v1490_v18 }
 0xecc   :  { %v2478_v48 = vpop.eup %2477 }
 0xecd   :  { %v2480_v21 = vpop.eup %2479 }
 0xf2d   :  { %v1389_v19 = vpop.permute.xlu1 %1388 }
 0xf2e   :  { %v1391_v20 = vmul.f32 %v2478_v48, %v1389_v19 }
 0xf30   :  { %1393 = vrot.lane.b32.xlu1 %v1391_v20, %s2574_s13 }
 0xf31   :  { %v1508_v26 = vpop.permute.xlu0 %1507  ;;  %v1384_v11 = vpop.permute.xlu1 %1383 }
 0xf32   :  { %v1510_v28 = vmul.f32 %v2480_v21, %v1508_v26  ;;  %v1386_v57 = vmul.f32 %v2478_v48, %v1384_v11 }
 0xf34   :  { %1512 = vrot.lane.b32.xlu0 %v1510_v28, %s2574_s13 }
 0xf35   :  { %v1503_v0 = vpop.permute.xlu0 %1502 }
 0xf36   :  { %v1505_v61 = vmul.f32 %v2480_v21, %v1503_v0 }
 0xfa2   :  { %v1394_v63 = vpop.permute.xlu1 %1393 }
 0xfa3   :  { %v1396_v39 = vadd.f32 %v1394_v63, %v1386_v57 }
 0xfa5   :  { %2481 = vtanh.f32 %v1396_v39  ;;  %v1433_v14 = vrot.slane %v1396_v39, %v2668_v10 }
 0xfa6   :  { %v1513_v2 = vpop.permute.xlu0 %1512 }
 0xfa7   :  { %v1515_v4 = vadd.f32 %v1513_v2, %v1505_v61 }
 0xfa9   :  { %2483 = vtanh.f32 %v1515_v4 }
 0xfaf   :  { %v2482_v32 = vpop.eup %2481 }
 0xfb0   :  { %1399 = vrot.lane.b32.xlu1 %v2482_v32, %s2574_s13 }
 0xfb3   :  { %v2484_v33 = vpop.eup %2483 }
 0xfb4   :  { %1518 = vrot.lane.b32.xlu0 %v2484_v33, %s2574_s13  ;;  %1408 = vperm.xlu1 %2384, %v2904_v25   ;;  %v1552_v25 = vrot.slane %v1515_v4, %v2668_v10 }
 0xfb8   :  { %1527 = vperm.xlu0 %2383, %v2898_v41  }
0x1022   :  { %v1400_v34 = vpop.permute.xlu1 %1399 }
0x1023   :  { %v1402_v5 = vmul.f32 %v2478_v48, %v1400_v34 }
0x1025   :  { %v1418_v38 = vrot.slane %v1402_v5, %v2668_v10 }
0x1026   :  { %v1519_v40 = vpop.permute.xlu0 %1518 }
0x1027   :  { %v1521_v42 = vmul.f32 %v2480_v21, %v1519_v40  ;;  %1419 = vrot.lane.b32.xlu1 %v1418_v38, %s2576_s4 }
0x1029   :  { %v1537_v44 = vrot.slane %v1521_v42, %v2668_v10 }
0x102b   :  { %1538 = vrot.lane.b32.xlu0 %v1537_v44, %s2576_s4  ;;  %1434 = vrot.lane.b32.xlu1 %v1433_v14, %s2577_s24 }
0x102f   :  { %1553 = vrot.lane.b32.xlu0 %v1552_v25, %s2577_s24 }
0x1033   :  { %v1409_v41 = vpop.permute.xlu1 %1408 }
0x1034   :  { %vm1410_vm8 = vcmp.eq.s32.totalorder %v1409_v41, 1 }
0x1037   :  { %v1528_v45 = vpop.permute.xlu0 %1527 }
0x1038   :  { %vm1529_vm9 = vcmp.eq.s32.totalorder %v1528_v45, 1 }
0x1099   :  { %v1420_v24 = vpop.permute.xlu1 %1419 }
0x109a   :  { %v1422_v46 = vsel %vm1410_vm8, %v1420_v24, 0.0  ;;  %v3178_v31 = vsel %vm1410_vm8, %v1420_v24, %v3074_v30 }
0x109b   :  { %2172 = vst.msk [vmem:[%s3362_s5 + $0xa] sm:$0x3] %vm67_vm1, %v1422_v46  ;;  %v1561_v50 = vpack.c.bf16 %v3178_v31, %v3178_v31 }
0x109d   :  { %v1539_v53 = vpop.permute.xlu0 %1538  ;;  %2346 = vmatmul.mubr.msk.bf16.vlgmr.msra.gmra.mrb[24].mxu0 %vm116_vm2, %v1561_v50  ;;  %v1435_v47 = vpop.permute.xlu1 %1434 }
0x109e   :  { %v1541_v13 = vsel %vm1529_vm9, %v1539_v53, 0.0  ;;  %v3190_v54 = vsel %vm1529_vm9, %v1539_v53, %v3086_v36  ;;  %2358 = vmatpush3.bf16.msra.mxu0 %v3091_v52  ;;  %2361 = vmatprep.mubr.msk.bf16.mxu0 %vm2572_vm0, %v2571_v1  ;;  %v2178_v36 = vld [vmem:[%s3357_s0 + $0x6] sm:$0x1]  ;;  %v3219_v16 = vsel %vm1410_vm8, %v1435_v47, %v3147_v59 }
0x109f   :  { %2177 = vst.msk [vmem:[%s3363_s6 + $0x4] sm:$0x3] %vm67_vm1, %v1541_v13  ;;  %v1680_v30 = vpack.c.bf16 %v3190_v54, %v3190_v54  ;;  %2359 = vmatprep.subr.bf16.mxu0 %v2571_v1  ;;  %v1559_v52 = vunpack.c.l.bf16 %v2178_v36  ;;  %v1620_v18 = vrot.slane %v3219_v16, %v2668_v10 }
0x10a1   :  { %2354 = vmatmul.mubr.msk.bf16.vlgmr.msra.gmra.mrb[24].mxu1 %vm116_vm2, %v1680_v30  ;;  %v1554_v51 = vpop.permute.xlu0 %1553 }
0x10a2   :  { %2360 = vmatpush3.bf16.msra.mxu0 %v3107_v12  ;;  %2366 = vmatpush3.bf16.msra.mxu1 %v3113_v6  ;;  %v1560_v12 = vadd.f32 %v3136_v29, %v1559_v52  ;;  %v3226_v19 = vsel %vm1529_vm9, %v1554_v51, %v3154_v9 }
0x10a3   :  { %2367 = vmatprep.subr.bf16.mxu1 %v2571_v1  ;;  %2369 = vmatprep.mubr.msk.bf16.mxu1 %vm2572_vm0, %v2571_v1  ;;  %v1739_v20 = vrot.slane %v3226_v19, %v2668_v10 }
0x10a6   :  { %2368 = vmatpush3.bf16.msra.mxu1 %v3123_v37 }
0x1170   :  { %v1599_v6 = vpop.f32.mrb[24].mxu0 }
0x1171   :  { %v1605_v56 = vadd.f32 %v1599_v6, %v1560_v12  ;;  %v2347_v58 = vpop.f32.mrb[25].mxu0 }
0x1172   :  { %v1602_v1 = vpop.f32.mrb[26].mxu0 }
0x1173   :  { %2485 = vtanh.f32 %v1605_v56  ;;  %v2348_v37 = vpop.f32.mrb[27].mxu0  ;;  %v2180_v59 = vmul.f32 -1.442695, %v1605_v56  ;;  %v2188_v56 = vld [vmem:[%s3357_s0 + $0x7] sm:$0x1]  ;;  %s2578_s0 = smov [#allocation4]  }
0x1174   :  { %v1718_v43 = vpop.f32.mrb[24].mxu1  ;;  %v1797_v58 = vunpack.c.l.bf16 %v2188_v56 }
0x1175   :  { %v1724_v7 = vadd.f32 %v1718_v43, %v1679_v17  ;;  %v2355_v8 = vpop.f32.mrb[25].mxu1 }
0x1176   :  { %v1721_v15 = vpop.f32.mrb[26].mxu1  ;;  %v1798_v17 = vadd.f32 %v3136_v29, %v1797_v58 }
0x1177   :  { %2487 = vtanh.f32 %v1724_v7  ;;  %v2356_v23 = vpop.f32.mrb[27].mxu1  ;;  %v2185_v21 = vmul.f32 -1.442695, %v1724_v7 }
0x1178   :  { %2489 = vpow2.f32 %v2180_v59 }
0x1179   :  { %2491 = vpow2.f32 %v2185_v21 }
0x117d   :  { %v2486_v60 = vpop.eup %2485 }
0x117e   :  { %1626 = vrot.lane.b32.xlu1 %v2486_v60, %s2574_s13 }
0x1181   :  { %v2488_v48 = vpop.eup %2487 }
0x1182   :  { %1745 = vrot.lane.b32.xlu0 %v2488_v48, %s2574_s13  ;;  %1621 = vrot.lane.b32.xlu1 %v1620_v18, %s2574_s13  ;;  %v2490_v26 = vpop.eup %2489 }
0x1183   :  { %v1609_v28 = vadd.f32 1.0, %v2490_v26  ;;  %v2492_v11 = vpop.eup %2491 }
0x1184   :  { %v1728_v57 = vadd.f32 1.0, %v2492_v11 }
0x1185   :  { %2493 = vrcp.f32 %v1609_v28 }
0x1186   :  { %1740 = vrot.lane.b32.xlu0 %v1739_v20, %s2574_s13  ;;  %2495 = vrcp.f32 %v1728_v57 }
0x118f   :  { %v2494_v9 = vpop.eup %2493 }
0x1190   :  { %v2496_v39 = vpop.eup %2495 }
0x11f0   :  { %v1627_v0 = vpop.permute.xlu1 %1626 }
0x11f1   :  { %v1629_v63 = vmul.f32 %v2494_v9, %v1627_v0 }
0x11f3   :  { %1631 = vrot.lane.b32.xlu1 %v1629_v63, %s2574_s13 }
0x11f4   :  { %v1746_v61 = vpop.permute.xlu0 %1745  ;;  %v1622_v4 = vpop.permute.xlu1 %1621 }
0x11f5   :  { %v1748_v2 = vmul.f32 %v2496_v39, %v1746_v61  ;;  %v1624_v32 = vmul.f32 %v2494_v9, %v1622_v4 }
0x11f7   :  { %1750 = vrot.lane.b32.xlu0 %v1748_v2, %s2574_s13 }
0x11f8   :  { %v1741_v33 = vpop.permute.xlu0 %1740 }
0x11f9   :  { %v1743_v38 = vmul.f32 %v2496_v39, %v1741_v33 }
0x1265   :  { %v1632_v34 = vpop.permute.xlu1 %1631 }
0x1266   :  { %v1634_v5 = vadd.f32 %v1632_v34, %v1624_v32 }
0x1268   :  { %2497 = vtanh.f32 %v1634_v5  ;;  %v1671_v50 = vrot.slane %v1634_v5, %v2668_v10 }
0x1269   :  { %v1751_v40 = vpop.permute.xlu0 %1750 }
0x126a   :  { %v1753_v42 = vadd.f32 %v1751_v40, %v1743_v38 }
0x126c   :  { %2499 = vtanh.f32 %v1753_v42 }
0x1272   :  { %v2498_v14 = vpop.eup %2497 }
0x1273   :  { %1637 = vrot.lane.b32.xlu1 %v2498_v14, %s2574_s13 }
0x1276   :  { %v2500_v44 = vpop.eup %2499 }
0x1277   :  { %1756 = vrot.lane.b32.xlu0 %v2500_v44, %s2574_s13  ;;  %1646 = vperm.xlu1 %2384, %v2822_v27   ;;  %v1790_v27 = vrot.slane %v1753_v42, %v2668_v10 }
0x127b   :  { %1765 = vperm.xlu0 %2383, %v2816_v22  }
0x12e5   :  { %v1638_v25 = vpop.permute.xlu1 %1637 }
0x12e6   :  { %v1640_v41 = vmul.f32 %v2494_v9, %v1638_v25 }
0x12e8   :  { %v1656_v45 = vrot.slane %v1640_v41, %v2668_v10 }
0x12e9   :  { %v1757_v24 = vpop.permute.xlu0 %1756 }
0x12ea   :  { %v1759_v46 = vmul.f32 %v2496_v39, %v1757_v24  ;;  %1657 = vrot.lane.b32.xlu1 %v1656_v45, %s2576_s4 }
0x12ec   :  { %v1775_v53 = vrot.slane %v1759_v46, %v2668_v10 }
0x12ee   :  { %1776 = vrot.lane.b32.xlu0 %v1775_v53, %s2576_s4  ;;  %1672 = vrot.lane.b32.xlu1 %v1671_v50, %s2577_s24 }
0x12f2   :  { %1791 = vrot.lane.b32.xlu0 %v1790_v27, %s2577_s24 }
0x12f6   :  { %v1647_v22 = vpop.permute.xlu1 %1646 }
0x12f7   :  { %vm1648_vm0 = vcmp.eq.s32.totalorder %v1647_v22, 1 }
0x12fa   :  { %v1766_v13 = vpop.permute.xlu0 %1765 }
0x12fb   :  { %vm1767_vm10 = vcmp.eq.s32.totalorder %v1766_v13, 1 }
0x135c   :  { %v1658_v30 = vpop.permute.xlu1 %1657 }
0x135d   :  { %v1660_v36 = vsel %vm1648_vm0, %v1658_v30, 0.0  ;;  %v3250_v52 = vsel %vm1648_vm0, %v1658_v30, %v3178_v31 }
0x135e   :  { %2182 = vst.msk [vmem:[%s3362_s5 + $0xc] sm:$0x3] %vm67_vm1, %v1660_v36  ;;  %v1799_v55 = vpack.c.bf16 %v3250_v52, %v3250_v52 }
0x1360   :  { %v1777_v12 = vpop.permute.xlu0 %1776  ;;  %2362 = vmatmul.mubr.msk.bf16.vlgmr.msra.gmra.mrb[28].mxu0 %vm116_vm2, %v1799_v55  ;;  %v1673_v20 = vpop.permute.xlu1 %1672 }
0x1361   :  { %v1779_v35 = vsel %vm1767_vm10, %v1777_v12, 0.0  ;;  %v3262_v6 = vsel %vm1767_vm10, %v1777_v12, %v3190_v54  ;;  %v2193_v54 = vld [vmem:[%s3358_s1 + $0x8] sm:$0x1]  ;;  %v1675_v29 = vsel %vm1648_vm0, %v1673_v20, %v3219_v16  ;;  %s2063_s1 = sshll.u32 %s2578_s0, 4  ;;  %s2064_s1 = int_to_ptr.vmem [resolvable:$true] %s2063_s1 }
0x1362   :  { %2187 = vst.msk [vmem:[%s3363_s6 + $0x2] sm:$0x3] %vm67_vm1, %v1779_v35  ;;  %v1917_v31 = vpack.c.bf16 %v3262_v6, %v3262_v6  ;;  %v1915_v1 = vunpack.c.l.bf16 %v2193_v54  ;;  %v1858_v26 = vrot.slane %v1675_v29, %v2668_v10  ;;  %p2528_p1 = scmp.lt.s32.totalorder %s2064_s1, %s2064_s1 }
0x1364   :  { %2370 = vmatmul.mubr.msk.bf16.vlgmr.msra.gmra.mrb[28].mxu1 %vm116_vm2, %v1917_v31  ;;  %v1916_v8 = vadd.f32 %v3142_v49, %v1915_v1  ;;  %v1792_v21 = vpop.permute.xlu0 %1791 }
0x1365   :  { %v3285_v28 = vsel %vm1767_vm10, %v1792_v21, %v3226_v19 }
0x1366   :  { %v1976_v11 = vrot.slane %v3285_v28, %v2668_v10 }
0x1433   :  { %v1837_v37 = vpop.f32.mrb[28].mxu0 }
0x1434   :  { %v1843_v43 = vadd.f32 %v1837_v37, %v1798_v17  ;;  %v2363_v7 = vpop.f32.mrb[29].mxu0 }
0x1435   :  { %v1840_v15 = vpop.f32.mrb[30].mxu0 }
0x1436   :  { %2501 = vtanh.f32 %v1843_v43  ;;  %v2364_v23 = vpop.f32.mrb[31].mxu0  ;;  %v2190_v16 = vmul.f32 -1.442695, %v1843_v43 }
0x1437   :  { %v1955_v47 = vpop.f32.mrb[28].mxu1 }
0x1438   :  { %v1961_v60 = vadd.f32 %v1955_v47, %v1916_v8  ;;  %v2371_v51 = vpop.f32.mrb[29].mxu1 }
0x1439   :  { %v1958_v18 = vpop.f32.mrb[30].mxu1 }
0x143a   :  { %2503 = vtanh.f32 %v1961_v60  ;;  %v2372_v48 = vpop.f32.mrb[31].mxu1  ;;  %v2195_v57 = vmul.f32 -1.442695, %v1961_v60 }
0x143b   :  { %2505 = vpow2.f32 %v2190_v16 }
0x143c   :  { %2507 = vpow2.f32 %v2195_v57 }
0x1440   :  { %v2502_v59 = vpop.eup %2501 }
0x1441   :  { %1864 = vrot.lane.b32.xlu1 %v2502_v59, %s2574_s13 }
0x1444   :  { %v2504_v49 = vpop.eup %2503 }
0x1445   :  { %1982 = vrot.lane.b32.xlu0 %v2504_v49, %s2574_s13  ;;  %1859 = vrot.lane.b32.xlu1 %v1858_v26, %s2574_s13  ;;  %v2506_v9 = vpop.eup %2505 }
0x1446   :  { %v1847_v0 = vadd.f32 1.0, %v2506_v9  ;;  %v2508_v63 = vpop.eup %2507 }
0x1447   :  { %v1965_v39 = vadd.f32 1.0, %v2508_v63 }
0x1448   :  { %2509 = vrcp.f32 %v1847_v0 }
0x1449   :  { %1977 = vrot.lane.b32.xlu0 %v1976_v11, %s2574_s13  ;;  %2511 = vrcp.f32 %v1965_v39 }
0x1452   :  { %v2510_v19 = vpop.eup %2509 }
0x1453   :  { %v2512_v4 = vpop.eup %2511 }
0x14b3   :  { %v1865_v61 = vpop.permute.xlu1 %1864 }
0x14b4   :  { %v1867_v2 = vmul.f32 %v2510_v19, %v1865_v61 }
0x14b6   :  { %1869 = vrot.lane.b32.xlu1 %v1867_v2, %s2574_s13 }
0x14b7   :  { %v1983_v32 = vpop.permute.xlu0 %1982  ;;  %v1860_v34 = vpop.permute.xlu1 %1859 }
0x14b8   :  { %v1985_v33 = vmul.f32 %v2512_v4, %v1983_v32  ;;  %v1862_v5 = vmul.f32 %v2510_v19, %v1860_v34 }
0x14ba   :  { %1987 = vrot.lane.b32.xlu0 %v1985_v33, %s2574_s13 }
0x14bb   :  { %v1978_v38 = vpop.permute.xlu0 %1977 }
0x14bc   :  { %v1980_v14 = vmul.f32 %v2512_v4, %v1978_v38 }
0x1528   :  { %v1870_v40 = vpop.permute.xlu1 %1869 }
0x1529   :  { %v1872_v42 = vadd.f32 %v1870_v40, %v1862_v5 }
0x152b   :  { %2513 = vtanh.f32 %v1872_v42  ;;  %v1909_v24 = vrot.slane %v1872_v42, %v2668_v10 }
0x152c   :  { %v1988_v44 = vpop.permute.xlu0 %1987 }
0x152d   :  { %v1990_v25 = vadd.f32 %v1988_v44, %v1980_v14 }
0x152f   :  { %2515 = vtanh.f32 %v1990_v25  ;;  %v2025_v46 = vrot.slane %v1990_v25, %v2668_v10 }
0x1535   :  { %v2514_v41 = vpop.eup %2513 }
0x1536   :  { %1875 = vrot.lane.b32.xlu1 %v2514_v41, %s2574_s13 }
0x1539   :  { %v2516_v45 = vpop.eup %2515 }
0x153a   :  { %1993 = vrot.lane.b32.xlu0 %v2516_v45, %s2574_s13  ;;  %1884 = vperm.xlu1 %2384, %v2740_v3  }
0x153e   :  { %2001 = vperm.xlu0 %2383, %v2734_v62  }
0x1542   :  { %1910 = vrot.lane.b32.xlu0 %v1909_v24, %s2577_s24 }
0x1546   :  { %2026 = vrot.lane.b32.xlu0 %v2025_v46, %s2577_s24  ;;  %s2523_s24 = scalar_lea.vmem %s2064_s1, 64 }
0x1547   :  { %p2524_p0 = scmp.ne.s32.totalorder %s2064_s1, %s2523_s24  ;;  %p2529_p2 = scmp.lt.s32.totalorder %s2523_s24, %s2523_s24 }
0x1549   :  { %p2530_p3 = por %p2529_p2, %p2528_p1 }
0x154b   :  { %p2531_p4 = pnand %p2530_p3, %p2524_p0 }
0x15a8   :  { %v1876_v50 = vpop.permute.xlu1 %1875 }
0x15a9   :  { %v1878_v53 = vmul.f32 %v2510_v19, %v1876_v50 }
0x15ab   :  { %v1894_v27 = vrot.slane %v1878_v53, %v2668_v10 }
0x15ac   :  { %v1994_v22 = vpop.permute.xlu0 %1993 }
0x15ad   :  { %v1996_v13 = vmul.f32 %v2512_v4, %v1994_v22  ;;  %1895 = vrot.lane.b32.xlu1 %v1894_v27, %s2576_s4 }
0x15af   :  { %v2011_v3 = vrot.slane %v1996_v13, %v2668_v10 }
0x15b1   :  { %2012 = vrot.lane.b32.xlu1 %v2011_v3, %s2576_s4 }
0x15b9   :  { %v1885_v30 = vpop.permute.xlu1 %1884 }
0x15ba   :  { %vm1886_vm2 = vcmp.eq.s32.totalorder %v1885_v30, 1 }
0x15bd   :  { %v2002_v62 = vpop.permute.xlu0 %2001 }
0x15be   :  { %vm2003_vm11 = vcmp.eq.s32.totalorder %v2002_v62, 1 }
0x15c1   :  { %v1911_v36 = vpop.permute.xlu0 %1910 }
0x15c2   :  { %v1913_v55 = vsel %vm1886_vm2, %v1911_v36, %v1675_v29 }
0x15c3   :  { %2031 = vst.msk [vmem:[#allocation4] sm:$0x3] %vm67_vm1, %v1913_v55 }
0x15c5   :  { %v2027_v12 = vpop.permute.xlu0 %2026 }
0x15c6   :  { %v2029_v35 = vsel %vm2003_vm11, %v2027_v12, %v3285_v28 }
0x15c7   :  { %2033 = vst.msk [vmem:[#allocation4 + $0x2] sm:$0x3] %vm67_vm1, %v2029_v35 }
0x15c8   :  { %2534 = shalt.err (!%p2531_p4)
}
0x15c9   :  { %s2535_s10 = scalar_lea.hbm %s3365_s8, 64 }
0x15ca   :  { %p2536_p5 = scmp.ne.s32.totalorder %s3365_s8, %s2535_s10  ;;  %p2539_p6 = scmp.lt.u32.totalorder %s2535_s10, %s3365_s8 }
0x15cc   :  { %p2541_p7 = pnand %p2539_p6, %p2536_p5 }
0x15ce   :  { %2544 = shalt.err (!%p2541_p7)
}
0x15cf   :  { %s2579_s3 = smov 2   ;;  %s2580_s17 = smov [#allocation2]  }
0x15d0   :  { %2069 = dma.vmem_to_hbm [thread:$0]  %s2064_s1, 64, %s3365_s8, [#allocation5], %s2574_s13, %s2574_s13, %s2579_s3  }
0x15d1   :  { %s2051_s18 = sshll.u32 %s2580_s17, 4  ;;  %s2052_s18 = int_to_ptr.vmem [resolvable:$true] %s2051_s18 }
0x15d2   :  { %s2545_s22 = scalar_lea.vmem %s2052_s18, 64  ;;  %p2550_p9 = scmp.lt.s32.totalorder %s2052_s18, %s2052_s18 }
0x15d3   :  { %p2546_p8 = scmp.ne.s32.totalorder %s2052_s18, %s2545_s22  ;;  %p2551_p10 = scmp.lt.s32.totalorder %s2545_s22, %s2545_s22 }
0x15d5   :  { %p2552_p11 = por %p2551_p10, %p2550_p9 }
0x15d7   :  { %p2553_p12 = pnand %p2552_p11, %p2546_p8 }
0x161f   :  { %v1896_v10 = vpop.permute.xlu1 %1895 }
0x1620   :  { %v1898_v31 = vsel %vm1886_vm2, %v1896_v10, 0.0  ;;  %v1901_v56 = vsel %vm1886_vm2, %v1896_v10, %v3250_v52 }
0x1621   :  { %2192 = vst.msk [vmem:[%s3362_s5 + $0xe] sm:$0x3] %vm67_vm1, %v1898_v31  ;;  %2030 = vst.msk [vmem:[#allocation2] sm:$0x3] %vm67_vm1, %v1901_v56 }
0x1623   :  { %v2013_v58 = vpop.permute.xlu1 %2012 }
0x1624   :  { %v2015_v54 = vsel %vm2003_vm11, %v2013_v58, 0.0  ;;  %v2017_v17 = vsel %vm2003_vm11, %v2013_v58, %v3262_v6 }
0x1625   :  { %2016 = vst.msk [vmem:[%s3363_s6] sm:$0x3] %vm67_vm1, %v2015_v54  ;;  %2032 = vst.msk [vmem:[#allocation2 + $0x2] sm:$0x3] %vm67_vm1, %v2017_v17 }
0x1626   :  { %2556 = shalt.err (!%p2553_p12)
}
0x1627   :  { %s2557_s25 = scalar_lea.hbm %s3364_s7, 64 }
0x1628   :  { %p2558_p13 = scmp.ne.s32.totalorder %s3364_s7, %s2557_s25  ;;  %p2561_p0 = scmp.lt.u32.totalorder %s2557_s25, %s3364_s7 }
0x162a   :  { %p2563_p1 = pnand %p2561_p0, %p2558_p13 }
0x162c   :  { %2566 = shalt.err (!%p2563_p1)
}
0x162d   :  { %2057 = dma.vmem_to_hbm [thread:$0]  %s2052_s18, 64, %s3364_s7, [#allocation3], %s2574_s13, %s2574_s13, %s2579_s3  }
0x162e   :  { %2567 = dma.done.wait [#allocation3], 64  }
0x162f   :  { %2568 = vsyncadd [#allocation3], 4294967232 }
0x1630   :  { %2569 = dma.done.wait [#allocation5], 64  }
0x1631   :  { %2570 = vsyncadd [#allocation5], 4294967232 }
0x1632   :  { %2086 = vsyncpa [#allocation3], 1 }
0x1633   :  { %2087 = vsyncpa [#allocation5], 1 }

// kernel: lstm_layer_forward.6
= control target key start
LH: loop header
LB: loop body
LE: loop exit
PB: predicated region body
PF: predicated region fallthrough
CT: control target
= control target key end

     0   :  { %vm65_vm0 = vcmask 254976   ;;  %v2498_v0 = vmov 0.0   ;;  %vm2499_vm1 = vmmov 0   ;;  %v170_v3 = vlaneseq  ;;  %s2501_s29 = smov 32   ;;  %s2504_s18 = smov 96   ;;  %s3277_s2 = inlined_call_operand.vmem [shape: bf16[2,32,128], index: 2, kind: input, shape index: {}]   ;;  %s3278_s7 = inlined_call_operand.vmem [shape: f32[2,2,32], index: 7, kind: output, shape index: {2}]   ;;  %s3279_s8 = inlined_call_operand.vmem [shape: f32[2,2,32], index: 8, kind: output, shape index: {3}]   ;;  %s3280_s0 = inlined_call_operand.vmem [shape: bf16[2,8,2,128], index: 0, kind: input, shape index: {}, may-alias: {0,1}]   ;;  %s3281_s1 = inlined_call_operand.vmem [shape: bf16[2,8,2,128], index: 1, kind: input, shape index: {}, may-alias: {0,1}]   ;;  %s3282_s3 = inlined_call_operand.vmem [shape: f32[2,1,128], index: 3, kind: input, shape index: {}]   ;;  %s3283_s4 = inlined_call_operand.vmem [shape: s32[2,1], index: 4, kind: input, shape index: {}]   ;;  %s3284_s5 = inlined_call_operand.vmem [shape: f32[8,2,32], index: 5, kind: output, shape index: {0}]   ;;  %s3285_s6 = inlined_call_operand.vmem [shape: f32[8,2,32], index: 6, kind: output, shape index: {1}]  }
   0x1   :  { %2223 = vmatprep.subr.bf16.mxu0 %v2498_v0  ;;  %v2554_v1 = vld [vmem:[%s3277_s2] sm:$0xff]   ;;  %2231 = vmatprep.subr.bf16.mxu1 %v2498_v0  ;;  %66 = vst.msk [vmem:[%s3278_s7] sm:$0x3] %vm65_vm0, %v2498_v0  ;;  %67 = vst.msk [vmem:[%s3278_s7 + $0x2] sm:$0x3] %vm65_vm0, %v2498_v0  ;;  %v2580_v2 = vld [vmem:[%s3277_s2 + $0x10] sm:$0xff]  }
   0x2   :  { %68 = vst.msk [vmem:[%s3279_s8] sm:$0x3] %vm65_vm0, %v2498_v0  ;;  %69 = vst.msk [vmem:[%s3279_s8 + $0x2] sm:$0x3] %vm65_vm0, %v2498_v0  ;;  %2227 = vmatprep.mubr.msk.bf16.mxu0 %vm2499_vm1, %v2498_v0  ;;  %2235 = vmatprep.mubr.msk.bf16.mxu1 %vm2499_vm1, %v2498_v0  ;;  %v2590_v4 = vld [vmem:[%s3277_s2 + $0x8] sm:$0xff]   ;;  %v2597_v5 = vld [vmem:[%s3277_s2 + $0x18] sm:$0xff]  }
   0x3   :  { %2224 = vmatpush3.bf16.msra.mxu0 %v2554_v1  ;;  %2232 = vmatpush3.bf16.msra.mxu1 %v2580_v2  ;;  %v2500_v6 = vmov 1983009808   ;;  %v171_v8 = vshrl.u32 %v170_v3, 7  ;;  %vm114_vm2 = vcmask 261120   ;;  %v92_v19 = vld [vmem:[%s3280_s0] sm:$0x1] }
   0x4   :  { %2225 = vmatprep.subr.bf16.mxu0 %v2498_v0  ;;  %2233 = vmatprep.subr.bf16.mxu1 %v2498_v0  ;;  %v168_v7 = vunpack.c.l.s4 %v2500_v6  ;;  %v2096_v20 = vld [vmem:[%s3281_s1 + $0xf] sm:$0x1]  ;;  %v93_v21 = vunpack.c.l.bf16 %v92_v19  ;;  %v2659_v23 = vld [vmem:[%s3282_s3] ss:$0 sm:$0xff]  ;;  %v2664_v24 = vld [vmem:[%s3282_s3 + $0x1] ss:$0 sm:$0xff] }
   0x5   :  { %v230_v22 = vunpack.c.l.bf16 %v2096_v20  ;;  %v2502_v51 = vmov 0   ;;  %v2677_v60 = vld [vmem:[%s3283_s4] sm:$0x3]  ;;  %s2503_s4 = smov 64  }
   0x6   :  { %v169_v11 = vunpack.c.0.s8 %v168_v7  ;;  %v100_v25 = vadd.f32 %v2659_v23, %v93_v21  ;;  %2359 = vset.pattern.permute.xlu1 %v2502_v51  ;;  %2358 = vset.pattern.permute.xlu0 %v2502_v51  ;;  %vm2095_vm3 = vcmp.gt.s32.totalorder %v2677_v60, 0  ;;  %vm2102_vm4 = vcmp.gt.s32.totalorder %v2677_v60, 7 }
   0x7   :  { %2226 = vmatpush3.bf16.msra.mxu0 %v2590_v4  ;;  %2234 = vmatpush3.bf16.msra.mxu1 %v2597_v5  ;;  %v237_v26 = vadd.f32 %v2664_v24, %v230_v22  ;;  %v2682_v62 = vsel %vm2095_vm3, 1, %v2502_v51  ;;  %v2688_v3 = vsel %vm2102_vm4, 1, %v2502_v51  ;;  %vm2107_vm7 = vcmp.gt.s32.totalorder %v2677_v60, 1 }
   0x8   :  { %v2605_v9 = vld [vmem:[%s3278_s7] sm:$0x3]  ;;  %v2610_v10 = vld [vmem:[%s3278_s7 + $0x2] sm:$0x3]  ;;  %2239 = vmatprep.subr.bf16.mxu0 %v2498_v0  ;;  %2247 = vmatprep.subr.bf16.mxu1 %v2498_v0  ;;  %v2623_v15 = vsub.s32 %v169_v11, %v171_v8  ;;  %vm2112_vm8 = vcmp.gt.s32.totalorder %v2677_v60, 6  ;;  %vm2117_vm11 = vcmp.gt.s32.totalorder %v2677_v60, 2 }
   0x9   :  { %v101_v12 = vpack.c.bf16 %v2605_v9, %v2605_v9  ;;  %v238_v13 = vpack.c.bf16 %v2610_v10, %v2610_v10  ;;  %v2620_v14 = vld [vmem:[%s3279_s8] sm:$0x3]  ;;  %v2630_v16 = vld [vmem:[%s3279_s8 + $0x2] sm:$0x3]  ;;  %vm2122_vm12 = vcmp.gt.s32.totalorder %v2677_v60, 5  ;;  %vm2127_vm15 = vcmp.gt.s32.totalorder %v2677_v60, 3 }
   0xa   :  { %v173_v17 = vrot.slane %v2620_v14, %v2623_v15  ;;  %v309_v18 = vrot.slane %v2630_v16, %v2623_v15  ;;  %vm2132_vm3 = vcmp.gt.s32.totalorder %v2677_v60, 4 }
   0xb   :  { %2228 = vmatmul.mubr.msk.bf16.vlgmr.msra.gmra.mrb[0].mxu0 %vm114_vm2, %v101_v12  ;;  %2236 = vmatmul.mubr.msk.bf16.vlgmr.msra.gmra.mrb[0].mxu1 %vm114_vm2, %v238_v13 }
   0xc   :  { %2240 = vmatpush3.bf16.msra.mxu0 %v2554_v1  ;;  %2248 = vmatpush3.bf16.msra.mxu1 %v2580_v2 }
   0xd   :  { %2241 = vmatprep.subr.bf16.mxu0 %v2498_v0  ;;  %2243 = vmatprep.mubr.msk.bf16.mxu0 %vm2499_vm1, %v2498_v0 }
   0xe   :  { %174 = vrot.lane.b32.xlu1 %v173_v17, %s2501_s29  ;;  %2249 = vmatprep.subr.bf16.mxu1 %v2498_v0 }
   0xf   :  { %2251 = vmatprep.mubr.msk.bf16.mxu1 %vm2499_vm1, %v2498_v0 }
  0x10   :  { %2242 = vmatpush3.bf16.msra.mxu0 %v2590_v4  ;;  %2250 = vmatpush3.bf16.msra.mxu1 %v2597_v5 }
  0x11   :  { %2255 = vmatprep.subr.bf16.mxu0 %v2498_v0  ;;  %2263 = vmatprep.subr.bf16.mxu1 %v2498_v0 }
  0x12   :  { %310 = vrot.lane.b32.xlu1 %v309_v18, %s2501_s29 }
  0x80   :  { %v175_v52 = vpop.permute.xlu1 %174 }
  0x84   :  { %v311_v54 = vpop.permute.xlu1 %310 }
  0xde   :  { %v152_v27 = vpop.f32.mrb[0].mxu0  ;;  %v288_v28 = vpop.f32.mrb[0].mxu1 }
  0xdf   :  { %v158_v29 = vadd.f32 %v152_v27, %v100_v25  ;;  %v2229_v30 = vpop.f32.mrb[1].mxu0  ;;  %v294_v31 = vadd.f32 %v288_v28, %v237_v26  ;;  %v2237_v32 = vpop.f32.mrb[1].mxu1 }
  0xe0   :  { %v155_v33 = vpop.f32.mrb[2].mxu0  ;;  %v291_v34 = vpop.f32.mrb[2].mxu1 }
  0xe1   :  { %2364 = vtanh.f32 %v158_v29  ;;  %v2230_v35 = vpop.f32.mrb[3].mxu0  ;;  %v2238_v36 = vpop.f32.mrb[3].mxu1  ;;  %v2094_v39 = vmul.f32 -1.442695, %v158_v29  ;;  %v2101_v40 = vmul.f32 -1.442695, %v294_v31 }
  0xe2   :  { %2366 = vtanh.f32 %v294_v31  ;;  %v2109_v31 = vld [vmem:[%s3281_s1 + $0xe] sm:$0x1] }
  0xe3   :  { %2368 = vpow2.f32 %v2094_v39  ;;  %v486_v33 = vunpack.c.l.bf16 %v2109_v31 }
  0xe4   :  { %2370 = vpow2.f32 %v2101_v40 }
  0xeb   :  { %v2365_v37 = vpop.eup %2364 }
  0xec   :  { %179 = vrot.lane.b32.xlu0 %v2365_v37, %s2501_s29  ;;  %v2367_v38 = vpop.eup %2366  ;;  %v487_v37 = vadd.f32 %v2664_v24, %v486_v33 }
  0xed   :  { %v2369_v41 = vpop.eup %2368 }
  0xee   :  { %v162_v42 = vadd.f32 1.0, %v2369_v41  ;;  %v2371_v43 = vpop.eup %2370 }
  0xef   :  { %v298_v44 = vadd.f32 1.0, %v2371_v43 }
  0xf0   :  { %315 = vrot.lane.b32.xlu0 %v2367_v38, %s2501_s29  ;;  %2372 = vrcp.f32 %v162_v42 }
  0xf1   :  { %2374 = vrcp.f32 %v298_v44 }
  0xfa   :  { %v2373_v45 = vpop.eup %2372 }
  0xfb   :  { %v2375_v48 = vpop.eup %2374  ;;  %v177_v53 = vmul.f32 %v2373_v45, %v175_v52 }
  0xfc   :  { %v313_v57 = vmul.f32 %v2375_v48, %v311_v54 }
 0x15e   :  { %v180_v46 = vpop.permute.xlu0 %179 }
 0x15f   :  { %v182_v47 = vmul.f32 %v2373_v45, %v180_v46 }
 0x161   :  { %184 = vrot.lane.b32.xlu0 %v182_v47, %s2501_s29 }
 0x162   :  { %v316_v49 = vpop.permute.xlu0 %315 }
 0x163   :  { %v318_v50 = vmul.f32 %v2375_v48, %v316_v49 }
 0x165   :  { %320 = vrot.lane.b32.xlu1 %v318_v50, %s2501_s29 }
 0x1d3   :  { %v185_v55 = vpop.permute.xlu0 %184 }
 0x1d4   :  { %v187_v56 = vadd.f32 %v185_v55, %v177_v53 }
 0x1d6   :  { %2376 = vtanh.f32 %v187_v56  ;;  %v223_v13 = vrot.slane %v187_v56, %v2623_v15 }
 0x1d7   :  { %v321_v58 = vpop.permute.xlu1 %320 }
 0x1d8   :  { %v323_v59 = vadd.f32 %v321_v58, %v313_v57 }
 0x1da   :  { %2378 = vtanh.f32 %v323_v59  ;;  %v360_v18 = vrot.slane %v323_v59, %v2623_v15 }
 0x1e0   :  { %v2377_v61 = vpop.eup %2376 }
 0x1e1   :  { %190 = vrot.lane.b32.xlu0 %v2377_v61, %s2501_s29 }
 0x1e4   :  { %v2379_v63 = vpop.eup %2378 }
 0x1e5   :  { %326 = vrot.lane.b32.xlu1 %v2379_v63, %s2501_s29  ;;  %198 = vperm.xlu0 %2358, %v2682_v62  }
 0x1e9   :  { %335 = vperm.xlu1 %2359, %v2688_v3  }
 0x253   :  { %v191_v6 = vpop.permute.xlu0 %190 }
 0x254   :  { %v193_v7 = vmul.f32 %v2373_v45, %v191_v6 }
 0x256   :  { %v208_v8 = vrot.slane %v193_v7, %v2623_v15 }
 0x257   :  { %v327_v11 = vpop.permute.xlu1 %326 }
 0x258   :  { %v329_v12 = vmul.f32 %v2375_v48, %v327_v11  ;;  %209 = vrot.lane.b32.xlu1 %v208_v8, %s2503_s4 }
 0x25a   :  { %v345_v17 = vrot.slane %v329_v12, %v2623_v15 }
 0x25c   :  { %346 = vrot.lane.b32.xlu0 %v345_v17, %s2503_s4  ;;  %224 = vrot.lane.b32.xlu1 %v223_v13, %s2504_s18 }
 0x260   :  { %361 = vrot.lane.b32.xlu0 %v360_v18, %s2504_s18 }
 0x264   :  { %v199_v20 = vpop.permute.xlu0 %198 }
 0x265   :  { %vm200_vm5 = vcmp.eq.s32.totalorder %v199_v20, 1 }
 0x268   :  { %v336_v19 = vpop.permute.xlu1 %335 }
 0x269   :  { %vm337_vm6 = vcmp.eq.s32.totalorder %v336_v19, 1 }
 0x2ca   :  { %v210_v21 = vpop.permute.xlu1 %209 }
 0x2cb   :  { %v212_v22 = vsel %vm200_vm5, %v210_v21, 0.0  ;;  %v2702_v25 = vsel %vm200_vm5, %v210_v21, %v2605_v9 }
 0x2cc   :  { %214 = vst.msk [vmem:[%s3284_s5] sm:$0x3] %vm65_vm0, %v212_v22  ;;  %v369_v26 = vpack.c.bf16 %v2702_v25, %v2702_v25  ;;  %v2764_v22 = vsel %vm2107_vm7, 1, %v2502_v51 }
 0x2ce   :  { %2244 = vmatmul.mubr.msk.bf16.vlgmr.msra.gmra.mrb[4].mxu0 %vm114_vm2, %v369_v26  ;;  %v347_v27 = vpop.permute.xlu0 %346  ;;  %v225_v45 = vpop.permute.xlu1 %224 }
 0x2cf   :  { %v349_v28 = vsel %vm337_vm6, %v347_v27, 0.0  ;;  %v2714_v29 = vsel %vm337_vm6, %v347_v27, %v2610_v10  ;;  %2256 = vmatpush3.bf16.msra.mxu0 %v2554_v1  ;;  %2259 = vmatprep.mubr.msk.bf16.mxu0 %vm2499_vm1, %v2498_v0  ;;  %v2104_v10 = vld [vmem:[%s3280_s0 + $0x1] sm:$0x1]  ;;  %v2745_v47 = vsel %vm200_vm5, %v225_v45, %v2620_v14  ;;  %v2770_v27 = vsel %vm2112_vm8, 1, %v2502_v51  ;;  %v2119_v45 = vld [vmem:[%s3281_s1 + $0xd] sm:$0x1] }
 0x2d0   :  { %2103 = vst.msk [vmem:[%s3285_s6 + $0xe] sm:$0x3] %vm65_vm0, %v349_v28  ;;  %v488_v9 = vpack.c.bf16 %v2714_v29, %v2714_v29  ;;  %2257 = vmatprep.subr.bf16.mxu0 %v2498_v0  ;;  %v367_v30 = vunpack.c.l.bf16 %v2104_v10  ;;  %v428_v49 = vrot.slane %v2745_v47, %v2623_v15 }
 0x2d2   :  { %2252 = vmatmul.mubr.msk.bf16.vlgmr.msra.gmra.mrb[4].mxu1 %vm114_vm2, %v488_v9  ;;  %v368_v32 = vadd.f32 %v2659_v23, %v367_v30  ;;  %v362_v48 = vpop.permute.xlu0 %361 }
 0x2d3   :  { %2258 = vmatpush3.bf16.msra.mxu0 %v2590_v4  ;;  %2264 = vmatpush3.bf16.msra.mxu1 %v2580_v2  ;;  %v2752_v52 = vsel %vm337_vm6, %v362_v48, %v2630_v16  ;;  %v724_v48 = vunpack.c.l.bf16 %v2119_v45 }
 0x2d4   :  { %2265 = vmatprep.subr.bf16.mxu1 %v2498_v0  ;;  %2267 = vmatprep.mubr.msk.bf16.mxu1 %vm2499_vm1, %v2498_v0  ;;  %v547_v53 = vrot.slane %v2752_v52, %v2623_v15 }
 0x2d5   :  { %2271 = vmatprep.subr.bf16.mxu0 %v2498_v0 }
 0x2d7   :  { %2266 = vmatpush3.bf16.msra.mxu1 %v2597_v5 }
 0x2d8   :  { %2279 = vmatprep.subr.bf16.mxu1 %v2498_v0 }
 0x3a1   :  { %v407_v34 = vpop.f32.mrb[4].mxu0 }
 0x3a2   :  { %v413_v35 = vadd.f32 %v407_v34, %v368_v32  ;;  %v2245_v36 = vpop.f32.mrb[5].mxu0 }
 0x3a3   :  { %v410_v38 = vpop.f32.mrb[6].mxu0 }
 0x3a4   :  { %2380 = vtanh.f32 %v413_v35  ;;  %v2246_v39 = vpop.f32.mrb[7].mxu0  ;;  %v2106_v14 = vmul.f32 -1.442695, %v413_v35 }
 0x3a5   :  { %v526_v40 = vpop.f32.mrb[4].mxu1 }
 0x3a6   :  { %v532_v41 = vadd.f32 %v526_v40, %v487_v37  ;;  %v2253_v42 = vpop.f32.mrb[5].mxu1 }
 0x3a7   :  { %v529_v43 = vpop.f32.mrb[6].mxu1 }
 0x3a8   :  { %2382 = vtanh.f32 %v532_v41  ;;  %v2254_v44 = vpop.f32.mrb[7].mxu1  ;;  %v2111_v54 = vmul.f32 -1.442695, %v532_v41 }
 0x3a9   :  { %2384 = vpow2.f32 %v2106_v14  ;;  %v725_v14 = vadd.f32 %v2664_v24, %v724_v48 }
 0x3aa   :  { %2386 = vpow2.f32 %v2111_v54 }
 0x3ae   :  { %v2381_v46 = vpop.eup %2380 }
 0x3af   :  { %434 = vrot.lane.b32.xlu1 %v2381_v46, %s2501_s29 }
 0x3b2   :  { %v2383_v50 = vpop.eup %2382 }
 0x3b3   :  { %429 = vrot.lane.b32.xlu1 %v428_v49, %s2501_s29  ;;  %553 = vrot.lane.b32.xlu0 %v2383_v50, %s2501_s29  ;;  %v2385_v55 = vpop.eup %2384 }
 0x3b4   :  { %v417_v56 = vadd.f32 1.0, %v2385_v55  ;;  %v2387_v57 = vpop.eup %2386 }
 0x3b5   :  { %v536_v58 = vadd.f32 1.0, %v2387_v57 }
 0x3b6   :  { %2388 = vrcp.f32 %v417_v56 }
 0x3b7   :  { %548 = vrot.lane.b32.xlu0 %v547_v53, %s2501_s29  ;;  %2390 = vrcp.f32 %v536_v58 }
 0x3c0   :  { %v2389_v16 = vpop.eup %2388 }
 0x3c1   :  { %v2391_v63 = vpop.eup %2390 }
 0x421   :  { %v435_v59 = vpop.permute.xlu1 %434 }
 0x422   :  { %v437_v61 = vmul.f32 %v2389_v16, %v435_v59 }
 0x424   :  { %439 = vrot.lane.b32.xlu1 %v437_v61, %s2501_s29 }
 0x425   :  { %v554_v6 = vpop.permute.xlu0 %553  ;;  %v430_v8 = vpop.permute.xlu1 %429 }
 0x426   :  { %v556_v7 = vmul.f32 %v2391_v63, %v554_v6  ;;  %v432_v11 = vmul.f32 %v2389_v16, %v430_v8 }
 0x428   :  { %558 = vrot.lane.b32.xlu0 %v556_v7, %s2501_s29 }
 0x429   :  { %v549_v12 = vpop.permute.xlu0 %548 }
 0x42a   :  { %v551_v18 = vmul.f32 %v2391_v63, %v549_v12 }
 0x496   :  { %v440_v13 = vpop.permute.xlu1 %439 }
 0x497   :  { %v442_v17 = vadd.f32 %v440_v13, %v432_v11 }
 0x499   :  { %2392 = vtanh.f32 %v442_v17  ;;  %v479_v32 = vrot.slane %v442_v17, %v2623_v15 }
 0x49a   :  { %v559_v19 = vpop.permute.xlu0 %558 }
 0x49b   :  { %v561_v20 = vadd.f32 %v559_v19, %v551_v18 }
 0x49d   :  { %2394 = vtanh.f32 %v561_v20  ;;  %v598_v34 = vrot.slane %v561_v20, %v2623_v15 }
 0x4a3   :  { %v2393_v21 = vpop.eup %2392 }
 0x4a4   :  { %445 = vrot.lane.b32.xlu1 %v2393_v21, %s2501_s29 }
 0x4a7   :  { %v2395_v26 = vpop.eup %2394 }
 0x4a8   :  { %454 = vperm.xlu1 %2359, %v2764_v22   ;;  %564 = vrot.lane.b32.xlu0 %v2395_v26, %s2501_s29 }
 0x4ac   :  { %573 = vperm.xlu0 %2358, %v2770_v27  }
 0x516   :  { %v446_v28 = vpop.permute.xlu1 %445 }
 0x517   :  { %v448_v9 = vmul.f32 %v2389_v16, %v446_v28 }
 0x519   :  { %v464_v10 = vrot.slane %v448_v9, %v2623_v15 }
 0x51a   :  { %v565_v30 = vpop.permute.xlu0 %564 }
 0x51b   :  { %v567_v31 = vmul.f32 %v2391_v63, %v565_v30  ;;  %465 = vrot.lane.b32.xlu1 %v464_v10, %s2503_s4 }
 0x51d   :  { %v583_v33 = vrot.slane %v567_v31, %v2623_v15 }
 0x51f   :  { %480 = vrot.lane.b32.xlu1 %v479_v32, %s2504_s18  ;;  %584 = vrot.lane.b32.xlu0 %v583_v33, %s2503_s4 }
 0x523   :  { %599 = vrot.lane.b32.xlu0 %v598_v34, %s2504_s18 }
 0x527   :  { %v455_v35 = vpop.permute.xlu1 %454 }
 0x528   :  { %vm456_vm9 = vcmp.eq.s32.totalorder %v455_v35, 1 }
 0x52b   :  { %v574_v36 = vpop.permute.xlu0 %573 }
 0x52c   :  { %vm575_vm10 = vcmp.eq.s32.totalorder %v574_v36, 1 }
 0x58d   :  { %v466_v37 = vpop.permute.xlu1 %465 }
 0x58e   :  { %v468_v38 = vsel %vm456_vm9, %v466_v37, 0.0  ;;  %v2784_v39 = vsel %vm456_vm9, %v466_v37, %v2702_v25 }
 0x58f   :  { %2108 = vst.msk [vmem:[%s3284_s5 + $0x2] sm:$0x3] %vm65_vm0, %v468_v38  ;;  %v607_v40 = vpack.c.bf16 %v2784_v39, %v2784_v39 }
 0x591   :  { %2260 = vmatmul.mubr.msk.bf16.vlgmr.msra.gmra.mrb[8].mxu0 %vm114_vm2, %v607_v40  ;;  %v585_v41 = vpop.permute.xlu0 %584  ;;  %v481_v61 = vpop.permute.xlu1 %480 }
 0x592   :  { %v587_v42 = vsel %vm575_vm10, %v585_v41, 0.0  ;;  %v2796_v43 = vsel %vm575_vm10, %v585_v41, %v2714_v29  ;;  %2272 = vmatpush3.bf16.msra.mxu0 %v2554_v1  ;;  %2275 = vmatprep.mubr.msk.bf16.mxu0 %vm2499_vm1, %v2498_v0  ;;  %v2114_v29 = vld [vmem:[%s3280_s0 + $0x2] sm:$0x1]  ;;  %v2827_v6 = vsel %vm456_vm9, %v481_v61, %v2745_v47  ;;  %v2846_v41 = vsel %vm2117_vm11, 1, %v2502_v51 }
 0x593   :  { %2113 = vst.msk [vmem:[%s3285_s6 + $0xc] sm:$0x3] %vm65_vm0, %v587_v42  ;;  %v726_v25 = vpack.c.bf16 %v2796_v43, %v2796_v43  ;;  %2273 = vmatprep.subr.bf16.mxu0 %v2498_v0  ;;  %v605_v44 = vunpack.c.l.bf16 %v2114_v29  ;;  %v666_v8 = vrot.slane %v2827_v6, %v2623_v15 }
 0x595   :  { %2268 = vmatmul.mubr.msk.bf16.vlgmr.msra.gmra.mrb[8].mxu1 %vm114_vm2, %v726_v25  ;;  %v606_v46 = vadd.f32 %v2659_v23, %v605_v44  ;;  %v600_v7 = vpop.permute.xlu0 %599  ;;  %v2852_v25 = vsel %vm2122_vm12, 1, %v2502_v51 }
 0x596   :  { %2274 = vmatpush3.bf16.msra.mxu0 %v2590_v4  ;;  %2280 = vmatpush3.bf16.msra.mxu1 %v2580_v2  ;;  %v2834_v12 = vsel %vm575_vm10, %v600_v7, %v2752_v52  ;;  %v2129_v7 = vld [vmem:[%s3281_s1 + $0xc] sm:$0x1] }
 0x597   :  { %2281 = vmatprep.subr.bf16.mxu1 %v2498_v0  ;;  %2283 = vmatprep.mubr.msk.bf16.mxu1 %vm2499_vm1, %v2498_v0  ;;  %v785_v13 = vrot.slane %v2834_v12, %v2623_v15 }
 0x598   :  { %2287 = vmatprep.subr.bf16.mxu0 %v2498_v0 }
 0x59a   :  { %2282 = vmatpush3.bf16.msra.mxu1 %v2597_v5 }
 0x59b   :  { %2295 = vmatprep.subr.bf16.mxu1 %v2498_v0 }
 0x664   :  { %v645_v49 = vpop.f32.mrb[8].mxu0 }
 0x665   :  { %v651_v50 = vadd.f32 %v645_v49, %v606_v46  ;;  %v2261_v53 = vpop.f32.mrb[9].mxu0 }
 0x666   :  { %v648_v54 = vpop.f32.mrb[10].mxu0 }
 0x667   :  { %2396 = vtanh.f32 %v651_v50  ;;  %v2262_v55 = vpop.f32.mrb[11].mxu0  ;;  %v2116_v47 = vmul.f32 -1.442695, %v651_v50 }
 0x668   :  { %v764_v56 = vpop.f32.mrb[8].mxu1 }
 0x669   :  { %v770_v57 = vadd.f32 %v764_v56, %v725_v14  ;;  %v2269_v58 = vpop.f32.mrb[9].mxu1 }
 0x66a   :  { %v767_v16 = vpop.f32.mrb[10].mxu1 }
 0x66b   :  { %2398 = vtanh.f32 %v770_v57  ;;  %v2270_v59 = vpop.f32.mrb[11].mxu1  ;;  %v2121_v17 = vmul.f32 -1.442695, %v770_v57 }
 0x66c   :  { %2400 = vpow2.f32 %v2116_v47 }
 0x66d   :  { %2402 = vpow2.f32 %v2121_v17 }
 0x671   :  { %v2397_v63 = vpop.eup %2396 }
 0x672   :  { %672 = vrot.lane.b32.xlu1 %v2397_v63, %s2501_s29 }
 0x675   :  { %v2399_v11 = vpop.eup %2398 }
 0x676   :  { %667 = vrot.lane.b32.xlu1 %v666_v8, %s2501_s29  ;;  %791 = vrot.lane.b32.xlu0 %v2399_v11, %s2501_s29  ;;  %v2401_v18 = vpop.eup %2400  ;;  %v962_v11 = vunpack.c.l.bf16 %v2129_v7 }
 0x677   :  { %v655_v19 = vadd.f32 1.0, %v2401_v18  ;;  %v2403_v20 = vpop.eup %2402 }
 0x678   :  { %v774_v21 = vadd.f32 1.0, %v2403_v20  ;;  %v963_v18 = vadd.f32 %v2664_v24, %v962_v11 }
 0x679   :  { %2404 = vrcp.f32 %v655_v19 }
 0x67a   :  { %786 = vrot.lane.b32.xlu0 %v785_v13, %s2501_s29  ;;  %2406 = vrcp.f32 %v774_v21 }
 0x683   :  { %v2405_v52 = vpop.eup %2404 }
 0x684   :  { %v2407_v9 = vpop.eup %2406 }
 0x6e4   :  { %v673_v26 = vpop.permute.xlu1 %672 }
 0x6e5   :  { %v675_v28 = vmul.f32 %v2405_v52, %v673_v26 }
 0x6e7   :  { %677 = vrot.lane.b32.xlu1 %v675_v28, %s2501_s29 }
 0x6e8   :  { %v792_v10 = vpop.permute.xlu0 %791  ;;  %v668_v31 = vpop.permute.xlu1 %667 }
 0x6e9   :  { %v794_v30 = vmul.f32 %v2407_v9, %v792_v10  ;;  %v670_v32 = vmul.f32 %v2405_v52, %v668_v31 }
 0x6eb   :  { %796 = vrot.lane.b32.xlu0 %v794_v30, %s2501_s29 }
 0x6ec   :  { %v787_v33 = vpop.permute.xlu0 %786 }
 0x6ed   :  { %v789_v36 = vmul.f32 %v2407_v9, %v787_v33 }
 0x759   :  { %v678_v34 = vpop.permute.xlu1 %677 }
 0x75a   :  { %v680_v35 = vadd.f32 %v678_v34, %v670_v32 }
 0x75c   :  { %2408 = vtanh.f32 %v680_v35  ;;  %v717_v49 = vrot.slane %v680_v35, %v2623_v15 }
 0x75d   :  { %v797_v37 = vpop.permute.xlu0 %796 }
 0x75e   :  { %v799_v38 = vadd.f32 %v797_v37, %v789_v36 }
 0x760   :  { %2410 = vtanh.f32 %v799_v38  ;;  %v836_v53 = vrot.slane %v799_v38, %v2623_v15 }
 0x766   :  { %v2409_v40 = vpop.eup %2408 }
 0x767   :  { %683 = vrot.lane.b32.xlu1 %v2409_v40, %s2501_s29 }
 0x76a   :  { %v2411_v42 = vpop.eup %2410 }
 0x76b   :  { %692 = vperm.xlu1 %2359, %v2846_v41   ;;  %802 = vrot.lane.b32.xlu0 %v2411_v42, %s2501_s29 }
 0x76f   :  { %811 = vperm.xlu0 %2358, %v2852_v25  }
 0x7d9   :  { %v684_v29 = vpop.permute.xlu1 %683 }
 0x7da   :  { %v686_v44 = vmul.f32 %v2405_v52, %v684_v29 }
 0x7dc   :  { %v702_v45 = vrot.slane %v686_v44, %v2623_v15 }
 0x7dd   :  { %v803_v46 = vpop.permute.xlu0 %802 }
 0x7de   :  { %v805_v48 = vmul.f32 %v2407_v9, %v803_v46  ;;  %703 = vrot.lane.b32.xlu1 %v702_v45, %s2503_s4 }
 0x7e0   :  { %v821_v50 = vrot.slane %v805_v48, %v2623_v15 }
 0x7e2   :  { %718 = vrot.lane.b32.xlu1 %v717_v49, %s2504_s18  ;;  %822 = vrot.lane.b32.xlu0 %v821_v50, %s2503_s4 }
 0x7e6   :  { %837 = vrot.lane.b32.xlu0 %v836_v53, %s2504_s18 }
 0x7ea   :  { %v693_v14 = vpop.permute.xlu1 %692 }
 0x7eb   :  { %vm694_vm13 = vcmp.eq.s32.totalorder %v693_v14, 1 }
 0x7ee   :  { %v812_v54 = vpop.permute.xlu0 %811 }
 0x7ef   :  { %vm813_vm14 = vcmp.eq.s32.totalorder %v812_v54, 1 }
 0x850   :  { %v704_v55 = vpop.permute.xlu1 %703 }
 0x851   :  { %v706_v56 = vsel %vm694_vm13, %v704_v55, 0.0  ;;  %v2866_v57 = vsel %vm694_vm13, %v704_v55, %v2784_v39 }
 0x852   :  { %2118 = vst.msk [vmem:[%s3284_s5 + $0x4] sm:$0x3] %vm65_vm0, %v706_v56  ;;  %v845_v58 = vpack.c.bf16 %v2866_v57, %v2866_v57 }
 0x854   :  { %2276 = vmatmul.mubr.msk.bf16.vlgmr.msra.gmra.mrb[12].mxu0 %vm114_vm2, %v845_v58  ;;  %v823_v16 = vpop.permute.xlu0 %822  ;;  %v719_v10 = vpop.permute.xlu1 %718 }
 0x855   :  { %v825_v59 = vsel %vm813_vm14, %v823_v16, 0.0  ;;  %v2878_v61 = vsel %vm813_vm14, %v823_v16, %v2796_v43  ;;  %2288 = vmatpush3.bf16.msra.mxu0 %v2554_v1  ;;  %2291 = vmatprep.mubr.msk.bf16.mxu0 %vm2499_vm1, %v2498_v0  ;;  %v2124_v43 = vld [vmem:[%s3280_s0 + $0x3] sm:$0x1]  ;;  %v2909_v31 = vsel %vm694_vm13, %v719_v10, %v2827_v6 }
 0x856   :  { %2123 = vst.msk [vmem:[%s3285_s6 + $0xa] sm:$0x3] %vm65_vm0, %v825_v59  ;;  %v964_v39 = vpack.c.bf16 %v2878_v61, %v2878_v61  ;;  %2289 = vmatprep.subr.bf16.mxu0 %v2498_v0  ;;  %v843_v63 = vunpack.c.l.bf16 %v2124_v43  ;;  %v904_v33 = vrot.slane %v2909_v31, %v2623_v15 }
 0x858   :  { %2284 = vmatmul.mubr.msk.bf16.vlgmr.msra.gmra.mrb[12].mxu1 %vm114_vm2, %v964_v39  ;;  %v844_v8 = vadd.f32 %v2659_v23, %v843_v63  ;;  %v838_v32 = vpop.permute.xlu0 %837  ;;  %v2928_v39 = vsel %vm2127_vm15, 1, %v2502_v51  ;;  %v2934_v63 = vsel %vm2132_vm3, 1, %v2502_v51 }
 0x859   :  { %2290 = vmatpush3.bf16.msra.mxu0 %v2590_v4  ;;  %2296 = vmatpush3.bf16.msra.mxu1 %v2580_v2  ;;  %v2916_v35 = vsel %vm813_vm14, %v838_v32, %v2834_v12 }
 0x85a   :  { %2297 = vmatprep.subr.bf16.mxu1 %v2498_v0  ;;  %2299 = vmatprep.mubr.msk.bf16.mxu1 %vm2499_vm1, %v2498_v0  ;;  %v1023_v36 = vrot.slane %v2916_v35, %v2623_v15 }
 0x85b   :  { %2303 = vmatprep.subr.bf16.mxu0 %v2498_v0 }
 0x85d   :  { %2298 = vmatpush3.bf16.msra.mxu1 %v2597_v5 }
 0x85e   :  { %2311 = vmatprep.subr.bf16.mxu1 %v2498_v0 }
 0x927   :  { %v883_v13 = vpop.f32.mrb[12].mxu0 }
 0x928   :  { %v889_v47 = vadd.f32 %v883_v13, %v844_v8  ;;  %v2277_v17 = vpop.f32.mrb[13].mxu0 }
 0x929   :  { %v886_v19 = vpop.f32.mrb[14].mxu0 }
 0x92a   :  { %2412 = vtanh.f32 %v889_v47  ;;  %v2278_v20 = vpop.f32.mrb[15].mxu0  ;;  %v2126_v6 = vmul.f32 -1.442695, %v889_v47 }
 0x92b   :  { %v1002_v21 = vpop.f32.mrb[12].mxu1 }
 0x92c   :  { %v1008_v52 = vadd.f32 %v1002_v21, %v963_v18  ;;  %v2285_v26 = vpop.f32.mrb[13].mxu1 }
 0x92d   :  { %v1005_v28 = vpop.f32.mrb[14].mxu1 }
 0x92e   :  { %2414 = vtanh.f32 %v1008_v52  ;;  %v2286_v9 = vpop.f32.mrb[15].mxu1  ;;  %v2131_v37 = vmul.f32 -1.442695, %v1008_v52 }
 0x92f   :  { %2416 = vpow2.f32 %v2126_v6 }
 0x930   :  { %2418 = vpow2.f32 %v2131_v37 }
 0x934   :  { %v2413_v30 = vpop.eup %2412 }
 0x935   :  { %910 = vrot.lane.b32.xlu1 %v2413_v30, %s2501_s29 }
 0x938   :  { %v2415_v34 = vpop.eup %2414 }
 0x939   :  { %905 = vrot.lane.b32.xlu1 %v904_v33, %s2501_s29  ;;  %1029 = vrot.lane.b32.xlu0 %v2415_v34, %s2501_s29  ;;  %v2417_v38 = vpop.eup %2416 }
 0x93a   :  { %v893_v40 = vadd.f32 1.0, %v2417_v38  ;;  %v2419_v42 = vpop.eup %2418 }
 0x93b   :  { %v1012_v29 = vadd.f32 1.0, %v2419_v42 }
 0x93c   :  { %2420 = vrcp.f32 %v893_v40 }
 0x93d   :  { %1024 = vrot.lane.b32.xlu0 %v1023_v36, %s2501_s29  ;;  %2422 = vrcp.f32 %v1012_v29 }
 0x946   :  { %v2421_v12 = vpop.eup %2420 }
 0x947   :  { %v2423_v46 = vpop.eup %2422 }
 0x9a7   :  { %v911_v44 = vpop.permute.xlu1 %910 }
 0x9a8   :  { %v913_v45 = vmul.f32 %v2421_v12, %v911_v44 }
 0x9aa   :  { %915 = vrot.lane.b32.xlu1 %v913_v45, %s2501_s29 }
 0x9ab   :  { %v1030_v48 = vpop.permute.xlu0 %1029  ;;  %v906_v50 = vpop.permute.xlu1 %905 }
 0x9ac   :  { %v1032_v49 = vmul.f32 %v2423_v46, %v1030_v48  ;;  %v908_v53 = vmul.f32 %v2421_v12, %v906_v50 }
 0x9ae   :  { %1034 = vrot.lane.b32.xlu0 %v1032_v49, %s2501_s29 }
 0x9af   :  { %v1025_v14 = vpop.permute.xlu0 %1024 }
 0x9b0   :  { %v1027_v56 = vmul.f32 %v2423_v46, %v1025_v14 }
 0xa1c   :  { %v916_v54 = vpop.permute.xlu1 %915 }
 0xa1d   :  { %v918_v55 = vadd.f32 %v916_v54, %v908_v53 }
 0xa1f   :  { %2424 = vtanh.f32 %v918_v55  ;;  %v955_v60 = vrot.slane %v918_v55, %v2623_v15 }
 0xa20   :  { %v1035_v58 = vpop.permute.xlu0 %1034 }
 0xa21   :  { %v1037_v16 = vadd.f32 %v1035_v58, %v1027_v56 }
 0xa23   :  { %2426 = vtanh.f32 %v1037_v16  ;;  %v1074_v51 = vrot.slane %v1037_v16, %v2623_v15 }
 0xa29   :  { %v2425_v59 = vpop.eup %2424 }
 0xa2a   :  { %921 = vrot.lane.b32.xlu1 %v2425_v59, %s2501_s29 }
 0xa2d   :  { %v2427_v43 = vpop.eup %2426 }
 0xa2e   :  { %930 = vperm.xlu1 %2359, %v2928_v39   ;;  %1040 = vrot.lane.b32.xlu0 %v2427_v43, %s2501_s29 }
 0xa32   :  { %1049 = vperm.xlu0 %2358, %v2934_v63  }
 0xa9c   :  { %v922_v7 = vpop.permute.xlu1 %921 }
 0xa9d   :  { %v924_v8 = vmul.f32 %v2421_v12, %v922_v7 }
 0xa9f   :  { %v940_v11 = vrot.slane %v924_v8, %v2623_v15 }
 0xaa0   :  { %v1041_v13 = vpop.permute.xlu0 %1040 }
 0xaa1   :  { %v1043_v47 = vmul.f32 %v2423_v46, %v1041_v13  ;;  %941 = vrot.lane.b32.xlu1 %v940_v11, %s2503_s4 }
 0xaa3   :  { %v1059_v17 = vrot.slane %v1043_v47, %v2623_v15 }
 0xaa5   :  { %956 = vrot.lane.b32.xlu1 %v955_v60, %s2504_s18  ;;  %1060 = vrot.lane.b32.xlu0 %v1059_v17, %s2503_s4 }
 0xaa9   :  { %1075 = vrot.lane.b32.xlu0 %v1074_v51, %s2504_s18 }
 0xaad   :  { %v931_v18 = vpop.permute.xlu1 %930 }
 0xaae   :  { %vm932_vm4 = vcmp.eq.s32.totalorder %v931_v18, 1 }
 0xab1   :  { %v1050_v19 = vpop.permute.xlu0 %1049 }
 0xab2   :  { %vm1051_vm5 = vcmp.eq.s32.totalorder %v1050_v19, 1 }
 0xb13   :  { %v942_v20 = vpop.permute.xlu1 %941 }
 0xb14   :  { %v944_v21 = vsel %vm932_vm4, %v942_v20, 0.0  ;;  %v2948_v52 = vsel %vm932_vm4, %v942_v20, %v2866_v57 }
 0xb15   :  { %2128 = vst.msk [vmem:[%s3284_s5 + $0x6] sm:$0x3] %vm65_vm0, %v944_v21  ;;  %v1083_v26 = vpack.c.bf16 %v2948_v52, %v2948_v52 }
 0xb17   :  { %2292 = vmatmul.mubr.msk.bf16.vlgmr.msra.gmra.mrb[16].mxu0 %vm114_vm2, %v1083_v26  ;;  %v1061_v28 = vpop.permute.xlu0 %1060  ;;  %v957_v12 = vpop.permute.xlu1 %956 }
 0xb18   :  { %v1063_v9 = vsel %vm1051_vm5, %v1061_v28, 0.0  ;;  %v2960_v10 = vsel %vm1051_vm5, %v1061_v28, %v2878_v61  ;;  %2304 = vmatpush3.bf16.msra.mxu0 %v2554_v1  ;;  %2307 = vmatprep.mubr.msk.bf16.mxu0 %vm2499_vm1, %v2498_v0  ;;  %v2134_v1 = vld [vmem:[%s3280_s0 + $0x4] sm:$0x1] }
 0xb19   :  { %2133 = vst.msk [vmem:[%s3285_s6 + $0x8] sm:$0x3] %vm65_vm0, %v1063_v9  ;;  %v1202_v57 = vpack.c.bf16 %v2960_v10, %v2960_v10  ;;  %2305 = vmatprep.subr.bf16.mxu0 %v2498_v0  ;;  %v1081_v61 = vunpack.c.l.bf16 %v2134_v1 }
 0xb1b   :  { %2300 = vmatmul.mubr.msk.bf16.vlgmr.msra.gmra.mrb[16].mxu1 %vm114_vm2, %v1202_v57  ;;  %v1076_v45 = vpop.permute.xlu0 %1075 }
 0xb1c   :  { %2306 = vmatpush3.bf16.msra.mxu0 %v2590_v4  ;;  %2312 = vmatpush3.bf16.msra.mxu1 %v2580_v2  ;;  %v2139_v2 = vld [vmem:[%s3281_s1 + $0xb] sm:$0x1]  ;;  %v1082_v4 = vadd.f32 %v2659_v23, %v1081_v61  ;;  %v2991_v23 = vsel %vm932_vm4, %v957_v12, %v2909_v31  ;;  %v2998_v48 = vsel %vm1051_vm5, %v1076_v45, %v2916_v35 }
 0xb1d   :  { %2313 = vmatprep.subr.bf16.mxu1 %v2498_v0  ;;  %2315 = vmatprep.mubr.msk.bf16.mxu1 %vm2499_vm1, %v2498_v0  ;;  %v1200_v30 = vunpack.c.l.bf16 %v2139_v2  ;;  %v1261_v49 = vrot.slane %v2998_v48, %v2623_v15 }
 0xb1e   :  { %2319 = vmatprep.subr.bf16.mxu0 %v2498_v0 }
 0xb1f   :  { %v1201_v36 = vadd.f32 %v2664_v24, %v1200_v30  ;;  %v1142_v24 = vrot.slane %v2991_v23, %v2623_v15 }
 0xb20   :  { %2314 = vmatpush3.bf16.msra.mxu1 %v2597_v5 }
 0xb21   :  { %2327 = vmatprep.subr.bf16.mxu1 %v2498_v0 }
 0xbea   :  { %v1121_v32 = vpop.f32.mrb[16].mxu0 }
 0xbeb   :  { %v1127_v33 = vadd.f32 %v1121_v32, %v1082_v4  ;;  %v2293_v34 = vpop.f32.mrb[17].mxu0 }
 0xbec   :  { %v1124_v5 = vpop.f32.mrb[18].mxu0 }
 0xbed   :  { %2428 = vtanh.f32 %v1127_v33  ;;  %v2294_v6 = vpop.f32.mrb[19].mxu0  ;;  %v2136_v31 = vmul.f32 -1.442695, %v1127_v33 }
 0xbee   :  { %v1240_v37 = vpop.f32.mrb[16].mxu1  ;;  %v3061_v6 = vld [vmem:[%s3277_s2 + $0x10] sm:$0xff]  }
 0xbef   :  { %v1246_v38 = vadd.f32 %v1240_v37, %v1201_v36  ;;  %v2301_v40 = vpop.f32.mrb[17].mxu1  ;;  %v3071_v37 = vld [vmem:[%s3277_s2 + $0x18] sm:$0xff]  }
 0xbf0   :  { %v1243_v42 = vpop.f32.mrb[18].mxu1 }
 0xbf1   :  { %2430 = vtanh.f32 %v1246_v38  ;;  %v2302_v29 = vpop.f32.mrb[19].mxu1  ;;  %v2141_v50 = vmul.f32 -1.442695, %v1246_v38  ;;  %v2144_v38 = vld [vmem:[%s3280_s0 + $0x5] sm:$0x1] }
 0xbf2   :  { %2432 = vpow2.f32 %v2136_v31  ;;  %v1319_v40 = vunpack.c.l.bf16 %v2144_v38  ;;  %v2149_v42 = vld [vmem:[%s3281_s1 + $0xa] sm:$0x1]  ;;  %v3084_v29 = vld [vmem:[%s3282_s3] ss:$0 sm:$0xff] }
 0xbf3   :  { %2434 = vpow2.f32 %v2141_v50 }
 0xbf4   :  { %v1320_v12 = vadd.f32 %v3084_v29, %v1319_v40 }
 0xbf7   :  { %v2429_v44 = vpop.eup %2428 }
 0xbf8   :  { %1148 = vrot.lane.b32.xlu1 %v2429_v44, %s2501_s29  ;;  %v1438_v44 = vunpack.c.l.bf16 %v2149_v42 }
 0xbfb   :  { %v2431_v46 = vpop.eup %2430 }
 0xbfc   :  { %1143 = vrot.lane.b32.xlu1 %v1142_v24, %s2501_s29  ;;  %1267 = vrot.lane.b32.xlu0 %v2431_v46, %s2501_s29  ;;  %v2433_v53 = vpop.eup %2432 }
 0xbfd   :  { %v1131_v14 = vadd.f32 1.0, %v2433_v53  ;;  %v2435_v54 = vpop.eup %2434 }
 0xbfe   :  { %v1250_v55 = vadd.f32 1.0, %v2435_v54 }
 0xbff   :  { %2436 = vrcp.f32 %v1131_v14 }
 0xc00   :  { %1262 = vrot.lane.b32.xlu0 %v1261_v49, %s2501_s29  ;;  %2438 = vrcp.f32 %v1250_v55  ;;  %v3090_v49 = vld [vmem:[%s3282_s3 + $0x1] ss:$0 sm:$0xff] }
 0xc01   :  { %v1439_v31 = vadd.f32 %v3090_v49, %v1438_v44 }
 0xc09   :  { %v2437_v35 = vpop.eup %2436 }
 0xc0a   :  { %v2439_v16 = vpop.eup %2438 }
 0xc6a   :  { %v1149_v56 = vpop.permute.xlu1 %1148 }
 0xc6b   :  { %v1151_v58 = vmul.f32 %v2437_v35, %v1149_v56 }
 0xc6d   :  { %1153 = vrot.lane.b32.xlu1 %v1151_v58, %s2501_s29 }
 0xc6e   :  { %v1268_v59 = vpop.permute.xlu0 %1267  ;;  %v1144_v7 = vpop.permute.xlu1 %1143 }
 0xc6f   :  { %v1270_v43 = vmul.f32 %v2439_v16, %v1268_v59  ;;  %v1146_v8 = vmul.f32 %v2437_v35, %v1144_v7 }
 0xc71   :  { %1272 = vrot.lane.b32.xlu0 %v1270_v43, %s2501_s29 }
 0xc72   :  { %v1263_v11 = vpop.permute.xlu0 %1262 }
 0xc73   :  { %v1265_v60 = vmul.f32 %v2439_v16, %v1263_v11 }
 0xcdf   :  { %v1154_v13 = vpop.permute.xlu1 %1153 }
 0xce0   :  { %v1156_v47 = vadd.f32 %v1154_v13, %v1146_v8 }
 0xce2   :  { %2440 = vtanh.f32 %v1156_v47  ;;  %v1193_v57 = vrot.slane %v1156_v47, %v2623_v15 }
 0xce3   :  { %v1273_v17 = vpop.permute.xlu0 %1272 }
 0xce4   :  { %v1275_v51 = vadd.f32 %v1273_v17, %v1265_v60 }
 0xce6   :  { %2442 = vtanh.f32 %v1275_v51 }
 0xcec   :  { %v2441_v18 = vpop.eup %2440 }
 0xced   :  { %1159 = vrot.lane.b32.xlu1 %v2441_v18, %s2501_s29 }
 0xcf0   :  { %v2443_v19 = vpop.eup %2442 }
 0xcf1   :  { %1168 = vperm.xlu1 %2359, %v2934_v63   ;;  %1278 = vrot.lane.b32.xlu0 %v2443_v19, %s2501_s29  ;;  %v1312_v63 = vrot.slane %v1275_v51, %v2623_v15 }
 0xcf5   :  { %1287 = vperm.xlu0 %2358, %v2928_v39  }
 0xd5f   :  { %v1160_v20 = vpop.permute.xlu1 %1159 }
 0xd60   :  { %v1162_v21 = vmul.f32 %v2437_v35, %v1160_v20 }
 0xd62   :  { %v1178_v26 = vrot.slane %v1162_v21, %v2623_v15 }
 0xd63   :  { %v1279_v28 = vpop.permute.xlu0 %1278 }
 0xd64   :  { %v1281_v9 = vmul.f32 %v2439_v16, %v1279_v28  ;;  %1179 = vrot.lane.b32.xlu1 %v1178_v26, %s2503_s4 }
 0xd66   :  { %v1297_v1 = vrot.slane %v1281_v9, %v2623_v15 }
 0xd68   :  { %1194 = vrot.lane.b32.xlu1 %v1193_v57, %s2504_s18  ;;  %1298 = vrot.lane.b32.xlu0 %v1297_v1, %s2503_s4 }
 0xd6c   :  { %1313 = vrot.lane.b32.xlu0 %v1312_v63, %s2504_s18 }
 0xd70   :  { %v1169_v39 = vpop.permute.xlu1 %1168 }
 0xd71   :  { %vm1170_vm6 = vcmp.eq.s32.totalorder %v1169_v39, 1 }
 0xd74   :  { %v1288_v61 = vpop.permute.xlu0 %1287 }
 0xd75   :  { %vm1289_vm7 = vcmp.eq.s32.totalorder %v1288_v61, 1 }
 0xdd6   :  { %v1180_v2 = vpop.permute.xlu1 %1179 }
 0xdd7   :  { %v1182_v4 = vsel %vm1170_vm6, %v1180_v2, 0.0  ;;  %v3022_v30 = vsel %vm1170_vm6, %v1180_v2, %v2948_v52  ;;  %v3039_v52 = vld [vmem:[%s3277_s2] sm:$0xff]  }
 0xdd8   :  { %2138 = vst.msk [vmem:[%s3284_s5 + $0x8] sm:$0x3] %vm65_vm0, %v1182_v4  ;;  %v1321_v32 = vpack.c.bf16 %v3022_v30, %v3022_v30 }
 0xdda   :  { %2308 = vmatmul.mubr.msk.bf16.vlgmr.msra.gmra.mrb[20].mxu0 %vm114_vm2, %v1321_v32  ;;  %v1299_v33 = vpop.permute.xlu0 %1298  ;;  %v1195_v58 = vpop.permute.xlu1 %1194 }
 0xddb   :  { %v1301_v34 = vsel %vm1289_vm7, %v1299_v33, 0.0  ;;  %v3034_v36 = vsel %vm1289_vm7, %v1299_v33, %v2960_v10  ;;  %2320 = vmatpush3.bf16.msra.mxu0 %v3039_v52  ;;  %2323 = vmatprep.mubr.msk.bf16.mxu0 %vm2499_vm1, %v2498_v0  ;;  %v3055_v10 = vld [vmem:[%s3277_s2 + $0x8] sm:$0xff]   ;;  %v3095_v59 = vsel %vm1170_vm6, %v1195_v58, %v2991_v23 }
 0xddc   :  { %2143 = vst.msk [vmem:[%s3285_s6 + $0x6] sm:$0x3] %vm65_vm0, %v1301_v34  ;;  %v1440_v5 = vpack.c.bf16 %v3034_v36, %v3034_v36  ;;  %2321 = vmatprep.subr.bf16.mxu0 %v2498_v0  ;;  %v1380_v7 = vrot.slane %v3095_v59, %v2623_v15 }
 0xdde   :  { %2316 = vmatmul.mubr.msk.bf16.vlgmr.msra.gmra.mrb[20].mxu1 %vm114_vm2, %v1440_v5  ;;  %v1314_v43 = vpop.permute.xlu0 %1313 }
 0xddf   :  { %2322 = vmatpush3.bf16.msra.mxu0 %v3055_v10  ;;  %2328 = vmatpush3.bf16.msra.mxu1 %v3061_v6  ;;  %v3102_v11 = vsel %vm1289_vm7, %v1314_v43, %v2998_v48 }
 0xde0   :  { %2329 = vmatprep.subr.bf16.mxu1 %v2498_v0  ;;  %2331 = vmatprep.mubr.msk.bf16.mxu1 %vm2499_vm1, %v2498_v0  ;;  %v1499_v13 = vrot.slane %v3102_v11, %v2623_v15 }
 0xde1   :  { %2335 = vmatprep.subr.bf16.mxu0 %v2498_v0 }
 0xde3   :  { %2330 = vmatpush3.bf16.msra.mxu1 %v3071_v37 }
 0xde4   :  { %2343 = vmatprep.subr.bf16.mxu1 %v2498_v0 }
 0xead   :  { %v1359_v45 = vpop.f32.mrb[20].mxu0 }
 0xeae   :  { %v1365_v24 = vadd.f32 %v1359_v45, %v1320_v12  ;;  %v2309_v46 = vpop.f32.mrb[21].mxu0 }
 0xeaf   :  { %v1362_v50 = vpop.f32.mrb[22].mxu0 }
 0xeb0   :  { %2444 = vtanh.f32 %v1365_v24  ;;  %v2310_v53 = vpop.f32.mrb[23].mxu0  ;;  %v2146_v23 = vmul.f32 -1.442695, %v1365_v24 }
 0xeb1   :  { %v1478_v14 = vpop.f32.mrb[20].mxu1 }
 0xeb2   :  { %v1484_v54 = vadd.f32 %v1478_v14, %v1439_v31  ;;  %v2317_v55 = vpop.f32.mrb[21].mxu1 }
 0xeb3   :  { %v1481_v35 = vpop.f32.mrb[22].mxu1  ;;  %v2159_v55 = vld [vmem:[%s3281_s1 + $0x9] sm:$0x1] }
 0xeb4   :  { %2446 = vtanh.f32 %v1484_v54  ;;  %v2318_v56 = vpop.f32.mrb[23].mxu1  ;;  %v2151_v47 = vmul.f32 -1.442695, %v1484_v54  ;;  %v1676_v35 = vunpack.c.l.bf16 %v2159_v55 }
 0xeb5   :  { %2448 = vpow2.f32 %v2146_v23 }
 0xeb6   :  { %2450 = vpow2.f32 %v2151_v47 }
 0xeba   :  { %v2445_v16 = vpop.eup %2444 }
 0xebb   :  { %1386 = vrot.lane.b32.xlu1 %v2445_v16, %s2501_s29  ;;  %v1677_v16 = vadd.f32 %v3090_v49, %v1676_v35 }
 0xebe   :  { %v2447_v8 = vpop.eup %2446 }
 0xebf   :  { %1381 = vrot.lane.b32.xlu1 %v1380_v7, %s2501_s29  ;;  %1505 = vrot.lane.b32.xlu0 %v2447_v8, %s2501_s29  ;;  %v2449_v60 = vpop.eup %2448 }
 0xec0   :  { %v1369_v17 = vadd.f32 1.0, %v2449_v60  ;;  %v2451_v51 = vpop.eup %2450 }
 0xec1   :  { %v1488_v18 = vadd.f32 1.0, %v2451_v51 }
 0xec2   :  { %2452 = vrcp.f32 %v1369_v17 }
 0xec3   :  { %1500 = vrot.lane.b32.xlu0 %v1499_v13, %s2501_s29  ;;  %2454 = vrcp.f32 %v1488_v18 }
 0xecc   :  { %v2453_v48 = vpop.eup %2452 }
 0xecd   :  { %v2455_v21 = vpop.eup %2454 }
 0xf2d   :  { %v1387_v19 = vpop.permute.xlu1 %1386 }
 0xf2e   :  { %v1389_v20 = vmul.f32 %v2453_v48, %v1387_v19 }
 0xf30   :  { %1391 = vrot.lane.b32.xlu1 %v1389_v20, %s2501_s29 }
 0xf31   :  { %v1506_v26 = vpop.permute.xlu0 %1505  ;;  %v1382_v9 = vpop.permute.xlu1 %1381 }
 0xf32   :  { %v1508_v28 = vmul.f32 %v2455_v21, %v1506_v26  ;;  %v1384_v57 = vmul.f32 %v2453_v48, %v1382_v9 }
 0xf34   :  { %1510 = vrot.lane.b32.xlu0 %v1508_v28, %s2501_s29 }
 0xf35   :  { %v1501_v1 = vpop.permute.xlu0 %1500 }
 0xf36   :  { %v1503_v61 = vmul.f32 %v2455_v21, %v1501_v1 }
 0xfa2   :  { %v1392_v63 = vpop.permute.xlu1 %1391 }
 0xfa3   :  { %v1394_v39 = vadd.f32 %v1392_v63, %v1384_v57 }
 0xfa5   :  { %2456 = vtanh.f32 %v1394_v39  ;;  %v1431_v12 = vrot.slane %v1394_v39, %v2623_v15 }
 0xfa6   :  { %v1511_v2 = vpop.permute.xlu0 %1510 }
 0xfa7   :  { %v1513_v4 = vadd.f32 %v1511_v2, %v1503_v61 }
 0xfa9   :  { %2458 = vtanh.f32 %v1513_v4 }
 0xfaf   :  { %v2457_v32 = vpop.eup %2456 }
 0xfb0   :  { %1397 = vrot.lane.b32.xlu1 %v2457_v32, %s2501_s29 }
 0xfb3   :  { %v2459_v33 = vpop.eup %2458 }
 0xfb4   :  { %1406 = vperm.xlu1 %2359, %v2852_v25   ;;  %1516 = vrot.lane.b32.xlu0 %v2459_v33, %s2501_s29  ;;  %v1550_v25 = vrot.slane %v1513_v4, %v2623_v15 }
 0xfb8   :  { %1525 = vperm.xlu0 %2358, %v2846_v41  }
0x1022   :  { %v1398_v34 = vpop.permute.xlu1 %1397 }
0x1023   :  { %v1400_v5 = vmul.f32 %v2453_v48, %v1398_v34 }
0x1025   :  { %v1416_v38 = vrot.slane %v1400_v5, %v2623_v15 }
0x1026   :  { %v1517_v40 = vpop.permute.xlu0 %1516 }
0x1027   :  { %v1519_v42 = vmul.f32 %v2455_v21, %v1517_v40  ;;  %1417 = vrot.lane.b32.xlu1 %v1416_v38, %s2503_s4 }
0x1029   :  { %v1535_v44 = vrot.slane %v1519_v42, %v2623_v15 }
0x102b   :  { %1432 = vrot.lane.b32.xlu1 %v1431_v12, %s2504_s18  ;;  %1536 = vrot.lane.b32.xlu0 %v1535_v44, %s2503_s4 }
0x102f   :  { %1551 = vrot.lane.b32.xlu0 %v1550_v25, %s2504_s18 }
0x1033   :  { %v1407_v41 = vpop.permute.xlu1 %1406 }
0x1034   :  { %vm1408_vm8 = vcmp.eq.s32.totalorder %v1407_v41, 1 }
0x1037   :  { %v1526_v45 = vpop.permute.xlu0 %1525 }
0x1038   :  { %vm1527_vm9 = vcmp.eq.s32.totalorder %v1526_v45, 1 }
0x1099   :  { %v1418_v24 = vpop.permute.xlu1 %1417 }
0x109a   :  { %v1420_v46 = vsel %vm1408_vm8, %v1418_v24, 0.0  ;;  %v3126_v31 = vsel %vm1408_vm8, %v1418_v24, %v3022_v30 }
0x109b   :  { %2148 = vst.msk [vmem:[%s3284_s5 + $0xa] sm:$0x3] %vm65_vm0, %v1420_v46  ;;  %v1559_v50 = vpack.c.bf16 %v3126_v31, %v3126_v31 }
0x109d   :  { %2324 = vmatmul.mubr.msk.bf16.vlgmr.msra.gmra.mrb[24].mxu0 %vm114_vm2, %v1559_v50  ;;  %v1537_v53 = vpop.permute.xlu0 %1536  ;;  %v1433_v47 = vpop.permute.xlu1 %1432 }
0x109e   :  { %v1539_v14 = vsel %vm1527_vm9, %v1537_v53, 0.0  ;;  %v3138_v54 = vsel %vm1527_vm9, %v1537_v53, %v3034_v36  ;;  %2336 = vmatpush3.bf16.msra.mxu0 %v3039_v52  ;;  %2339 = vmatprep.mubr.msk.bf16.mxu0 %vm2499_vm1, %v2498_v0  ;;  %v2154_v36 = vld [vmem:[%s3280_s0 + $0x6] sm:$0x1]  ;;  %v3167_v17 = vsel %vm1408_vm8, %v1433_v47, %v3095_v59 }
0x109f   :  { %2153 = vst.msk [vmem:[%s3285_s6 + $0x4] sm:$0x3] %vm65_vm0, %v1539_v14  ;;  %v1678_v30 = vpack.c.bf16 %v3138_v54, %v3138_v54  ;;  %2337 = vmatprep.subr.bf16.mxu0 %v2498_v0  ;;  %v1557_v52 = vunpack.c.l.bf16 %v2154_v36  ;;  %v1618_v18 = vrot.slane %v3167_v17, %v2623_v15 }
0x10a1   :  { %2332 = vmatmul.mubr.msk.bf16.vlgmr.msra.gmra.mrb[24].mxu1 %vm114_vm2, %v1678_v30  ;;  %v1552_v51 = vpop.permute.xlu0 %1551 }
0x10a2   :  { %2338 = vmatpush3.bf16.msra.mxu0 %v3055_v10  ;;  %2344 = vmatpush3.bf16.msra.mxu1 %v3061_v6  ;;  %v1558_v10 = vadd.f32 %v3084_v29, %v1557_v52  ;;  %v3174_v19 = vsel %vm1527_vm9, %v1552_v51, %v3102_v11 }
0x10a3   :  { %2345 = vmatprep.subr.bf16.mxu1 %v2498_v0  ;;  %2347 = vmatprep.mubr.msk.bf16.mxu1 %vm2499_vm1, %v2498_v0  ;;  %v1737_v20 = vrot.slane %v3174_v19, %v2623_v15 }
0x10a6   :  { %2346 = vmatpush3.bf16.msra.mxu1 %v3071_v37 }
0x1170   :  { %v1597_v6 = vpop.f32.mrb[24].mxu0 }
0x1171   :  { %v1603_v56 = vadd.f32 %v1597_v6, %v1558_v10  ;;  %v2325_v58 = vpop.f32.mrb[25].mxu0 }
0x1172   :  { %v1600_v0 = vpop.f32.mrb[26].mxu0 }
0x1173   :  { %2460 = vtanh.f32 %v1603_v56  ;;  %v2326_v37 = vpop.f32.mrb[27].mxu0  ;;  %v2156_v59 = vmul.f32 -1.442695, %v1603_v56  ;;  %v2164_v56 = vld [vmem:[%s3280_s0 + $0x7] sm:$0x1] }
0x1174   :  { %v1716_v43 = vpop.f32.mrb[24].mxu1  ;;  %v1795_v58 = vunpack.c.l.bf16 %v2164_v56 }
0x1175   :  { %v1722_v7 = vadd.f32 %v1716_v43, %v1677_v16  ;;  %v2333_v8 = vpop.f32.mrb[25].mxu1 }
0x1176   :  { %v1719_v13 = vpop.f32.mrb[26].mxu1  ;;  %v1796_v16 = vadd.f32 %v3084_v29, %v1795_v58 }
0x1177   :  { %2462 = vtanh.f32 %v1722_v7  ;;  %v2334_v23 = vpop.f32.mrb[27].mxu1  ;;  %v2161_v21 = vmul.f32 -1.442695, %v1722_v7 }
0x1178   :  { %2464 = vpow2.f32 %v2156_v59 }
0x1179   :  { %2466 = vpow2.f32 %v2161_v21 }
0x117d   :  { %v2461_v60 = vpop.eup %2460 }
0x117e   :  { %1624 = vrot.lane.b32.xlu1 %v2461_v60, %s2501_s29 }
0x1181   :  { %v2463_v48 = vpop.eup %2462 }
0x1182   :  { %1619 = vrot.lane.b32.xlu1 %v1618_v18, %s2501_s29  ;;  %1743 = vrot.lane.b32.xlu0 %v2463_v48, %s2501_s29  ;;  %v2465_v26 = vpop.eup %2464 }
0x1183   :  { %v1607_v28 = vadd.f32 1.0, %v2465_v26  ;;  %v2467_v9 = vpop.eup %2466 }
0x1184   :  { %v1726_v57 = vadd.f32 1.0, %v2467_v9 }
0x1185   :  { %2468 = vrcp.f32 %v1607_v28 }
0x1186   :  { %1738 = vrot.lane.b32.xlu0 %v1737_v20, %s2501_s29  ;;  %2470 = vrcp.f32 %v1726_v57 }
0x118f   :  { %v2469_v11 = vpop.eup %2468 }
0x1190   :  { %v2471_v39 = vpop.eup %2470 }
0x11f0   :  { %v1625_v1 = vpop.permute.xlu1 %1624 }
0x11f1   :  { %v1627_v63 = vmul.f32 %v2469_v11, %v1625_v1 }
0x11f3   :  { %1629 = vrot.lane.b32.xlu1 %v1627_v63, %s2501_s29 }
0x11f4   :  { %v1744_v61 = vpop.permute.xlu0 %1743  ;;  %v1620_v4 = vpop.permute.xlu1 %1619 }
0x11f5   :  { %v1746_v2 = vmul.f32 %v2471_v39, %v1744_v61  ;;  %v1622_v32 = vmul.f32 %v2469_v11, %v1620_v4 }
0x11f7   :  { %1748 = vrot.lane.b32.xlu0 %v1746_v2, %s2501_s29 }
0x11f8   :  { %v1739_v33 = vpop.permute.xlu0 %1738 }
0x11f9   :  { %v1741_v38 = vmul.f32 %v2471_v39, %v1739_v33 }
0x1265   :  { %v1630_v34 = vpop.permute.xlu1 %1629 }
0x1266   :  { %v1632_v5 = vadd.f32 %v1630_v34, %v1622_v32 }
0x1268   :  { %2472 = vtanh.f32 %v1632_v5  ;;  %v1669_v50 = vrot.slane %v1632_v5, %v2623_v15 }
0x1269   :  { %v1749_v40 = vpop.permute.xlu0 %1748 }
0x126a   :  { %v1751_v42 = vadd.f32 %v1749_v40, %v1741_v38 }
0x126c   :  { %2474 = vtanh.f32 %v1751_v42 }
0x1272   :  { %v2473_v12 = vpop.eup %2472 }
0x1273   :  { %1635 = vrot.lane.b32.xlu1 %v2473_v12, %s2501_s29 }
0x1276   :  { %v2475_v44 = vpop.eup %2474 }
0x1277   :  { %1644 = vperm.xlu1 %2359, %v2770_v27   ;;  %1754 = vrot.lane.b32.xlu0 %v2475_v44, %s2501_s29  ;;  %v1788_v27 = vrot.slane %v1751_v42, %v2623_v15 }
0x127b   :  { %1763 = vperm.xlu0 %2358, %v2764_v22  }
0x12e5   :  { %v1636_v25 = vpop.permute.xlu1 %1635 }
0x12e6   :  { %v1638_v41 = vmul.f32 %v2469_v11, %v1636_v25 }
0x12e8   :  { %v1654_v45 = vrot.slane %v1638_v41, %v2623_v15 }
0x12e9   :  { %v1755_v24 = vpop.permute.xlu0 %1754 }
0x12ea   :  { %v1757_v46 = vmul.f32 %v2471_v39, %v1755_v24  ;;  %1655 = vrot.lane.b32.xlu1 %v1654_v45, %s2503_s4 }
0x12ec   :  { %v1773_v53 = vrot.slane %v1757_v46, %v2623_v15 }
0x12ee   :  { %1670 = vrot.lane.b32.xlu1 %v1669_v50, %s2504_s18  ;;  %1774 = vrot.lane.b32.xlu0 %v1773_v53, %s2503_s4 }
0x12f2   :  { %1789 = vrot.lane.b32.xlu0 %v1788_v27, %s2504_s18 }
0x12f6   :  { %v1645_v22 = vpop.permute.xlu1 %1644 }
0x12f7   :  { %vm1646_vm1 = vcmp.eq.s32.totalorder %v1645_v22, 1 }
0x12fa   :  { %v1764_v14 = vpop.permute.xlu0 %1763 }
0x12fb   :  { %vm1765_vm10 = vcmp.eq.s32.totalorder %v1764_v14, 1 }
0x135c   :  { %v1656_v30 = vpop.permute.xlu1 %1655 }
0x135d   :  { %v1658_v36 = vsel %vm1646_vm1, %v1656_v30, 0.0  ;;  %v3198_v52 = vsel %vm1646_vm1, %v1656_v30, %v3126_v31 }
0x135e   :  { %2158 = vst.msk [vmem:[%s3284_s5 + $0xc] sm:$0x3] %vm65_vm0, %v1658_v36  ;;  %v1797_v55 = vpack.c.bf16 %v3198_v52, %v3198_v52 }
0x1360   :  { %2340 = vmatmul.mubr.msk.bf16.vlgmr.msra.gmra.mrb[28].mxu0 %vm114_vm2, %v1797_v55  ;;  %v1775_v10 = vpop.permute.xlu0 %1774  ;;  %v1671_v20 = vpop.permute.xlu1 %1670 }
0x1361   :  { %v1777_v35 = vsel %vm1765_vm10, %v1775_v10, 0.0  ;;  %v3210_v6 = vsel %vm1765_vm10, %v1775_v10, %v3138_v54  ;;  %v2169_v54 = vld [vmem:[%s3281_s1 + $0x8] sm:$0x1]  ;;  %v1673_v29 = vsel %vm1646_vm1, %v1671_v20, %v3167_v17 }
0x1362   :  { %2163 = vst.msk [vmem:[%s3285_s6 + $0x2] sm:$0x3] %vm65_vm0, %v1777_v35  ;;  %v1915_v31 = vpack.c.bf16 %v3210_v6, %v3210_v6  ;;  %v1913_v0 = vunpack.c.l.bf16 %v2169_v54  ;;  %v1856_v26 = vrot.slane %v1673_v29, %v2623_v15 }
0x1364   :  { %2348 = vmatmul.mubr.msk.bf16.vlgmr.msra.gmra.mrb[28].mxu1 %vm114_vm2, %v1915_v31  ;;  %v1914_v8 = vadd.f32 %v3090_v49, %v1913_v0  ;;  %v1790_v21 = vpop.permute.xlu0 %1789 }
0x1365   :  { %v1792_v28 = vsel %vm1765_vm10, %v1790_v21, %v3174_v19 }
0x1366   :  { %v1974_v9 = vrot.slane %v1792_v28, %v2623_v15 }
0x1433   :  { %v1835_v37 = vpop.f32.mrb[28].mxu0 }
0x1434   :  { %v1841_v43 = vadd.f32 %v1835_v37, %v1796_v16  ;;  %v2341_v7 = vpop.f32.mrb[29].mxu0 }
0x1435   :  { %v1838_v13 = vpop.f32.mrb[30].mxu0 }
0x1436   :  { %2476 = vtanh.f32 %v1841_v43  ;;  %v2342_v23 = vpop.f32.mrb[31].mxu0  ;;  %v2166_v57 = vmul.f32 -1.442695, %v1841_v43 }
0x1437   :  { %v1953_v47 = vpop.f32.mrb[28].mxu1 }
0x1438   :  { %v1959_v60 = vadd.f32 %v1953_v47, %v1914_v8  ;;  %v2349_v51 = vpop.f32.mrb[29].mxu1 }
0x1439   :  { %v1956_v18 = vpop.f32.mrb[30].mxu1 }
0x143a   :  { %2478 = vtanh.f32 %v1959_v60  ;;  %v2350_v48 = vpop.f32.mrb[31].mxu1  ;;  %v2171_v17 = vmul.f32 -1.442695, %v1959_v60 }
0x143b   :  { %2480 = vpow2.f32 %v2166_v57 }
0x143c   :  { %2482 = vpow2.f32 %v2171_v17 }
0x1440   :  { %v2477_v59 = vpop.eup %2476 }
0x1441   :  { %1862 = vrot.lane.b32.xlu1 %v2477_v59, %s2501_s29 }
0x1444   :  { %v2479_v49 = vpop.eup %2478 }
0x1445   :  { %1857 = vrot.lane.b32.xlu1 %v1856_v26, %s2501_s29  ;;  %1980 = vrot.lane.b32.xlu0 %v2479_v49, %s2501_s29  ;;  %v2481_v11 = vpop.eup %2480 }
0x1446   :  { %v1845_v1 = vadd.f32 1.0, %v2481_v11  ;;  %v2483_v63 = vpop.eup %2482 }
0x1447   :  { %v1963_v39 = vadd.f32 1.0, %v2483_v63 }
0x1448   :  { %2484 = vrcp.f32 %v1845_v1 }
0x1449   :  { %1975 = vrot.lane.b32.xlu0 %v1974_v9, %s2501_s29  ;;  %2486 = vrcp.f32 %v1963_v39 }
0x1452   :  { %v2485_v61 = vpop.eup %2484 }
0x1453   :  { %v2487_v4 = vpop.eup %2486 }
0x14b3   :  { %v1863_v19 = vpop.permute.xlu1 %1862 }
0x14b4   :  { %v1865_v2 = vmul.f32 %v2485_v61, %v1863_v19 }
0x14b6   :  { %1867 = vrot.lane.b32.xlu1 %v1865_v2, %s2501_s29 }
0x14b7   :  { %v1981_v32 = vpop.permute.xlu0 %1980  ;;  %v1858_v34 = vpop.permute.xlu1 %1857 }
0x14b8   :  { %v1983_v33 = vmul.f32 %v2487_v4, %v1981_v32  ;;  %v1860_v5 = vmul.f32 %v2485_v61, %v1858_v34 }
0x14ba   :  { %1985 = vrot.lane.b32.xlu0 %v1983_v33, %s2501_s29 }
0x14bb   :  { %v1976_v38 = vpop.permute.xlu0 %1975 }
0x14bc   :  { %v1978_v12 = vmul.f32 %v2487_v4, %v1976_v38 }
0x1528   :  { %v1868_v40 = vpop.permute.xlu1 %1867 }
0x1529   :  { %v1870_v42 = vadd.f32 %v1868_v40, %v1860_v5 }
0x152b   :  { %2488 = vtanh.f32 %v1870_v42  ;;  %v1907_v24 = vrot.slane %v1870_v42, %v2623_v15 }
0x152c   :  { %v1986_v44 = vpop.permute.xlu0 %1985 }
0x152d   :  { %v1988_v25 = vadd.f32 %v1986_v44, %v1978_v12 }
0x152f   :  { %2490 = vtanh.f32 %v1988_v25  ;;  %v2023_v46 = vrot.slane %v1988_v25, %v2623_v15 }
0x1535   :  { %v2489_v41 = vpop.eup %2488 }
0x1536   :  { %1873 = vrot.lane.b32.xlu1 %v2489_v41, %s2501_s29 }
0x1539   :  { %v2491_v45 = vpop.eup %2490 }
0x153a   :  { %1882 = vperm.xlu1 %2359, %v2688_v3   ;;  %1991 = vrot.lane.b32.xlu0 %v2491_v45, %s2501_s29 }
0x153e   :  { %1999 = vperm.xlu0 %2358, %v2682_v62  }
0x1542   :  { %1908 = vrot.lane.b32.xlu0 %v1907_v24, %s2504_s18 }
0x1546   :  { %2024 = vrot.lane.b32.xlu0 %v2023_v46, %s2504_s18 }
0x15a8   :  { %v1874_v50 = vpop.permute.xlu1 %1873 }
0x15a9   :  { %v1876_v53 = vmul.f32 %v2485_v61, %v1874_v50 }
0x15ab   :  { %v1892_v27 = vrot.slane %v1876_v53, %v2623_v15 }
0x15ac   :  { %v1992_v22 = vpop.permute.xlu0 %1991 }
0x15ad   :  { %v1994_v14 = vmul.f32 %v2487_v4, %v1992_v22  ;;  %1893 = vrot.lane.b32.xlu1 %v1892_v27, %s2503_s4 }
0x15af   :  { %v2009_v3 = vrot.slane %v1994_v14, %v2623_v15 }
0x15b1   :  { %2010 = vrot.lane.b32.xlu1 %v2009_v3, %s2503_s4 }
0x15b9   :  { %v1883_v30 = vpop.permute.xlu1 %1882 }
0x15ba   :  { %vm1884_vm2 = vcmp.eq.s32.totalorder %v1883_v30, 1 }
0x15bd   :  { %v2000_v62 = vpop.permute.xlu0 %1999 }
0x15be   :  { %vm2001_vm11 = vcmp.eq.s32.totalorder %v2000_v62, 1 }
0x15c1   :  { %v1909_v36 = vpop.permute.xlu0 %1908 }
0x15c2   :  { %v1911_v55 = vsel %vm1884_vm2, %v1909_v36, %v1673_v29 }
0x15c3   :  { %2029 = vst.msk [vmem:[%s3279_s8] sm:$0x3] %vm65_vm0, %v1911_v55 }
0x15c5   :  { %v2025_v10 = vpop.permute.xlu0 %2024 }
0x15c6   :  { %v2027_v35 = vsel %vm2001_vm11, %v2025_v10, %v1792_v28 }
0x15c7   :  { %2174 = vst.msk [vmem:[%s3279_s8 + $0x2] sm:$0x3] %vm65_vm0, %v2027_v35 }
0x161f   :  { %v1894_v15 = vpop.permute.xlu1 %1893 }
0x1620   :  { %v1896_v31 = vsel %vm1884_vm2, %v1894_v15, 0.0  ;;  %v1899_v56 = vsel %vm1884_vm2, %v1894_v15, %v3198_v52 }
0x1621   :  { %2168 = vst.msk [vmem:[%s3284_s5 + $0xe] sm:$0x3] %vm65_vm0, %v1896_v31  ;;  %2028 = vst.msk [vmem:[%s3278_s7] sm:$0x3] %vm65_vm0, %v1899_v56 }
0x1623   :  { %v2011_v58 = vpop.permute.xlu1 %2010 }
0x1624   :  { %v2013_v54 = vsel %vm2001_vm11, %v2011_v58, 0.0  ;;  %v2015_v16 = vsel %vm2001_vm11, %v2011_v58, %v3210_v6 }
0x1625   :  { %2014 = vst.msk [vmem:[%s3285_s6] sm:$0x3] %vm65_vm0, %v2013_v54  ;;  %2173 = vst.msk [vmem:[%s3278_s7 + $0x2] sm:$0x3] %vm65_vm0, %v2015_v16 }

</bundles_post_ra>
